<compile_context>
chip_gen: v7x
topology: tpu7x:2x2x1
jax: 0.10.0
libtpu: 0.0.40
codegen_flags: <defaults>
</compile_context>

<pallas_src>
import math
import jax
import jax.numpy as jnp
from jax.experimental import pallas as pl
from jax.experimental.pallas import tpu as pltpu

# ----------------------------- config (small, synthetic) ---------------------
VOCAB_SIZE   = 64
HIDDEN       = 32
NUM_LAYERS   = 2
NUM_HEADS    = 4
HEAD_DIM     = HIDDEN // NUM_HEADS
INTERMEDIATE = 64
MAX_POS      = 16
NUM_LABELS   = 3
LN_EPS       = 1e-12
BATCH        = 2
SEQ          = 8
NEG_INF      = -1e9                       # additive mask value for padding
_ATTN_SCALE  = 1.0 / math.sqrt(HEAD_DIM)
_GELU_C      = 0.7978845608028654         # sqrt(2/pi), gelu_new constant

# Row layout of the packed per-layer (L, 9, H) small-parameter slab.
_BQ, _BK, _BV, _BO, _LN1G, _LN1B, _BO2, _LN2G, _LN2B = range(9)


# ----------------------------- in-kernel helpers ------------------------------
def _layer_norm(v, g, b):
    mu = jnp.mean(v, axis=-1, keepdims=True)
    var = jnp.mean((v - mu) ** 2, axis=-1, keepdims=True)
    return (v - mu) * jax.lax.rsqrt(var + LN_EPS) * g + b


def _gelu_new(v):
    return 0.5 * v * (1.0 + jnp.tanh(_GELU_C * (v + 0.044715 * v * v * v)))


# ----------------------------- fused encoder kernel ---------------------------
def _bigbird_fused_kernel(
    emb_ref,      # (B, S, H) f32   summed word + position + token-type embeddings
    mask_ref,     # (B, S)    f32   additive attention mask (0 / NEG_INF)
    emb_ln_ref,   # (2, H)    f32   embedding LayerNorm [gamma; beta]
    w_attn_ref,   # (L, 4, H, H) bf16  [Wq, Wk, Wv, Wo] per layer
    wi_ref,       # (L, H, I) bf16  FFN in
    wo2_ref,      # (L, I, H) bf16  FFN out
    ph_ref,       # (L, 9, H) f32   packed small params (biases + LN gamma/beta)
    pi_ref,       # (L, 1, I) f32   FFN intermediate bias
    out_ref,      # (B, H)    f32   last-token hidden state
):
    B, S, H = emb_ref.shape
    NH, DH = NUM_HEADS, HEAD_DIM
    T = B * S

    # Embedding LayerNorm on the whole batch folded into the sublane dim.
    emb_ln = emb_ln_ref[...]
    x = _layer_norm(emb_ref[...].reshape(T, H),
                    emb_ln[0:1, :], emb_ln[1:2, :])            # (T, H) f32

    # Additive mask, broadcast ONCE (hoisted out of the layer loop).
    m = mask_ref[...]                                          # (B, S)
    add_mask = jnp.broadcast_to(m[:, None, None, :],
                                (B, NH, S, S)).reshape(B * NH, S, S)

    def split_heads(t):    # (T, H) f32 -> (B*NH, S, DH) f32
        t = t.reshape(B, S, NH, DH)
        t = jnp.transpose(t, (0, 2, 1, 3))
        return t.reshape(B * NH, S, DH)

    def merge_heads(t):    # (B*NH, S, DH) f32 -> (T, H) f32
        t = t.reshape(B, NH, S, DH)
        t = jnp.transpose(t, (0, 2, 1, 3))
        return t.reshape(T, H)

    for l in range(NUM_LAYERS):                                # static unroll
        ph = ph_ref[l]                                         # (9, H) f32
        bi = pi_ref[l]                                         # (1, I) f32
        xb = x.astype(jnp.bfloat16)                            # MXU operand cast

        # ---- Q/K/V projections (bf16 operands, f32 accumulation) -----------
        q = jnp.dot(xb, w_attn_ref[l, 0],
                    preferred_element_type=jnp.float32) + ph[_BQ:_BQ + 1]
        k = jnp.dot(xb, w_attn_ref[l, 1],
                    preferred_element_type=jnp.float32) + ph[_BK:_BK + 1]
        v = jnp.dot(xb, w_attn_ref[l, 2],
                    preferred_element_type=jnp.float32) + ph[_BV:_BV + 1]

        # ---- head-batched attention: (B*NH, S, S) scores, rank-3 einsums ----
        qh = split_heads(q).astype(jnp.bfloat16)
        kh = split_heads(k).astype(jnp.bfloat16)
        vh = split_heads(v).astype(jnp.bfloat16)

        s = jnp.einsum("bqd,bkd->bqk", qh, kh,
                       preferred_element_type=jnp.float32) * _ATTN_SCALE
        s = s + add_mask
        s = s - jnp.max(s, axis=-1, keepdims=True)
        p = jnp.exp(s)
        p = p / jnp.sum(p, axis=-1, keepdims=True)             # exact (parity)

        ctx = jnp.einsum("bqk,bkd->bqd", p.astype(jnp.bfloat16), vh,
                         preferred_element_type=jnp.float32)   # (B*NH, S, DH)
        ctx = merge_heads(ctx)                                  # (T, H) f32

        # ---- single merged-context output projection ------------------------
        attn = jnp.dot(ctx.astype(jnp.bfloat16), w_attn_ref[l, 3],
                       preferred_element_type=jnp.float32) + ph[_BO:_BO + 1]

        # ---- residual + LayerNorm -------------------------------------------
        x = _layer_norm(attn + x, ph[_LN1G:_LN1G + 1], ph[_LN1B:_LN1B + 1])

        # ---- feed-forward, gelu_new, residual + LayerNorm --------------------
        hmid = _gelu_new(
            jnp.dot(x.astype(jnp.bfloat16), wi_ref[l],
                    preferred_element_type=jnp.float32) + bi)   # (T, I)
        ffn = jnp.dot(hmid.astype(jnp.bfloat16), wo2_ref[l],
                      preferred_element_type=jnp.float32) + ph[_BO2:_BO2 + 1]
        x = _layer_norm(ffn + x, ph[_LN2G:_LN2G + 1], ph[_LN2B:_LN2B + 1])

    # Last-token pooling (spec: hidden_states[:, -1, :]); S comes from the ref
    # shape, not a module-level constant.  Padding-unaware by spec.
    out_ref[...] = x.reshape(B, S, H)[:, S - 1, :]


def bigbird_encoder(emb, add_mask, p):
    """emb: (B, S, H) f32, add_mask: (B, S) additive f32 -> (B, H) f32."""
    B, S, H = emb.shape
    vmem = pl.BlockSpec(memory_space=pltpu.MemorySpace.VMEM)   # whole array in VMEM
    # TODO(synk): for real BigBird sizes (H=768, L=12) the stacked weights do not
    # fit in VMEM; stream per-layer weight blocks (grid axis over layers or
    # pltpu.emit_pipeline) instead of the everything-resident design used here.
    return pl.pallas_call(
        _bigbird_fused_kernel,
        out_shape=jax.ShapeDtypeStruct((B, H), jnp.float32),
        in_specs=[vmem] * 8,
        out_specs=vmem,
    )(emb, add_mask, p["emb_ln"], p["w_attn"], p["wi"], p["wo2"],
      p["p_small_h"], p["p_small_i"])


# ----------------------------- parameters -------------------------------------
def init_params(key):
    std = 0.02
    keys = iter(jax.random.split(key, 8))

    def nrm(shape, dtype=jnp.float32):
        return (std * jax.random.normal(next(keys), shape)).astype(dtype)

    L, H, I = NUM_LAYERS, HIDDEN, INTERMEDIATE

    # Packed small per-layer params: zero biases, unit LN gammas.
    p_small_h = jnp.zeros((L, 9, H), jnp.float32)
    p_small_h = p_small_h.at[:, _LN1G].set(1.0).at[:, _LN2G].set(1.0)

    return {
        "word_emb": nrm((VOCAB_SIZE, H)),
        "pos_emb":  nrm((MAX_POS, H)),
        "type_emb": nrm((2, H)),
        "emb_ln":   jnp.concatenate([jnp.ones((1, H), jnp.float32),
                                     jnp.zeros((1, H), jnp.float32)], axis=0),
        # Big matmul weights stored bf16 (MXU operands), stacked over layers.
        # nn.Linear weights kept pre-transposed as (in_features, out_features).
        "w_attn":   nrm((L, 4, H, H), jnp.bfloat16),   # [Wq, Wk, Wv, Wo]
        "wi":       nrm((L, H, I), jnp.bfloat16),
        "wo2":      nrm((L, I, H), jnp.bfloat16),
        "p_small_h": p_small_h,                        # (L, 9, H) f32
        "p_small_i": jnp.zeros((L, 1, I), jnp.float32),
        "wc":       nrm((H, NUM_LABELS)),
        "bc":       jnp.zeros((NUM_LABELS,), jnp.float32),
    }


# ----------------------------- forward pass ------------------------------------
def bigbird_classifier_forward(params, input_ids, attention_mask=None,
                               position_ids=None, labels=None):
    B, S = input_ids.shape
    if attention_mask is None:
        attention_mask = jnp.ones((B, S), jnp.float32)
    if position_ids is None:
        position_ids = jnp.broadcast_to(jnp.arange(S, dtype=jnp.int32), (B, S))
    token_type_ids = jnp.zeros((B, S), jnp.int32)

    # Data-dependent embedding gathers -> plain JAX glue.
    emb = (params["word_emb"][input_ids]
           + params["pos_emb"][position_ids]
           + params["type_emb"][token_type_ids]).astype(jnp.float32)   # (B, S, H)

    # Additive attention mask (broadcast over heads/queries inside the kernel).
    add_mask = (1.0 - attention_mask.astype(jnp.float32)) * NEG_INF    # (B, S)

    # Entire encoder + last-token pooling: ONE fused, gridless pallas_call.
    pooled = bigbird_encoder(emb, add_mask, params)                    # (B, H)

    # Classifier head + loss: tiny (3-lane) -> plain jnp, per review.
    logits = pooled @ params["wc"] + params["bc"]                      # (B, labels)

    if labels is not None:
        logp = jax.nn.log_softmax(logits, axis=-1)
        loss = -jnp.mean(jnp.take_along_axis(logp, labels[:, None], axis=1))
        return loss, logits
    return logits


# ----------------------------- demo ---------------------------------------------
if __name__ == "__main__":
    key = jax.random.PRNGKey(0)
    pkey, ikey, lkey = jax.random.split(key, 3)

    params = init_params(pkey)
    input_ids = jax.random.randint(ikey, (BATCH, SEQ), 0, VOCAB_SIZE, dtype=jnp.int32)
    attention_mask = jnp.ones((BATCH, SEQ), jnp.float32)
    labels = jax.random.randint(lkey, (BATCH,), 0, NUM_LABELS, dtype=jnp.int32)

    fwd = jax.jit(bigbird_classifier_forward)

    logits = fwd(params, input_ids, attention_mask)
    loss, logits2 = fwd(params, input_ids, attention_mask, None, labels)
    jax.block_until_ready((logits, loss, logits2))

    assert logits.shape == (BATCH, NUM_LABELS)
    assert logits2.shape == (BATCH, NUM_LABELS)
    assert loss.shape == ()
    assert bool(jnp.all(jnp.isfinite(logits))) and bool(jnp.isfinite(loss))
    print("KERNEL_OK")
</pallas_src>

<mosaic_0001>
module attributes {stable_mosaic.version = 11 : i64} {
  func.func @_bigbird_fused_kernel(%arg0: memref<2x8x32xf32, #tpu.memory_space<vmem>>, %arg1: memref<2x8xf32, #tpu.memory_space<vmem>>, %arg2: memref<2x32xf32, #tpu.memory_space<vmem>>, %arg3: memref<2x4x32x32xbf16, #tpu.memory_space<vmem>>, %arg4: memref<2x32x64xbf16, #tpu.memory_space<vmem>>, %arg5: memref<2x64x32xbf16, #tpu.memory_space<vmem>>, %arg6: memref<2x9x32xf32, #tpu.memory_space<vmem>>, %arg7: memref<2x1x64xf32, #tpu.memory_space<vmem>>, %arg8: memref<2x32xf32, #tpu.memory_space<vmem>>) attributes {dimension_semantics = [], scalar_prefetch = 0 : i64, scratch_operands = 0 : i64, tpu.core_type = #tpu.core_type<tc>} {
    %c0 = arith.constant 0 : index
    %c0_0 = arith.constant 0 : index
    %0 = vector.load %arg2[%c0, %c0_0] : memref<2x32xf32, #tpu.memory_space<vmem>>, vector<2x32xf32>
    %c0_1 = arith.constant 0 : index
    %c0_2 = arith.constant 0 : index
    %c0_3 = arith.constant 0 : index
    %1 = vector.load %arg0[%c0_1, %c0_2, %c0_3] : memref<2x8x32xf32, #tpu.memory_space<vmem>>, vector<2x8x32xf32>
    %2 = vector.shape_cast %1 : vector<2x8x32xf32> to vector<16x32xf32>
    %3 = vector.extract_strided_slice %0 {offsets = [0, 0], sizes = [1, 32], strides = [1, 1]} : vector<2x32xf32> to vector<1x32xf32>
    %4 = vector.extract_strided_slice %0 {offsets = [1, 0], sizes = [1, 32], strides = [1, 1]} : vector<2x32xf32> to vector<1x32xf32>
    %cst = arith.constant dense<0.000000e+00> : vector<16xf32>
    %5 = vector.multi_reduction <add>, %2, %cst [1] : vector<16x32xf32> to vector<16xf32>
    %6 = vector.shape_cast %5 : vector<16xf32> to vector<16x1xf32>
    %cst_4 = arith.constant 3.200000e+01 : f32
    %7 = vector.broadcast %cst_4 : f32 to vector<16x1xf32>
    %8 = arith.divf %6, %7 : vector<16x1xf32>
    %9 = vector.broadcast %8 : vector<16x1xf32> to vector<16x32xf32>
    %10 = arith.subf %2, %9 : vector<16x32xf32>
    %11 = arith.mulf %10, %10 : vector<16x32xf32>
    %cst_5 = arith.constant dense<0.000000e+00> : vector<16xf32>
    %12 = vector.multi_reduction <add>, %11, %cst_5 [1] : vector<16x32xf32> to vector<16xf32>
    %13 = vector.shape_cast %12 : vector<16xf32> to vector<16x1xf32>
    %cst_6 = arith.constant 3.200000e+01 : f32
    %14 = vector.broadcast %cst_6 : f32 to vector<16x1xf32>
    %15 = arith.divf %13, %14 : vector<16x1xf32>
    %16 = vector.broadcast %8 : vector<16x1xf32> to vector<16x32xf32>
    %17 = arith.subf %2, %16 : vector<16x32xf32>
    %cst_7 = arith.constant 9.99999996E-13 : f32
    %18 = vector.broadcast %cst_7 : f32 to vector<16x1xf32>
    %19 = arith.addf %15, %18 : vector<16x1xf32>
    %20 = math.rsqrt %19 : vector<16x1xf32>
    %21 = vector.broadcast %20 : vector<16x1xf32> to vector<16x32xf32>
    %22 = arith.mulf %17, %21 : vector<16x32xf32>
    %23 = vector.broadcast %3 : vector<1x32xf32> to vector<16x32xf32>
    %24 = arith.mulf %22, %23 : vector<16x32xf32>
    %25 = vector.broadcast %4 : vector<1x32xf32> to vector<16x32xf32>
    %26 = arith.addf %24, %25 : vector<16x32xf32>
    %c0_8 = arith.constant 0 : index
    %c0_9 = arith.constant 0 : index
    %27 = vector.load %arg1[%c0_8, %c0_9] : memref<2x8xf32, #tpu.memory_space<vmem>>, vector<2x8xf32>
    %28 = vector.shape_cast %27 : vector<2x8xf32> to vector<2x1x1x8xf32>
    %29 = vector.shape_cast %28 : vector<2x1x1x8xf32> to vector<2x1x1x8xf32>
    %30 = vector.broadcast %29 : vector<2x1x1x8xf32> to vector<2x4x8x8xf32>
    %31 = vector.shape_cast %30 : vector<2x4x8x8xf32> to vector<8x8x8xf32>
    %c0_10 = arith.constant 0 : index
    %c0_11 = arith.constant 0 : index
    %c0_12 = arith.constant 0 : index
    %32 = vector.load %arg6[%c0_10, %c0_11, %c0_12] : memref<2x9x32xf32, #tpu.memory_space<vmem>>, vector<1x9x32xf32>
    %33 = vector.shape_cast %32 : vector<1x9x32xf32> to vector<9x32xf32>
    %c0_13 = arith.constant 0 : index
    %c0_14 = arith.constant 0 : index
    %c0_15 = arith.constant 0 : index
    %34 = vector.load %arg7[%c0_13, %c0_14, %c0_15] : memref<2x1x64xf32, #tpu.memory_space<vmem>>, vector<1x1x64xf32>
    %35 = vector.shape_cast %34 : vector<1x1x64xf32> to vector<1x64xf32>
    %36 = arith.truncf %26 : vector<16x32xf32> to vector<16x32xbf16>
    %c0_16 = arith.constant 0 : index
    %c0_17 = arith.constant 0 : index
    %c0_18 = arith.constant 0 : index
    %c0_19 = arith.constant 0 : index
    %37 = vector.load %arg3[%c0_16, %c0_17, %c0_18, %c0_19] : memref<2x4x32x32xbf16, #tpu.memory_space<vmem>>, vector<1x1x32x32xbf16>
    %38 = vector.shape_cast %37 : vector<1x1x32x32xbf16> to vector<32x32xbf16>
    %cst_20 = arith.constant dense<0.000000e+00> : vector<16x32xf32>
    %39 = tpu.matmul %36, %38, %cst_20 {dimension_numbers = #tpu.dot_dimension_numbers<[1], [0], [0], [1], [0, 0, 1, 1], [], []>} : vector<16x32xbf16>, vector<32x32xbf16>, vector<16x32xf32> -> vector<16x32xf32>
    %40 = vector.extract_strided_slice %33 {offsets = [0, 0], sizes = [1, 32], strides = [1, 1]} : vector<9x32xf32> to vector<1x32xf32>
    %41 = vector.broadcast %40 : vector<1x32xf32> to vector<16x32xf32>
    %42 = arith.addf %39, %41 : vector<16x32xf32>
    %c0_21 = arith.constant 0 : index
    %c1 = arith.constant 1 : index
    %c0_22 = arith.constant 0 : index
    %c0_23 = arith.constant 0 : index
    %43 = vector.load %arg3[%c0_21, %c1, %c0_22, %c0_23] : memref<2x4x32x32xbf16, #tpu.memory_space<vmem>>, vector<1x1x32x32xbf16>
    %44 = vector.shape_cast %43 : vector<1x1x32x32xbf16> to vector<32x32xbf16>
    %cst_24 = arith.constant dense<0.000000e+00> : vector<16x32xf32>
    %45 = tpu.matmul %36, %44, %cst_24 {dimension_numbers = #tpu.dot_dimension_numbers<[1], [0], [0], [1], [0, 0, 1, 1], [], []>} : vector<16x32xbf16>, vector<32x32xbf16>, vector<16x32xf32> -> vector<16x32xf32>
    %46 = vector.extract_strided_slice %33 {offsets = [1, 0], sizes = [1, 32], strides = [1, 1]} : vector<9x32xf32> to vector<1x32xf32>
    %47 = vector.broadcast %46 : vector<1x32xf32> to vector<16x32xf32>
    %48 = arith.addf %45, %47 : vector<16x32xf32>
    %c0_25 = arith.constant 0 : index
    %c2 = arith.constant 2 : index
    %c0_26 = arith.constant 0 : index
    %c0_27 = arith.constant 0 : index
    %49 = vector.load %arg3[%c0_25, %c2, %c0_26, %c0_27] : memref<2x4x32x32xbf16, #tpu.memory_space<vmem>>, vector<1x1x32x32xbf16>
    %50 = vector.shape_cast %49 : vector<1x1x32x32xbf16> to vector<32x32xbf16>
    %cst_28 = arith.constant dense<0.000000e+00> : vector<16x32xf32>
    %51 = tpu.matmul %36, %50, %cst_28 {dimension_numbers = #tpu.dot_dimension_numbers<[1], [0], [0], [1], [0, 0, 1, 1], [], []>} : vector<16x32xbf16>, vector<32x32xbf16>, vector<16x32xf32> -> vector<16x32xf32>
    %52 = vector.extract_strided_slice %33 {offsets = [2, 0], sizes = [1, 32], strides = [1, 1]} : vector<9x32xf32> to vector<1x32xf32>
    %53 = vector.broadcast %52 : vector<1x32xf32> to vector<16x32xf32>
    %54 = arith.addf %51, %53 : vector<16x32xf32>
    %55 = vector.shape_cast %42 : vector<16x32xf32> to vector<2x8x4x8xf32>
    %56 = tpu.transpose %55, [0, 2, 1, 3] : vector<2x8x4x8xf32> -> vector<2x4x8x8xf32>
    %57 = vector.shape_cast %56 : vector<2x4x8x8xf32> to vector<8x8x8xf32>
    %58 = arith.truncf %57 : vector<8x8x8xf32> to vector<8x8x8xbf16>
    %59 = vector.shape_cast %48 : vector<16x32xf32> to vector<2x8x4x8xf32>
    %60 = tpu.transpose %59, [0, 2, 1, 3] : vector<2x8x4x8xf32> -> vector<2x4x8x8xf32>
    %61 = vector.shape_cast %60 : vector<2x4x8x8xf32> to vector<8x8x8xf32>
    %62 = arith.truncf %61 : vector<8x8x8xf32> to vector<8x8x8xbf16>
    %63 = vector.shape_cast %54 : vector<16x32xf32> to vector<2x8x4x8xf32>
    %64 = tpu.transpose %63, [0, 2, 1, 3] : vector<2x8x4x8xf32> -> vector<2x4x8x8xf32>
    %65 = vector.shape_cast %64 : vector<2x4x8x8xf32> to vector<8x8x8xf32>
    %66 = arith.truncf %65 : vector<8x8x8xf32> to vector<8x8x8xbf16>
    "tpu.trace_start"() <{level = 10 : i32, message = "bqd,bkd->bqk"}> : () -> ()
    %cst_29 = arith.constant dense<0.000000e+00> : vector<8x8x8xf32>
    %67 = tpu.matmul %58, %62, %cst_29 {dimension_numbers = #tpu.dot_dimension_numbers<[2], [2], [1], [1], [0, 0, 0, 1, 1, 1], [0], [0]>} : vector<8x8x8xbf16>, vector<8x8x8xbf16>, vector<8x8x8xf32> -> vector<8x8x8xf32>
    "tpu.trace_stop"() : () -> ()
    %cst_30 = arith.constant 0.353553385 : f32
    %68 = vector.broadcast %cst_30 : f32 to vector<8x8x8xf32>
    %69 = arith.mulf %67, %68 : vector<8x8x8xf32>
    %70 = arith.addf %69, %31 : vector<8x8x8xf32>
    %cst_31 = arith.constant dense<0xFF800000> : vector<8x8xf32>
    %71 = vector.multi_reduction <maximumf>, %70, %cst_31 [2] : vector<8x8x8xf32> to vector<8x8xf32>
    %72 = vector.shape_cast %71 : vector<8x8xf32> to vector<8x8x1xf32>
    %73 = vector.broadcast %72 : vector<8x8x1xf32> to vector<8x8x8xf32>
    %74 = arith.subf %70, %73 : vector<8x8x8xf32>
    %75 = math.exp %74 : vector<8x8x8xf32>
    %cst_32 = arith.constant dense<0.000000e+00> : vector<8x8xf32>
    %76 = vector.multi_reduction <add>, %75, %cst_32 [2] : vector<8x8x8xf32> to vector<8x8xf32>
    %77 = vector.shape_cast %76 : vector<8x8xf32> to vector<8x8x1xf32>
    %78 = vector.broadcast %77 : vector<8x8x1xf32> to vector<8x8x8xf32>
    %79 = arith.divf %75, %78 : vector<8x8x8xf32>
    %80 = arith.truncf %79 : vector<8x8x8xf32> to vector<8x8x8xbf16>
    "tpu.trace_start"() <{level = 10 : i32, message = "bqk,bkd->bqd"}> : () -> ()
    %cst_33 = arith.constant dense<0.000000e+00> : vector<8x8x8xf32>
    %81 = tpu.matmul %80, %66, %cst_33 {dimension_numbers = #tpu.dot_dimension_numbers<[2], [1], [1], [2], [0, 0, 0, 1, 1, 2], [0], [0]>} : vector<8x8x8xbf16>, vector<8x8x8xbf16>, vector<8x8x8xf32> -> vector<8x8x8xf32>
    "tpu.trace_stop"() : () -> ()
    %82 = vector.shape_cast %81 : vector<8x8x8xf32> to vector<2x4x8x8xf32>
    %83 = tpu.transpose %82, [0, 2, 1, 3] : vector<2x4x8x8xf32> -> vector<2x8x4x8xf32>
    %84 = vector.shape_cast %83 : vector<2x8x4x8xf32> to vector<16x32xf32>
    %85 = arith.truncf %84 : vector<16x32xf32> to vector<16x32xbf16>
    %c0_34 = arith.constant 0 : index
    %c3 = arith.constant 3 : index
    %c0_35 = arith.constant 0 : index
    %c0_36 = arith.constant 0 : index
    %86 = vector.load %arg3[%c0_34, %c3, %c0_35, %c0_36] : memref<2x4x32x32xbf16, #tpu.memory_space<vmem>>, vector<1x1x32x32xbf16>
    %87 = vector.shape_cast %86 : vector<1x1x32x32xbf16> to vector<32x32xbf16>
    %cst_37 = arith.constant dense<0.000000e+00> : vector<16x32xf32>
    %88 = tpu.matmul %85, %87, %cst_37 {dimension_numbers = #tpu.dot_dimension_numbers<[1], [0], [0], [1], [0, 0, 1, 1], [], []>} : vector<16x32xbf16>, vector<32x32xbf16>, vector<16x32xf32> -> vector<16x32xf32>
    %89 = vector.extract_strided_slice %33 {offsets = [3, 0], sizes = [1, 32], strides = [1, 1]} : vector<9x32xf32> to vector<1x32xf32>
    %90 = vector.broadcast %89 : vector<1x32xf32> to vector<16x32xf32>
    %91 = arith.addf %88, %90 : vector<16x32xf32>
    %92 = arith.addf %91, %26 : vector<16x32xf32>
    %93 = vector.extract_strided_slice %33 {offsets = [4, 0], sizes = [1, 32], strides = [1, 1]} : vector<9x32xf32> to vector<1x32xf32>
    %94 = vector.extract_strided_slice %33 {offsets = [5, 0], sizes = [1, 32], strides = [1, 1]} : vector<9x32xf32> to vector<1x32xf32>
    %cst_38 = arith.constant dense<0.000000e+00> : vector<16xf32>
    %95 = vector.multi_reduction <add>, %92, %cst_38 [1] : vector<16x32xf32> to vector<16xf32>
    %96 = vector.shape_cast %95 : vector<16xf32> to vector<16x1xf32>
    %cst_39 = arith.constant 3.200000e+01 : f32
    %97 = vector.broadcast %cst_39 : f32 to vector<16x1xf32>
    %98 = arith.divf %96, %97 : vector<16x1xf32>
    %99 = vector.broadcast %98 : vector<16x1xf32> to vector<16x32xf32>
    %100 = arith.subf %92, %99 : vector<16x32xf32>
    %101 = arith.mulf %100, %100 : vector<16x32xf32>
    %cst_40 = arith.constant dense<0.000000e+00> : vector<16xf32>
    %102 = vector.multi_reduction <add>, %101, %cst_40 [1] : vector<16x32xf32> to vector<16xf32>
    %103 = vector.shape_cast %102 : vector<16xf32> to vector<16x1xf32>
    %cst_41 = arith.constant 3.200000e+01 : f32
    %104 = vector.broadcast %cst_41 : f32 to vector<16x1xf32>
    %105 = arith.divf %103, %104 : vector<16x1xf32>
    %106 = vector.broadcast %98 : vector<16x1xf32> to vector<16x32xf32>
    %107 = arith.subf %92, %106 : vector<16x32xf32>
    %cst_42 = arith.constant 9.99999996E-13 : f32
    %108 = vector.broadcast %cst_42 : f32 to vector<16x1xf32>
    %109 = arith.addf %105, %108 : vector<16x1xf32>
    %110 = math.rsqrt %109 : vector<16x1xf32>
    %111 = vector.broadcast %110 : vector<16x1xf32> to vector<16x32xf32>
    %112 = arith.mulf %107, %111 : vector<16x32xf32>
    %113 = vector.broadcast %93 : vector<1x32xf32> to vector<16x32xf32>
    %114 = arith.mulf %112, %113 : vector<16x32xf32>
    %115 = vector.broadcast %94 : vector<1x32xf32> to vector<16x32xf32>
    %116 = arith.addf %114, %115 : vector<16x32xf32>
    %117 = arith.truncf %116 : vector<16x32xf32> to vector<16x32xbf16>
    %c0_43 = arith.constant 0 : index
    %c0_44 = arith.constant 0 : index
    %c0_45 = arith.constant 0 : index
    %118 = vector.load %arg4[%c0_43, %c0_44, %c0_45] : memref<2x32x64xbf16, #tpu.memory_space<vmem>>, vector<1x32x64xbf16>
    %119 = vector.shape_cast %118 : vector<1x32x64xbf16> to vector<32x64xbf16>
    %cst_46 = arith.constant dense<0.000000e+00> : vector<16x64xf32>
    %120 = tpu.matmul %117, %119, %cst_46 {dimension_numbers = #tpu.dot_dimension_numbers<[1], [0], [0], [1], [0, 0, 1, 1], [], []>} : vector<16x32xbf16>, vector<32x64xbf16>, vector<16x64xf32> -> vector<16x64xf32>
    %121 = vector.broadcast %35 : vector<1x64xf32> to vector<16x64xf32>
    %122 = arith.addf %120, %121 : vector<16x64xf32>
    %cst_47 = arith.constant 5.000000e-01 : f32
    %123 = vector.broadcast %cst_47 : f32 to vector<16x64xf32>
    %124 = arith.mulf %123, %122 : vector<16x64xf32>
    %cst_48 = arith.constant 4.471500e-02 : f32
    %125 = vector.broadcast %cst_48 : f32 to vector<16x64xf32>
    %126 = arith.mulf %125, %122 : vector<16x64xf32>
    %127 = arith.mulf %126, %122 : vector<16x64xf32>
    %128 = arith.mulf %127, %122 : vector<16x64xf32>
    %129 = arith.addf %122, %128 : vector<16x64xf32>
    %cst_49 = arith.constant 0.797884583 : f32
    %130 = vector.broadcast %cst_49 : f32 to vector<16x64xf32>
    %131 = arith.mulf %130, %129 : vector<16x64xf32>
    %132 = math.tanh %131 : vector<16x64xf32>
    %cst_50 = arith.constant 1.000000e+00 : f32
    %133 = vector.broadcast %cst_50 : f32 to vector<16x64xf32>
    %134 = arith.addf %133, %132 : vector<16x64xf32>
    %135 = arith.mulf %124, %134 : vector<16x64xf32>
    %136 = arith.truncf %135 : vector<16x64xf32> to vector<16x64xbf16>
    %c0_51 = arith.constant 0 : index
    %c0_52 = arith.constant 0 : index
    %c0_53 = arith.constant 0 : index
    %137 = vector.load %arg5[%c0_51, %c0_52, %c0_53] : memref<2x64x32xbf16, #tpu.memory_space<vmem>>, vector<1x64x32xbf16>
    %138 = vector.shape_cast %137 : vector<1x64x32xbf16> to vector<64x32xbf16>
    %cst_54 = arith.constant dense<0.000000e+00> : vector<16x32xf32>
    %139 = tpu.matmul %136, %138, %cst_54 {dimension_numbers = #tpu.dot_dimension_numbers<[1], [0], [0], [1], [0, 0, 1, 1], [], []>} : vector<16x64xbf16>, vector<64x32xbf16>, vector<16x32xf32> -> vector<16x32xf32>
    %140 = vector.extract_strided_slice %33 {offsets = [6, 0], sizes = [1, 32], strides = [1, 1]} : vector<9x32xf32> to vector<1x32xf32>
    %141 = vector.broadcast %140 : vector<1x32xf32> to vector<16x32xf32>
    %142 = arith.addf %139, %141 : vector<16x32xf32>
    %143 = arith.addf %142, %116 : vector<16x32xf32>
    %144 = vector.extract_strided_slice %33 {offsets = [7, 0], sizes = [1, 32], strides = [1, 1]} : vector<9x32xf32> to vector<1x32xf32>
    %145 = vector.extract_strided_slice %33 {offsets = [8, 0], sizes = [1, 32], strides = [1, 1]} : vector<9x32xf32> to vector<1x32xf32>
    %cst_55 = arith.constant dense<0.000000e+00> : vector<16xf32>
    %146 = vector.multi_reduction <add>, %143, %cst_55 [1] : vector<16x32xf32> to vector<16xf32>
    %147 = vector.shape_cast %146 : vector<16xf32> to vector<16x1xf32>
    %cst_56 = arith.constant 3.200000e+01 : f32
    %148 = vector.broadcast %cst_56 : f32 to vector<16x1xf32>
    %149 = arith.divf %147, %148 : vector<16x1xf32>
    %150 = vector.broadcast %149 : vector<16x1xf32> to vector<16x32xf32>
    %151 = arith.subf %143, %150 : vector<16x32xf32>
    %152 = arith.mulf %151, %151 : vector<16x32xf32>
    %cst_57 = arith.constant dense<0.000000e+00> : vector<16xf32>
    %153 = vector.multi_reduction <add>, %152, %cst_57 [1] : vector<16x32xf32> to vector<16xf32>
    %154 = vector.shape_cast %153 : vector<16xf32> to vector<16x1xf32>
    %cst_58 = arith.constant 3.200000e+01 : f32
    %155 = vector.broadcast %cst_58 : f32 to vector<16x1xf32>
    %156 = arith.divf %154, %155 : vector<16x1xf32>
    %157 = vector.broadcast %149 : vector<16x1xf32> to vector<16x32xf32>
    %158 = arith.subf %143, %157 : vector<16x32xf32>
    %cst_59 = arith.constant 9.99999996E-13 : f32
    %159 = vector.broadcast %cst_59 : f32 to vector<16x1xf32>
    %160 = arith.addf %156, %159 : vector<16x1xf32>
    %161 = math.rsqrt %160 : vector<16x1xf32>
    %162 = vector.broadcast %161 : vector<16x1xf32> to vector<16x32xf32>
    %163 = arith.mulf %158, %162 : vector<16x32xf32>
    %164 = vector.broadcast %144 : vector<1x32xf32> to vector<16x32xf32>
    %165 = arith.mulf %163, %164 : vector<16x32xf32>
    %166 = vector.broadcast %145 : vector<1x32xf32> to vector<16x32xf32>
    %167 = arith.addf %165, %166 : vector<16x32xf32>
    %c1_60 = arith.constant 1 : index
    %c0_61 = arith.constant 0 : index
    %c0_62 = arith.constant 0 : index
    %168 = vector.load %arg6[%c1_60, %c0_61, %c0_62] : memref<2x9x32xf32, #tpu.memory_space<vmem>>, vector<1x9x32xf32>
    %169 = vector.shape_cast %168 : vector<1x9x32xf32> to vector<9x32xf32>
    %c1_63 = arith.constant 1 : index
    %c0_64 = arith.constant 0 : index
    %c0_65 = arith.constant 0 : index
    %170 = vector.load %arg7[%c1_63, %c0_64, %c0_65] : memref<2x1x64xf32, #tpu.memory_space<vmem>>, vector<1x1x64xf32>
    %171 = vector.shape_cast %170 : vector<1x1x64xf32> to vector<1x64xf32>
    %172 = arith.truncf %167 : vector<16x32xf32> to vector<16x32xbf16>
    %c1_66 = arith.constant 1 : index
    %c0_67 = arith.constant 0 : index
    %c0_68 = arith.constant 0 : index
    %c0_69 = arith.constant 0 : index
    %173 = vector.load %arg3[%c1_66, %c0_67, %c0_68, %c0_69] : memref<2x4x32x32xbf16, #tpu.memory_space<vmem>>, vector<1x1x32x32xbf16>
    %174 = vector.shape_cast %173 : vector<1x1x32x32xbf16> to vector<32x32xbf16>
    %cst_70 = arith.constant dense<0.000000e+00> : vector<16x32xf32>
    %175 = tpu.matmul %172, %174, %cst_70 {dimension_numbers = #tpu.dot_dimension_numbers<[1], [0], [0], [1], [0, 0, 1, 1], [], []>} : vector<16x32xbf16>, vector<32x32xbf16>, vector<16x32xf32> -> vector<16x32xf32>
    %176 = vector.extract_strided_slice %169 {offsets = [0, 0], sizes = [1, 32], strides = [1, 1]} : vector<9x32xf32> to vector<1x32xf32>
    %177 = vector.broadcast %176 : vector<1x32xf32> to vector<16x32xf32>
    %178 = arith.addf %175, %177 : vector<16x32xf32>
    %c1_71 = arith.constant 1 : index
    %c1_72 = arith.constant 1 : index
    %c0_73 = arith.constant 0 : index
    %c0_74 = arith.constant 0 : index
    %179 = vector.load %arg3[%c1_71, %c1_72, %c0_73, %c0_74] : memref<2x4x32x32xbf16, #tpu.memory_space<vmem>>, vector<1x1x32x32xbf16>
    %180 = vector.shape_cast %179 : vector<1x1x32x32xbf16> to vector<32x32xbf16>
    %cst_75 = arith.constant dense<0.000000e+00> : vector<16x32xf32>
    %181 = tpu.matmul %172, %180, %cst_75 {dimension_numbers = #tpu.dot_dimension_numbers<[1], [0], [0], [1], [0, 0, 1, 1], [], []>} : vector<16x32xbf16>, vector<32x32xbf16>, vector<16x32xf32> -> vector<16x32xf32>
    %182 = vector.extract_strided_slice %169 {offsets = [1, 0], sizes = [1, 32], strides = [1, 1]} : vector<9x32xf32> to vector<1x32xf32>
    %183 = vector.broadcast %182 : vector<1x32xf32> to vector<16x32xf32>
    %184 = arith.addf %181, %183 : vector<16x32xf32>
    %c1_76 = arith.constant 1 : index
    %c2_77 = arith.constant 2 : index
    %c0_78 = arith.constant 0 : index
    %c0_79 = arith.constant 0 : index
    %185 = vector.load %arg3[%c1_76, %c2_77, %c0_78, %c0_79] : memref<2x4x32x32xbf16, #tpu.memory_space<vmem>>, vector<1x1x32x32xbf16>
    %186 = vector.shape_cast %185 : vector<1x1x32x32xbf16> to vector<32x32xbf16>
    %cst_80 = arith.constant dense<0.000000e+00> : vector<16x32xf32>
    %187 = tpu.matmul %172, %186, %cst_80 {dimension_numbers = #tpu.dot_dimension_numbers<[1], [0], [0], [1], [0, 0, 1, 1], [], []>} : vector<16x32xbf16>, vector<32x32xbf16>, vector<16x32xf32> -> vector<16x32xf32>
    %188 = vector.extract_strided_slice %169 {offsets = [2, 0], sizes = [1, 32], strides = [1, 1]} : vector<9x32xf32> to vector<1x32xf32>
    %189 = vector.broadcast %188 : vector<1x32xf32> to vector<16x32xf32>
    %190 = arith.addf %187, %189 : vector<16x32xf32>
    %191 = vector.shape_cast %178 : vector<16x32xf32> to vector<2x8x4x8xf32>
    %192 = tpu.transpose %191, [0, 2, 1, 3] : vector<2x8x4x8xf32> -> vector<2x4x8x8xf32>
    %193 = vector.shape_cast %192 : vector<2x4x8x8xf32> to vector<8x8x8xf32>
    %194 = arith.truncf %193 : vector<8x8x8xf32> to vector<8x8x8xbf16>
    %195 = vector.shape_cast %184 : vector<16x32xf32> to vector<2x8x4x8xf32>
    %196 = tpu.transpose %195, [0, 2, 1, 3] : vector<2x8x4x8xf32> -> vector<2x4x8x8xf32>
    %197 = vector.shape_cast %196 : vector<2x4x8x8xf32> to vector<8x8x8xf32>
    %198 = arith.truncf %197 : vector<8x8x8xf32> to vector<8x8x8xbf16>
    %199 = vector.shape_cast %190 : vector<16x32xf32> to vector<2x8x4x8xf32>
    %200 = tpu.transpose %199, [0, 2, 1, 3] : vector<2x8x4x8xf32> -> vector<2x4x8x8xf32>
    %201 = vector.shape_cast %200 : vector<2x4x8x8xf32> to vector<8x8x8xf32>
    %202 = arith.truncf %201 : vector<8x8x8xf32> to vector<8x8x8xbf16>
    "tpu.trace_start"() <{level = 10 : i32, message = "bqd,bkd->bqk"}> : () -> ()
    %cst_81 = arith.constant dense<0.000000e+00> : vector<8x8x8xf32>
    %203 = tpu.matmul %194, %198, %cst_81 {dimension_numbers = #tpu.dot_dimension_numbers<[2], [2], [1], [1], [0, 0, 0, 1, 1, 1], [0], [0]>} : vector<8x8x8xbf16>, vector<8x8x8xbf16>, vector<8x8x8xf32> -> vector<8x8x8xf32>
    "tpu.trace_stop"() : () -> ()
    %cst_82 = arith.constant 0.353553385 : f32
    %204 = vector.broadcast %cst_82 : f32 to vector<8x8x8xf32>
    %205 = arith.mulf %203, %204 : vector<8x8x8xf32>
    %206 = arith.addf %205, %31 : vector<8x8x8xf32>
    %cst_83 = arith.constant dense<0xFF800000> : vector<8x8xf32>
    %207 = vector.multi_reduction <maximumf>, %206, %cst_83 [2] : vector<8x8x8xf32> to vector<8x8xf32>
    %208 = vector.shape_cast %207 : vector<8x8xf32> to vector<8x8x1xf32>
    %209 = vector.broadcast %208 : vector<8x8x1xf32> to vector<8x8x8xf32>
    %210 = arith.subf %206, %209 : vector<8x8x8xf32>
    %211 = math.exp %210 : vector<8x8x8xf32>
    %cst_84 = arith.constant dense<0.000000e+00> : vector<8x8xf32>
    %212 = vector.multi_reduction <add>, %211, %cst_84 [2] : vector<8x8x8xf32> to vector<8x8xf32>
    %213 = vector.shape_cast %212 : vector<8x8xf32> to vector<8x8x1xf32>
    %214 = vector.broadcast %213 : vector<8x8x1xf32> to vector<8x8x8xf32>
    %215 = arith.divf %211, %214 : vector<8x8x8xf32>
    %216 = arith.truncf %215 : vector<8x8x8xf32> to vector<8x8x8xbf16>
    "tpu.trace_start"() <{level = 10 : i32, message = "bqk,bkd->bqd"}> : () -> ()
    %cst_85 = arith.constant dense<0.000000e+00> : vector<8x8x8xf32>
    %217 = tpu.matmul %216, %202, %cst_85 {dimension_numbers = #tpu.dot_dimension_numbers<[2], [1], [1], [2], [0, 0, 0, 1, 1, 2], [0], [0]>} : vector<8x8x8xbf16>, vector<8x8x8xbf16>, vector<8x8x8xf32> -> vector<8x8x8xf32>
    "tpu.trace_stop"() : () -> ()
    %218 = vector.shape_cast %217 : vector<8x8x8xf32> to vector<2x4x8x8xf32>
    %219 = tpu.transpose %218, [0, 2, 1, 3] : vector<2x4x8x8xf32> -> vector<2x8x4x8xf32>
    %220 = vector.shape_cast %219 : vector<2x8x4x8xf32> to vector<16x32xf32>
    %221 = arith.truncf %220 : vector<16x32xf32> to vector<16x32xbf16>
    %c1_86 = arith.constant 1 : index
    %c3_87 = arith.constant 3 : index
    %c0_88 = arith.constant 0 : index
    %c0_89 = arith.constant 0 : index
    %222 = vector.load %arg3[%c1_86, %c3_87, %c0_88, %c0_89] : memref<2x4x32x32xbf16, #tpu.memory_space<vmem>>, vector<1x1x32x32xbf16>
    %223 = vector.shape_cast %222 : vector<1x1x32x32xbf16> to vector<32x32xbf16>
    %cst_90 = arith.constant dense<0.000000e+00> : vector<16x32xf32>
    %224 = tpu.matmul %221, %223, %cst_90 {dimension_numbers = #tpu.dot_dimension_numbers<[1], [0], [0], [1], [0, 0, 1, 1], [], []>} : vector<16x32xbf16>, vector<32x32xbf16>, vector<16x32xf32> -> vector<16x32xf32>
    %225 = vector.extract_strided_slice %169 {offsets = [3, 0], sizes = [1, 32], strides = [1, 1]} : vector<9x32xf32> to vector<1x32xf32>
    %226 = vector.broadcast %225 : vector<1x32xf32> to vector<16x32xf32>
    %227 = arith.addf %224, %226 : vector<16x32xf32>
    %228 = arith.addf %227, %167 : vector<16x32xf32>
    %229 = vector.extract_strided_slice %169 {offsets = [4, 0], sizes = [1, 32], strides = [1, 1]} : vector<9x32xf32> to vector<1x32xf32>
    %230 = vector.extract_strided_slice %169 {offsets = [5, 0], sizes = [1, 32], strides = [1, 1]} : vector<9x32xf32> to vector<1x32xf32>
    %cst_91 = arith.constant dense<0.000000e+00> : vector<16xf32>
    %231 = vector.multi_reduction <add>, %228, %cst_91 [1] : vector<16x32xf32> to vector<16xf32>
    %232 = vector.shape_cast %231 : vector<16xf32> to vector<16x1xf32>
    %cst_92 = arith.constant 3.200000e+01 : f32
    %233 = vector.broadcast %cst_92 : f32 to vector<16x1xf32>
    %234 = arith.divf %232, %233 : vector<16x1xf32>
    %235 = vector.broadcast %234 : vector<16x1xf32> to vector<16x32xf32>
    %236 = arith.subf %228, %235 : vector<16x32xf32>
    %237 = arith.mulf %236, %236 : vector<16x32xf32>
    %cst_93 = arith.constant dense<0.000000e+00> : vector<16xf32>
    %238 = vector.multi_reduction <add>, %237, %cst_93 [1] : vector<16x32xf32> to vector<16xf32>
    %239 = vector.shape_cast %238 : vector<16xf32> to vector<16x1xf32>
    %cst_94 = arith.constant 3.200000e+01 : f32
    %240 = vector.broadcast %cst_94 : f32 to vector<16x1xf32>
    %241 = arith.divf %239, %240 : vector<16x1xf32>
    %242 = vector.broadcast %234 : vector<16x1xf32> to vector<16x32xf32>
    %243 = arith.subf %228, %242 : vector<16x32xf32>
    %cst_95 = arith.constant 9.99999996E-13 : f32
    %244 = vector.broadcast %cst_95 : f32 to vector<16x1xf32>
    %245 = arith.addf %241, %244 : vector<16x1xf32>
    %246 = math.rsqrt %245 : vector<16x1xf32>
    %247 = vector.broadcast %246 : vector<16x1xf32> to vector<16x32xf32>
    %248 = arith.mulf %243, %247 : vector<16x32xf32>
    %249 = vector.broadcast %229 : vector<1x32xf32> to vector<16x32xf32>
    %250 = arith.mulf %248, %249 : vector<16x32xf32>
    %251 = vector.broadcast %230 : vector<1x32xf32> to vector<16x32xf32>
    %252 = arith.addf %250, %251 : vector<16x32xf32>
    %253 = arith.truncf %252 : vector<16x32xf32> to vector<16x32xbf16>
    %c1_96 = arith.constant 1 : index
    %c0_97 = arith.constant 0 : index
    %c0_98 = arith.constant 0 : index
    %254 = vector.load %arg4[%c1_96, %c0_97, %c0_98] : memref<2x32x64xbf16, #tpu.memory_space<vmem>>, vector<1x32x64xbf16>
    %255 = vector.shape_cast %254 : vector<1x32x64xbf16> to vector<32x64xbf16>
    %cst_99 = arith.constant dense<0.000000e+00> : vector<16x64xf32>
    %256 = tpu.matmul %253, %255, %cst_99 {dimension_numbers = #tpu.dot_dimension_numbers<[1], [0], [0], [1], [0, 0, 1, 1], [], []>} : vector<16x32xbf16>, vector<32x64xbf16>, vector<16x64xf32> -> vector<16x64xf32>
    %257 = vector.broadcast %171 : vector<1x64xf32> to vector<16x64xf32>
    %258 = arith.addf %256, %257 : vector<16x64xf32>
    %cst_100 = arith.constant 5.000000e-01 : f32
    %259 = vector.broadcast %cst_100 : f32 to vector<16x64xf32>
    %260 = arith.mulf %259, %258 : vector<16x64xf32>
    %cst_101 = arith.constant 4.471500e-02 : f32
    %261 = vector.broadcast %cst_101 : f32 to vector<16x64xf32>
    %262 = arith.mulf %261, %258 : vector<16x64xf32>
    %263 = arith.mulf %262, %258 : vector<16x64xf32>
    %264 = arith.mulf %263, %258 : vector<16x64xf32>
    %265 = arith.addf %258, %264 : vector<16x64xf32>
    %cst_102 = arith.constant 0.797884583 : f32
    %266 = vector.broadcast %cst_102 : f32 to vector<16x64xf32>
    %267 = arith.mulf %266, %265 : vector<16x64xf32>
    %268 = math.tanh %267 : vector<16x64xf32>
    %cst_103 = arith.constant 1.000000e+00 : f32
    %269 = vector.broadcast %cst_103 : f32 to vector<16x64xf32>
    %270 = arith.addf %269, %268 : vector<16x64xf32>
    %271 = arith.mulf %260, %270 : vector<16x64xf32>
    %272 = arith.truncf %271 : vector<16x64xf32> to vector<16x64xbf16>
    %c1_104 = arith.constant 1 : index
    %c0_105 = arith.constant 0 : index
    %c0_106 = arith.constant 0 : index
    %273 = vector.load %arg5[%c1_104, %c0_105, %c0_106] : memref<2x64x32xbf16, #tpu.memory_space<vmem>>, vector<1x64x32xbf16>
    %274 = vector.shape_cast %273 : vector<1x64x32xbf16> to vector<64x32xbf16>
    %cst_107 = arith.constant dense<0.000000e+00> : vector<16x32xf32>
    %275 = tpu.matmul %272, %274, %cst_107 {dimension_numbers = #tpu.dot_dimension_numbers<[1], [0], [0], [1], [0, 0, 1, 1], [], []>} : vector<16x64xbf16>, vector<64x32xbf16>, vector<16x32xf32> -> vector<16x32xf32>
    %276 = vector.extract_strided_slice %169 {offsets = [6, 0], sizes = [1, 32], strides = [1, 1]} : vector<9x32xf32> to vector<1x32xf32>
    %277 = vector.broadcast %276 : vector<1x32xf32> to vector<16x32xf32>
    %278 = arith.addf %275, %277 : vector<16x32xf32>
    %279 = arith.addf %278, %252 : vector<16x32xf32>
    %280 = vector.extract_strided_slice %169 {offsets = [7, 0], sizes = [1, 32], strides = [1, 1]} : vector<9x32xf32> to vector<1x32xf32>
    %281 = vector.extract_strided_slice %169 {offsets = [8, 0], sizes = [1, 32], strides = [1, 1]} : vector<9x32xf32> to vector<1x32xf32>
    %cst_108 = arith.constant dense<0.000000e+00> : vector<16xf32>
    %282 = vector.multi_reduction <add>, %279, %cst_108 [1] : vector<16x32xf32> to vector<16xf32>
    %283 = vector.shape_cast %282 : vector<16xf32> to vector<16x1xf32>
    %cst_109 = arith.constant 3.200000e+01 : f32
    %284 = vector.broadcast %cst_109 : f32 to vector<16x1xf32>
    %285 = arith.divf %283, %284 : vector<16x1xf32>
    %286 = vector.broadcast %285 : vector<16x1xf32> to vector<16x32xf32>
    %287 = arith.subf %279, %286 : vector<16x32xf32>
    %288 = arith.mulf %287, %287 : vector<16x32xf32>
    %cst_110 = arith.constant dense<0.000000e+00> : vector<16xf32>
    %289 = vector.multi_reduction <add>, %288, %cst_110 [1] : vector<16x32xf32> to vector<16xf32>
    %290 = vector.shape_cast %289 : vector<16xf32> to vector<16x1xf32>
    %cst_111 = arith.constant 3.200000e+01 : f32
    %291 = vector.broadcast %cst_111 : f32 to vector<16x1xf32>
    %292 = arith.divf %290, %291 : vector<16x1xf32>
    %293 = vector.broadcast %285 : vector<16x1xf32> to vector<16x32xf32>
    %294 = arith.subf %279, %293 : vector<16x32xf32>
    %cst_112 = arith.constant 9.99999996E-13 : f32
    %295 = vector.broadcast %cst_112 : f32 to vector<16x1xf32>
    %296 = arith.addf %292, %295 : vector<16x1xf32>
    %297 = math.rsqrt %296 : vector<16x1xf32>
    %298 = vector.broadcast %297 : vector<16x1xf32> to vector<16x32xf32>
    %299 = arith.mulf %294, %298 : vector<16x32xf32>
    %300 = vector.broadcast %280 : vector<1x32xf32> to vector<16x32xf32>
    %301 = arith.mulf %299, %300 : vector<16x32xf32>
    %302 = vector.broadcast %281 : vector<1x32xf32> to vector<16x32xf32>
    %303 = arith.addf %301, %302 : vector<16x32xf32>
    %304 = vector.shape_cast %303 : vector<16x32xf32> to vector<2x8x32xf32>
    %305 = vector.extract_strided_slice %304 {offsets = [0, 7, 0], sizes = [2, 1, 32], strides = [1, 1, 1]} : vector<2x8x32xf32> to vector<2x1x32xf32>
    %306 = vector.shape_cast %305 : vector<2x1x32xf32> to vector<2x32xf32>
    %c0_113 = arith.constant 0 : index
    %c0_114 = arith.constant 0 : index
    %307 = vector.load %arg8[%c0_113, %c0_114] : memref<2x32xf32, #tpu.memory_space<vmem>>, vector<2x32xf32>
    tpu.vector_store %arg8[%c0_113, %c0_114], %306 {strides = array<i32>} : memref<2x32xf32, #tpu.memory_space<vmem>>, vector<2x32xf32>,
    return
  }
}

</mosaic_0001>

<bundles_post_ra>
// kernel: bigbird_classifier_forward.1
= control target key start
LH: loop header
LB: loop body
LE: loop exit
PB: predicated region body
PF: predicated region fallthrough
CT: control target
= control target key end

     0   :  { %vm33_vm0 = vcmask 261120   ;;  %v5953_v15 = vmov 0.0   ;;  %vm5954_vm1 = vmmov 0   ;;  %v61_v23 = vlaneseq  ;;  %s5955_s23 = smov 112   ;;  %s5956_s24 = smov 120   ;;  %s7066_s0 = inlined_call_operand.vmem [shape: f32[2,8,32], index: 0, kind: input, shape index: {}]   ;;  %s7067_s3 = inlined_call_operand.vmem [shape: bf16[2,4,32,32], index: 3, kind: input, shape index: {}]   ;;  %s7068_s2 = inlined_call_operand.vmem [shape: f32[2,32], index: 2, kind: input, shape index: {}]   ;;  %s7069_s6 = inlined_call_operand.vmem [shape: f32[2,9,32], index: 6, kind: input, shape index: {}]   ;;  %s7070_s1 = inlined_call_operand.vmem [shape: f32[2,8], index: 1, kind: input, shape index: {}]   ;;  %s7071_s4 = inlined_call_operand.vmem [shape: bf16[2,32,64], index: 4, kind: input, shape index: {}]   ;;  %s7072_s5 = inlined_call_operand.vmem [shape: bf16[2,64,32], index: 5, kind: input, shape index: {}]   ;;  %s7073_s7 = inlined_call_operand.vmem [shape: f32[2,1,64], index: 7, kind: input, shape index: {}]   ;;  %s7074_s8 = inlined_call_operand.vmem [shape: f32[2,32], index: 8, kind: output, shape index: {}]  }
   0x1   :  { %v31_v0 = vld [vmem:[%s7066_s0] sm:$0xff]  ;;  %v32_v1 = vld [vmem:[%s7066_s0 + $0x8] sm:$0xff]  ;;  %5494 = vmatprep.subr.bf16.mxu1 %v5953_v15  ;;  %5510 = vmatprep.subr.bf16.mxu0 %v5953_v15  ;;  %v5835_v40 = vld [vmem:[%s7067_s3 + $0x10] sm:$0xff]   ;;  %s5957_s25 = smov 104   ;;  %v5958_v62 = vmov 1983009808  }
   0x2   :  { %v34_v2 = vsel %vm33_vm0, %v31_v0, 0.0  ;;  %v37_v3 = vsel %vm33_vm0, %v32_v1, 0.0  ;;  %v5831_v14 = vld [vmem:[%s7067_s3] sm:$0xff]   ;;  %v5833_v17 = vld [vmem:[%s7067_s3 + $0x8] sm:$0xff]   ;;  %5498 = vmatprep.mubr.msk.bf16.mxu1 %vm5954_vm1, %v5953_v15  ;;  %5514 = vmatprep.mubr.msk.bf16.mxu0 %vm5954_vm1, %v5953_v15  ;;  %v6041_v26 = vshrl.u32 %v61_v23, 7  ;;  %v5836_v42 = vld [vmem:[%s7067_s3 + $0x18] sm:$0xff]   ;;  %v322_v63 = vunpack.c.l.s4 %v5958_v62 }
   0x3   :  { %35 = vadd.xlane.f32.xlu0 %v34_v2  ;;  %v5832_v16 = vld [vmem:[%s7067_s3 + $0x20] sm:$0xff]   ;;  %5495 = vmatpush3.bf16.msra.mxu1 %v5831_v14  ;;  %v5834_v18 = vld [vmem:[%s7067_s3 + $0x28] sm:$0xff]   ;;  %vm1199_vm2 = vcmask 64512   ;;  %vm1683_vm3 = vcmask 1043456   ;;  %s5961_s0 = smov 16   ;;  %s5962_s9 = smov 8  }
   0x4   :  { %5511 = vmatpush3.bf16.msra.mxu0 %v5832_v16  ;;  %5496 = vmatprep.subr.bf16.mxu1 %v5953_v15  ;;  %v6044_v27 = vsub.s32 0, %v6041_v26  ;;  %v30_v28 = vld [vmem:[%s7068_s2] sm:$0x3]  ;;  %v6051_v32 = vsub.s32 1, %v6041_v26  ;;  %v323_v2 = vunpack.c.0.s8 %v322_v63  ;;  %s5963_s10 = smov 24   ;;  %vm2347_vm4 = vcmask 130048  }
   0x5   :  { %5512 = vmatprep.subr.bf16.mxu0 %v5953_v15  ;;  %v6084_v51 = vld [vmem:[%s7069_s6] sm:$0xff]  ;;  %vm2350_vm5 = vcmask 195584   ;;  %vm2581_vm6 = vcmask 523264   ;;  %vm5230_vm7 = vcmask 261127   ;;  %vm5232_vm8 = vcmask 253952  }
   0x6   :  { %v64_v31 = vrot.slane %v30_v28, %v6044_v27  ;;  %v70_v36 = vrot.slane %v30_v28, %v6051_v32  ;;  %v183_v52 = vrot.slane %v6084_v51, %v6051_v32  ;;  %v118_v54 = vrot.slane %v6084_v51, %v6044_v27 }
   0x7   :  { %38 = vadd.xlane.f32.xlu0 %v37_v3  ;;  %5497 = vmatpush3.bf16.msra.mxu1 %v5833_v17 }
   0x8   :  { %5513 = vmatpush3.bf16.msra.mxu0 %v5834_v18  ;;  %5502 = vmatprep.subr.bf16.mxu1 %v5953_v15 }
   0x9   :  { %5524 = vmatprep.subr.bf16.mxu0 %v5953_v15 }
  0x90   :  { %v36_v4 = vpop.xlane.xlu0 %35 }
  0x91   :  { %v41_v5 = vmul.f32 0.03125, %v36_v4 }
  0x93   :  { %v43_v6 = vsub.f32 %v31_v0, %v41_v5  ;;  %v5959_v0 = vmov 1934713408  }
  0x94   :  { %v39_v7 = vpop.xlane.xlu0 %38 }
  0x95   :  { %v42_v8 = vmul.f32 0.03125, %v39_v7  ;;  %v45_v9 = vmul.f32 %v43_v6, %v43_v6 }
  0x97   :  { %v44_v10 = vsub.f32 %v32_v1, %v42_v8  ;;  %v47_v11 = vsel %vm33_vm0, %v45_v9, 0.0  ;;  %v354_v1 = vunpack.c.l.s4 %v5959_v0 }
  0x98   :  { %48 = vadd.xlane.f32.xlu1 %v47_v11 }
  0x99   :  { %v46_v12 = vmul.f32 %v44_v10, %v44_v10  ;;  %v355_v5 = vunpack.c.0.s8 %v354_v1 }
  0x9b   :  { %v50_v13 = vsel %vm33_vm0, %v46_v12, 0.0 }
  0x9c   :  { %51 = vadd.xlane.f32.xlu1 %v50_v13  ;;  %v6116_v13 = vsub.s32 %v355_v5, %v6041_v26 }
 0x125   :  { %v49_v19 = vpop.xlane.xlu1 %48 }
 0x126   :  { %v53_v20 = vmul.f32 0.03125, %v49_v19 }
 0x128   :  { %v55_v21 = vadd.f32 1e-12, %v53_v20 }
 0x129   :  { %v52_v22 = vpop.xlane.xlu1 %51 }
 0x12a   :  { %5859 = vrsqrt.f32 %v55_v21  ;;  %v54_v24 = vmul.f32 0.03125, %v52_v22 }
 0x12c   :  { %v56_v25 = vadd.f32 1e-12, %v54_v24 }
 0x12e   :  { %5861 = vrsqrt.f32 %v56_v25 }
 0x134   :  { %v5860_v29 = vpop.eup %5859 }
 0x135   :  { %v59_v30 = vmul.f32 %v5860_v29, %v43_v6  ;;  %v6113_v6 = vsub.s32 %v323_v2, %v6041_v26 }
 0x137   :  { %v65_v35 = vmul.f32 %v64_v31, %v59_v30 }
 0x138   :  { %v5862_v33 = vpop.eup %5861 }
 0x139   :  { %v60_v34 = vmul.f32 %v5862_v33, %v44_v10  ;;  %v6054_v38 = vadd.f32 %v70_v36, %v65_v35 }
 0x13b   :  { %v66_v37 = vmul.f32 %v64_v31, %v60_v34 }
 0x13d   :  { %v6056_v39 = vadd.f32 %v70_v36, %v66_v37 }
 0x13f   :  { %v110_v41 = vpack.c.bf16 %v6056_v39, %v6054_v38 }
 0x141   :  { %5499 = vmatmul.mubr.msk.bf16.vlgmr.msra.gmra.mrb[0].mxu1 %vm33_vm0, %v110_v41  ;;  %5515 = vmatmul.mubr.msk.bf16.vlgmr.msra.gmra.mrb[0].mxu0 %vm33_vm0, %v110_v41 }
 0x142   :  { %5503 = vmatpush3.bf16.msra.mxu1 %v5835_v40  ;;  %5506 = vmatprep.mubr.msk.bf16.mxu1 %vm5954_vm1, %v5953_v15 }
 0x143   :  { %5504 = vmatprep.subr.bf16.mxu1 %v5953_v15  ;;  %5526 = vmatprep.mubr.msk.bf16.mxu0 %vm5954_vm1, %v5953_v15 }
 0x146   :  { %5505 = vmatpush3.bf16.msra.mxu1 %v5836_v42 }
 0x147   :  { %5518 = vmatprep.subr.bf16.mxu1 %v5953_v15 }
 0x149   :  { %5507 = vmatmul.mubr.msk.bf16.vlgmr.msra.gmra.mrb[4].mxu1 %vm33_vm0, %v110_v41 }
 0x14a   :  { %5520 = vmatprep.mubr.msk.bf16.mxu1 %vm5954_vm1, %v5953_v15 }
 0x214   :  { %v168_v43 = vpop.f32.mrb[0].mxu1  ;;  %v6077_v44 = vpop.f32.mrb[0].mxu0 }
 0x215   :  { %v5500_v45 = vpop.f32.mrb[1].mxu1  ;;  %v5516_v46 = vpop.f32.mrb[1].mxu0  ;;  %v169_v59 = vadd.f32 %v168_v43, %v118_v54 }
 0x216   :  { %v171_v47 = vpop.f32.mrb[2].mxu1  ;;  %v6079_v48 = vpop.f32.mrb[2].mxu0 }
 0x217   :  { %v5501_v49 = vpop.f32.mrb[3].mxu1  ;;  %v5517_v50 = vpop.f32.mrb[3].mxu0  ;;  %v6102_v61 = vadd.f32 %v171_v47, %v118_v54 }
 0x21c   :  { %v230_v53 = vpop.f32.mrb[4].mxu1 }
 0x21d   :  { %v231_v55 = vadd.f32 %v230_v53, %v183_v52  ;;  %v5508_v56 = vpop.f32.mrb[5].mxu1 }
 0x21e   :  { %v233_v57 = vpop.f32.mrb[6].mxu1 }
 0x21f   :  { %607 = vrot.lane.b32.xlu1 %v231_v55, %s5955_s23  ;;  %601 = vrot.lane.b32.xlu0 %v231_v55, %s5956_s24  ;;  %v5509_v58 = vpop.f32.mrb[7].mxu1  ;;  %v6094_v60 = vadd.f32 %v233_v57, %v183_v52 }
 0x223   :  { %613 = vrot.lane.b32.xlu1 %v231_v55, %s5957_s25  ;;  %307 = vrot.lane.b32.xlu0 %v169_v59, %s5955_s23 }
 0x227   :  { %301 = vrot.lane.b32.xlu1 %v169_v59, %s5956_s24  ;;  %603 = vrot.lane.b32.xlu0 %v6094_v60, %s5956_s24 }
 0x22b   :  { %313 = vrot.lane.b32.xlu1 %v169_v59, %s5957_s25  ;;  %615 = vrot.lane.b32.xlu0 %v6094_v60, %s5957_s25 }
 0x22f   :  { %609 = vrot.lane.b32.xlu1 %v6094_v60, %s5955_s23  ;;  %309 = vrot.lane.b32.xlu0 %v6102_v61, %s5955_s23 }
 0x233   :  { %303 = vrot.lane.b32.xlu1 %v6102_v61, %s5956_s24 }
 0x237   :  { %315 = vrot.lane.b32.xlu1 %v6102_v61, %s5957_s25 }
 0x291   :  { %v608_v3 = vpop.permute.xlu1 %607  ;;  %v602_v4 = vpop.permute.xlu0 %601 }
 0x292   :  { %v619_v7 = vcombine.low %v231_v55, %v608_v3  ;;  %v620_v8 = vcombine.high %v231_v55, %v608_v3 }
 0x294   :  { %v627_v14 = vrot.slane %v619_v7, %v6113_v6  ;;  %v634_v16 = vrot.slane %v620_v8, %v6113_v6 }
 0x295   :  { %v614_v9 = vpop.permute.xlu1 %613  ;;  %v308_v10 = vpop.permute.xlu0 %307 }
 0x296   :  { %v635_v11 = vcombine.low %v602_v4, %v614_v9  ;;  %v636_v12 = vcombine.high %v602_v4, %v614_v9  ;;  %v319_v29 = vcombine.low %v169_v59, %v308_v10  ;;  %v320_v30 = vcombine.high %v169_v59, %v308_v10 }
 0x298   :  { %v643_v17 = vrot.slane %v635_v11, %v6113_v6  ;;  %v650_v18 = vrot.slane %v636_v12, %v6113_v6  ;;  %v327_v42 = vrot.slane %v319_v29, %v6113_v6  ;;  %v334_v43 = vrot.slane %v320_v30, %v6113_v6 }
 0x299   :  { %v302_v19 = vpop.permute.xlu1 %301  ;;  %v604_v20 = vpop.permute.xlu0 %603 }
 0x29a   :  { %v651_v21 = vcombine.low %v627_v14, %v643_v17  ;;  %v652_v22 = vcombine.high %v627_v14, %v643_v17  ;;  %v667_v23 = vcombine.low %v634_v16, %v650_v18  ;;  %v668_v24 = vcombine.high %v634_v16, %v650_v18 }
 0x29c   :  { %v659_v25 = vrot.slane %v651_v21, %v6116_v13  ;;  %v666_v28 = vrot.slane %v652_v22, %v6116_v13  ;;  %v675_v31 = vrot.slane %v667_v23, %v6116_v13  ;;  %v682_v33 = vrot.slane %v668_v24, %v6116_v13 }
 0x29d   :  { %v314_v34 = vpop.permute.xlu1 %313  ;;  %v616_v35 = vpop.permute.xlu0 %615 }
 0x29e   :  { %v755_v36 = vcombine.low %v659_v25, %v666_v28  ;;  %v5260_v37 = vcombine.high %v659_v25, %v666_v28  ;;  %v335_v40 = vcombine.low %v302_v19, %v314_v34  ;;  %v336_v41 = vcombine.high %v302_v19, %v314_v34 }
 0x29f   :  { %v703_v45 = vcombine.low %v604_v20, %v616_v35  ;;  %v704_v46 = vcombine.high %v604_v20, %v616_v35  ;;  %v771_v47 = vcombine.low %v675_v31, %v682_v33  ;;  %v5261_v49 = vcombine.high %v675_v31, %v682_v33 }
 0x2a0   :  { %v343_v50 = vrot.slane %v335_v40, %v6113_v6  ;;  %v350_v52 = vrot.slane %v336_v41, %v6113_v6  ;;  %v6131_v54 = vrot.slane %v755_v36, %v6113_v6  ;;  %v6134_v55 = vrot.slane %v5260_v37, %v6113_v6 }
 0x2a1   :  { %v610_v53 = vpop.permute.xlu1 %609  ;;  %v310_v0 = vpop.permute.xlu0 %309  ;;  %v711_v1 = vrot.slane %v703_v45, %v6113_v6  ;;  %v718_v2 = vrot.slane %v704_v46, %v6113_v6  ;;  %v778_v20 = vrot.slane %v771_v47, %v6113_v6  ;;  %v786_v21 = vrot.slane %v5261_v49, %v6113_v6 }
 0x2a2   :  { %v687_v56 = vcombine.low %v6094_v60, %v610_v53  ;;  %v688_v57 = vcombine.high %v6094_v60, %v610_v53  ;;  %v351_v58 = vcombine.low %v327_v42, %v343_v50  ;;  %v352_v59 = vcombine.high %v327_v42, %v343_v50 }
 0x2a3   :  { %v367_v62 = vcombine.low %v334_v43, %v350_v52  ;;  %v368_v63 = vcombine.high %v334_v43, %v350_v52  ;;  %v387_v12 = vcombine.low %v6102_v61, %v310_v0  ;;  %v388_v14 = vcombine.high %v6102_v61, %v310_v0 }
 0x2a4   :  { %v695_v3 = vrot.slane %v687_v56, %v6113_v6  ;;  %v702_v4 = vrot.slane %v688_v57, %v6113_v6  ;;  %v359_v5 = vrot.slane %v351_v58, %v6116_v13  ;;  %v366_v7 = vrot.slane %v352_v59, %v6116_v13 }
 0x2a5   :  { %v375_v8 = vrot.slane %v367_v62, %v6116_v13  ;;  %v382_v60 = vrot.slane %v368_v63, %v6116_v13  ;;  %v304_v9 = vpop.permute.xlu1 %303  ;;  %v395_v33 = vrot.slane %v387_v12, %v6113_v6  ;;  %v402_v34 = vrot.slane %v388_v14, %v6113_v6 }
 0x2a6   :  { %v719_v10 = vcombine.low %v695_v3, %v711_v1  ;;  %v720_v11 = vcombine.high %v695_v3, %v711_v1  ;;  %v455_v16 = vcombine.low %v359_v5, %v366_v7  ;;  %v5256_v17 = vcombine.high %v359_v5, %v366_v7 }
 0x2a7   :  { %v471_v18 = vcombine.low %v375_v8, %v382_v60  ;;  %v5257_v19 = vcombine.high %v375_v8, %v382_v60  ;;  %v735_v22 = vcombine.low %v702_v4, %v718_v2  ;;  %v736_v23 = vcombine.high %v702_v4, %v718_v2 }
 0x2a8   :  { %v6151_v24 = vrot.slane %v455_v16, %v6113_v6  ;;  %v6154_v25 = vrot.slane %v5256_v17, %v6113_v6  ;;  %v727_v29 = vrot.slane %v719_v10, %v6116_v13  ;;  %v734_v30 = vrot.slane %v720_v11, %v6116_v13 }
 0x2a9   :  { %v6157_v28 = vrot.slane %v471_v18, %v6113_v6  ;;  %v6160_v61 = vrot.slane %v5257_v19, %v6113_v6  ;;  %v316_v31 = vpop.permute.xlu1 %315  ;;  %v743_v37 = vrot.slane %v735_v22, %v6116_v13  ;;  %v750_v40 = vrot.slane %v736_v23, %v6116_v13 }
 0x2aa   :  { %v487_v35 = vcombine.low %v6151_v24, %v6154_v25  ;;  %v403_v41 = vcombine.low %v304_v9, %v316_v31  ;;  %v404_v42 = vcombine.high %v304_v9, %v316_v31  ;;  %v787_v43 = vcombine.low %v6131_v54, %v6134_v55 }
 0x2ab   :  { %v503_v36 = vcombine.low %v6157_v28, %v6160_v61  ;;  %v803_v45 = vcombine.low %v778_v20, %v786_v21  ;;  %v823_v46 = vcombine.low %v727_v29, %v734_v30  ;;  %v5262_v47 = vcombine.high %v727_v29, %v734_v30 }
 0x2ac   :  { %v788_v49 = vcombine.high %v6131_v54, %v6134_v55  ;;  %v804_v50 = vcombine.high %v778_v20, %v786_v21  ;;  %v411_v52 = vrot.slane %v403_v41, %v6113_v6  ;;  %v418_v53 = vrot.slane %v404_v42, %v6113_v6 }
 0x2ad   :  { %v795_v56 = vrot.slane %v787_v43, %v6116_v13  ;;  %v811_v57 = vrot.slane %v803_v45, %v6116_v13  ;;  %v839_v58 = vcombine.low %v743_v37, %v750_v40  ;;  %v5263_v59 = vcombine.high %v743_v37, %v750_v40 }
 0x2ae   :  { %v495_v62 = vrot.slane %v487_v35, %v6116_v13  ;;  %v511_v63 = vrot.slane %v503_v36, %v6116_v13  ;;  %v419_v0 = vcombine.low %v395_v33, %v411_v52  ;;  %v420_v1 = vcombine.high %v395_v33, %v411_v52 }
 0x2af   :  { %v435_v2 = vcombine.low %v402_v34, %v418_v53  ;;  %v436_v3 = vcombine.high %v402_v34, %v418_v53  ;;  %v819_v54 = vcombine.low %v795_v56, %v811_v57  ;;  %v820_v55 = vcombine.high %v795_v56, %v811_v57 }
 0x2b0   :  { %v802_v4 = vrot.slane %v788_v49, %v6116_v13  ;;  %v818_v5 = vrot.slane %v804_v50, %v6116_v13  ;;  %v427_v7 = vrot.slane %v419_v0, %v6116_v13  ;;  %v434_v8 = vrot.slane %v420_v1, %v6116_v13 }
 0x2b1   :  { %v443_v60 = vrot.slane %v435_v2, %v6116_v13  ;;  %v450_v9 = vrot.slane %v436_v3, %v6116_v13  ;;  %v830_v10 = vrot.slane %v823_v46, %v6113_v6  ;;  %v838_v11 = vrot.slane %v5262_v47, %v6113_v6 }
 0x2b2   :  { %v891_v12 = vpack.c.bf16 %v819_v54, %v819_v54  ;;  %v892_v14 = vpack.c.bf16 %v820_v55, %v820_v55  ;;  %v846_v16 = vrot.slane %v839_v58, %v6113_v6  ;;  %v854_v17 = vrot.slane %v5263_v59, %v6113_v6 }
 0x2b3   :  { %v519_v18 = vcombine.low %v495_v62, %v511_v63  ;;  %v520_v19 = vcombine.high %v495_v62, %v511_v63  ;;  %v821_v22 = vcombine.low %v802_v4, %v818_v5  ;;  %v822_v23 = vcombine.high %v802_v4, %v818_v5 }
 0x2b4   :  { %v1204_v20 = vsel %vm1199_vm2, %v891_v12, 0  ;;  %v1250_v21 = vsel %vm1199_vm2, %v892_v14, 0  ;;  %v523_v29 = vcombine.low %v427_v7, %v434_v8  ;;  %v5258_v30 = vcombine.high %v427_v7, %v434_v8 }
 0x2b5   :  { %v539_v31 = vcombine.low %v443_v60, %v450_v9  ;;  %v5259_v33 = vcombine.high %v443_v60, %v450_v9  ;;  %5519 = vmatpush3.bf16.xpose.msra.mxu1 %v1204_v20  ;;  %v488_v34 = vcombine.high %v6151_v24, %v6154_v25  ;;  %v504_v35 = vcombine.high %v6157_v28, %v6160_v61 }
 0x2b6   :  { %5525 = vmatpush3.bf16.xpose.msra.mxu0 %v1250_v21  ;;  %5530 = vmatprep.subr.bf16.mxu1 %v5953_v15  ;;  %v591_v36 = vpack.c.bf16 %v519_v18, %v519_v18  ;;  %v592_v37 = vpack.c.bf16 %v520_v19, %v520_v19  ;;  %v893_v40 = vpack.c.bf16 %v821_v22, %v821_v22 }
 0x2b7   :  { %5536 = vmatprep.subr.bf16.mxu0 %v5953_v15  ;;  %v894_v41 = vpack.c.bf16 %v822_v23, %v822_v23  ;;  %v855_v42 = vcombine.low %v830_v10, %v838_v11  ;;  %v871_v43 = vcombine.low %v846_v16, %v854_v17  ;;  %v530_v45 = vrot.slane %v523_v29, %v6113_v6 }
 0x2b8   :  { %v538_v46 = vrot.slane %v5258_v30, %v6113_v6  ;;  %v546_v24 = vrot.slane %v539_v31, %v6113_v6  ;;  %v554_v25 = vrot.slane %v5259_v33, %v6113_v6  ;;  %v502_v28 = vrot.slane %v488_v34, %v6116_v13 }
 0x2b9   :  { %v518_v61 = vrot.slane %v504_v35, %v6116_v13  ;;  %v863_v47 = vrot.slane %v855_v42, %v6116_v13  ;;  %v879_v49 = vrot.slane %v871_v43, %v6116_v13  ;;  %v1296_v50 = vsel %vm1199_vm2, %v893_v40, 0 }
 0x2ba   :  { %v856_v53 = vcombine.high %v830_v10, %v838_v11  ;;  %v872_v56 = vcombine.high %v846_v16, %v854_v17  ;;  %v1342_v57 = vsel %vm1199_vm2, %v894_v41, 0  ;;  %v555_v59 = vcombine.low %v530_v45, %v538_v46  ;;  %v5238_v41 = vld.sshfl [vmem:[%s7070_s1] sm:$0x11 pattern:$0x75316420] }
 0x2bb   :  { %v887_v52 = vcombine.low %v863_v47, %v879_v49  ;;  %v888_v58 = vcombine.high %v863_v47, %v879_v49  ;;  %v571_v62 = vcombine.low %v546_v24, %v554_v25  ;;  %v521_v63 = vcombine.low %v502_v28, %v518_v61 }
 0x2bc   :  { %5521 = vmatmul.mubr.msk.bf16.vlgmr.msra.gmra.mrb[8].mxu1 %vm1199_vm2, %v591_v36  ;;  %v522_v0 = vcombine.high %v502_v28, %v518_v61  ;;  %v870_v2 = vrot.slane %v856_v53, %v6116_v13  ;;  %v886_v3 = vrot.slane %v872_v56, %v6116_v13  ;;  %v563_v4 = vrot.slane %v555_v59, %v6116_v13 }
 0x2bd   :  { %5527 = vmatmul.mubr.msk.bf16.vlgmr.msra.gmra.mrb[4].mxu0 %vm1199_vm2, %v592_v37  ;;  %5531 = vmatpush3.bf16.xpose.msra.mxu1 %v1296_v50  ;;  %v895_v1 = vpack.c.bf16 %v887_v52, %v887_v52  ;;  %v896_v54 = vpack.c.bf16 %v888_v58, %v888_v58  ;;  %v593_v55 = vpack.c.bf16 %v521_v63, %v521_v63  ;;  %v5960_v35 = vmov 1966171168  }
 0x2be   :  { %5537 = vmatpush3.bf16.xpose.msra.mxu0 %v1342_v57  ;;  %5532 = vmatprep.mubr.msk.bf16.mxu1 %vm5954_vm1, %v5953_v15  ;;  %v579_v5 = vrot.slane %v571_v62, %v6116_v13  ;;  %v594_v7 = vpack.c.bf16 %v522_v0, %v522_v0  ;;  %v889_v60 = vcombine.low %v870_v2, %v886_v3  ;;  %v84_v36 = vunpack.c.l.s4 %v5960_v35 }
 0x2bf   :  { %5538 = vmatprep.mubr.msk.bf16.mxu0 %vm5954_vm1, %v5953_v15  ;;  %5542 = vmatprep.subr.bf16.mxu1 %v5953_v15  ;;  %v1388_v8 = vsel %vm1199_vm2, %v895_v1, 0  ;;  %v1434_v9 = vsel %vm1199_vm2, %v896_v54, 0  ;;  %v890_v10 = vcombine.high %v870_v2, %v886_v3  ;;  %v556_v11 = vcombine.high %v530_v45, %v538_v46 }
 0x2c0   :  { %5548 = vmatprep.subr.bf16.mxu0 %v5953_v15  ;;  %v572_v12 = vcombine.high %v546_v24, %v554_v25  ;;  %v587_v14 = vcombine.low %v563_v4, %v579_v5  ;;  %v588_v16 = vcombine.high %v563_v4, %v579_v5  ;;  %v897_v17 = vpack.c.bf16 %v889_v60, %v889_v60 }
 0x2c1   :  { %v898_v18 = vpack.c.bf16 %v890_v10, %v890_v10  ;;  %v570_v20 = vrot.slane %v556_v11, %v6116_v13  ;;  %v85_v37 = vunpack.c.0.s8 %v84_v36  ;;  %v82_v59 = vcombine.high %v5238_v41, %v5238_v41 }
 0x2c2   :  { %v595_v19 = vpack.c.bf16 %v587_v14, %v587_v14  ;;  %v586_v21 = vrot.slane %v572_v12, %v6116_v13  ;;  %v596_v22 = vpack.c.bf16 %v588_v16, %v588_v16  ;;  %v1480_v23 = vsel %vm1199_vm2, %v897_v17, 0 }
 0x2c3   :  { %v1526_v29 = vsel %vm1199_vm2, %v898_v18, 0  ;;  %v88_v40 = vsub.s32 %v85_v37, %v6041_v26 }
 0x2c4   :  { %5533 = vmatmul.mubr.msk.bf16.vlgmr.msra.gmra.mrb[12].mxu1 %vm1199_vm2, %v593_v55  ;;  %v589_v30 = vcombine.low %v570_v20, %v586_v21  ;;  %v590_v31 = vcombine.high %v570_v20, %v586_v21 }
 0x2c5   :  { %5539 = vmatmul.mubr.msk.bf16.vlgmr.msra.gmra.mrb[8].mxu0 %vm1199_vm2, %v594_v7  ;;  %5543 = vmatpush3.bf16.xpose.msra.mxu1 %v1388_v8  ;;  %v89_v42 = vrot.slane %v5238_v41, %v88_v40  ;;  %v96_v7 = vrot.slane %v82_v59, %v88_v40 }
 0x2c6   :  { %5549 = vmatpush3.bf16.xpose.msra.mxu0 %v1434_v9  ;;  %5544 = vmatprep.mubr.msk.bf16.mxu1 %vm5954_vm1, %v5953_v15  ;;  %v597_v33 = vpack.c.bf16 %v589_v30, %v589_v30  ;;  %v598_v34 = vpack.c.bf16 %v590_v31, %v590_v31 }
 0x2c7   :  { %5550 = vmatprep.mubr.msk.bf16.mxu0 %vm5954_vm1, %v5953_v15  ;;  %5554 = vmatprep.subr.bf16.mxu1 %v5953_v15  ;;  %v6255_v43 = vrot.slane %v89_v42, %v6044_v27  ;;  %v6271_v10 = vrot.slane %v96_v7, %v6044_v27 }
 0x2c8   :  { %5560 = vmatprep.subr.bf16.mxu0 %v5953_v15 }
 0x2cc   :  { %5545 = vmatmul.mubr.msk.bf16.vlgmr.msra.gmra.mrb[16].mxu1 %vm1199_vm2, %v595_v19 }
 0x2cd   :  { %5551 = vmatmul.mubr.msk.bf16.vlgmr.msra.gmra.mrb[12].mxu0 %vm1199_vm2, %v596_v22  ;;  %5555 = vmatpush3.bf16.xpose.msra.mxu1 %v1480_v23 }
 0x2ce   :  { %5561 = vmatpush3.bf16.xpose.msra.mxu0 %v1526_v29  ;;  %5556 = vmatprep.mubr.msk.bf16.mxu1 %vm5954_vm1, %v5953_v15 }
 0x2cf   :  { %5562 = vmatprep.mubr.msk.bf16.mxu0 %vm5954_vm1, %v5953_v15  ;;  %5566 = vmatprep.subr.bf16.mxu1 %v5953_v15 }
 0x2d0   :  { %5572 = vmatprep.subr.bf16.mxu0 %v5953_v15 }
 0x2d4   :  { %5557 = vmatmul.mubr.msk.bf16.vlgmr.msra.gmra.mrb[20].mxu1 %vm1199_vm2, %v597_v33 }
 0x2d5   :  { %5563 = vmatmul.mubr.msk.bf16.vlgmr.msra.gmra.mrb[16].mxu0 %vm1199_vm2, %v598_v34  ;;  %5568 = vmatprep.mubr.msk.bf16.mxu1 %vm5954_vm1, %v5953_v15 }
 0x2d6   :  { %5574 = vmatprep.mubr.msk.bf16.mxu0 %vm5954_vm1, %v5953_v15 }
 0x38f   :  { %v1240_v45 = vpop.f32.mrb[8].mxu1 }
 0x390   :  { %v1568_v46 = vmul.f32 0.35355338, %v1240_v45  ;;  %v1286_v24 = vpop.f32.mrb[4].mxu0  ;;  %v5522_v25 = vpop.f32.mrb[9].mxu1 }
 0x391   :  { %v1569_v28 = vmul.f32 0.35355338, %v1286_v24  ;;  %v5528_v61 = vpop.f32.mrb[5].mxu0  ;;  %v1243_v47 = vpop.f32.mrb[10].mxu1 }
 0x392   :  { %v1289_v49 = vpop.f32.mrb[6].mxu0  ;;  %v5523_v50 = vpop.f32.mrb[11].mxu1  ;;  %v6258_v52 = vadd.f32 %v1568_v46, %v6255_v43 }
 0x393   :  { %v5529_v53 = vpop.f32.mrb[7].mxu0  ;;  %v6261_v56 = vadd.f32 %v1569_v28, %v6255_v43  ;;  %v244_v28 = vsub.s32 2, %v6041_v26 }
 0x394   :  { %v1584_v57 = vsel %vm1199_vm2, %v6258_v52, -inf }
 0x395   :  { %v1587_v58 = vsel %vm1199_vm2, %v6261_v56, -inf  ;;  %1585 = vmax.xlane.f32.xlu0 %v1584_v57  ;;  %v245_v61 = vrot.slane %v6084_v51, %v244_v28 }
 0x396   :  { %1588 = vmax.xlane.f32.xlu1 %v1587_v58 }
 0x397   :  { %v1332_v62 = vpop.f32.mrb[12].mxu1  ;;  %v293_v47 = vadd.f32 %v6077_v44, %v245_v61  ;;  %v6297_v57 = vadd.f32 %v6079_v48, %v245_v61 }
 0x398   :  { %v1570_v63 = vmul.f32 0.35355338, %v1332_v62  ;;  %v1378_v0 = vpop.f32.mrb[8].mxu0  ;;  %v5534_v1 = vpop.f32.mrb[13].mxu1 }
 0x399   :  { %v1571_v2 = vmul.f32 0.35355338, %v1378_v0  ;;  %v5540_v3 = vpop.f32.mrb[9].mxu0  ;;  %v1335_v54 = vpop.f32.mrb[14].mxu1 }
 0x39a   :  { %v1381_v55 = vpop.f32.mrb[10].mxu0  ;;  %v5535_v4 = vpop.f32.mrb[15].mxu1  ;;  %v1578_v5 = vadd.f32 %v1570_v63, %v6255_v43 }
 0x39b   :  { %v5541_v8 = vpop.f32.mrb[11].mxu0  ;;  %v1579_v9 = vadd.f32 %v1571_v2, %v6255_v43 }
 0x39c   :  { %v1590_v60 = vsel %vm1199_vm2, %v1578_v5, -inf }
 0x39d   :  { %1591 = vmax.xlane.f32.xlu0 %v1590_v60  ;;  %v1593_v17 = vsel %vm1199_vm2, %v1579_v9, -inf }
 0x39f   :  { %v1424_v11 = vpop.f32.mrb[16].mxu1 }
 0x3a0   :  { %v1572_v12 = vmul.f32 0.35355338, %v1424_v11  ;;  %v1470_v14 = vpop.f32.mrb[12].mxu0  ;;  %v5546_v16 = vpop.f32.mrb[17].mxu1 }
 0x3a1   :  { %v1573_v18 = vmul.f32 0.35355338, %v1470_v14  ;;  %v5552_v19 = vpop.f32.mrb[13].mxu0  ;;  %1594 = vmax.xlane.f32.xlu0 %v1593_v17  ;;  %v1427_v20 = vpop.f32.mrb[18].mxu1 }
 0x3a2   :  { %v1473_v21 = vpop.f32.mrb[14].mxu0  ;;  %v5547_v22 = vpop.f32.mrb[19].mxu1  ;;  %v1580_v23 = vadd.f32 %v1572_v12, %v6271_v10 }
 0x3a3   :  { %v5553_v29 = vpop.f32.mrb[15].mxu0  ;;  %v1581_v30 = vadd.f32 %v1573_v18, %v6271_v10 }
 0x3a4   :  { %v1596_v31 = vsel %vm1199_vm2, %v1580_v23, -inf }
 0x3a5   :  { %v1599_v33 = vsel %vm1199_vm2, %v1581_v30, -inf  ;;  %1597 = vmax.xlane.f32.xlu0 %v1596_v31 }
 0x3a6   :  { %1600 = vmax.xlane.f32.xlu1 %v1599_v33 }
 0x3a7   :  { %v1516_v34 = vpop.f32.mrb[20].mxu1 }
 0x3a8   :  { %v1574_v35 = vmul.f32 0.35355338, %v1516_v34  ;;  %v1562_v36 = vpop.f32.mrb[16].mxu0  ;;  %v5558_v37 = vpop.f32.mrb[21].mxu1 }
 0x3a9   :  { %v5564_v40 = vpop.f32.mrb[17].mxu0  ;;  %v1519_v41 = vpop.f32.mrb[22].mxu1  ;;  %v1575_v49 = vmul.f32 0.35355338, %v1562_v36 }
 0x3aa   :  { %v1565_v42 = vpop.f32.mrb[18].mxu0  ;;  %v5559_v45 = vpop.f32.mrb[23].mxu1  ;;  %v6279_v46 = vadd.f32 %v1574_v35, %v6271_v10 }
 0x3ab   :  { %v5565_v24 = vpop.f32.mrb[19].mxu0  ;;  %v6292_v50 = vadd.f32 %v1575_v49, %v6271_v10 }
 0x3ac   :  { %v1602_v25 = vsel %vm1199_vm2, %v6279_v46, -inf }
 0x3ad   :  { %1603 = vmax.xlane.f32.xlu0 %v1602_v25  ;;  %v1605_v53 = vsel %vm1199_vm2, %v6292_v50, -inf }
 0x3b7   :  { %907 = vrot.lane.b32.xlu1 %v293_v47, %s5955_s23 }
 0x3bb   :  { %913 = vrot.lane.b32.xlu1 %v293_v47, %s5957_s25 }
 0x3c3   :  { %901 = vrot.lane.b32.xlu0 %v293_v47, %s5956_s24 }
 0x3df   :  { %1606 = vmax.xlane.f32.xlu1 %v1605_v53 }
 0x3f0   :  { %903 = vrot.lane.b32.xlu1 %v6297_v57, %s5956_s24 }
 0x422   :  { %v1586_v44 = vpop.xlane.xlu0 %1585 }
 0x423   :  { %v1589_v51 = vpop.xlane.xlu1 %1588  ;;  %v1608_v58 = vsub.f32 %v6258_v52, %v1586_v44 }
 0x424   :  { %v1609_v59 = vsub.f32 %v6261_v56, %v1589_v51 }
 0x425   :  { %v1616_v62 = vmul.f32 1.442695, %v1608_v58 }
 0x426   :  { %v1618_v63 = vmul.f32 1.442695, %v1609_v59 }
 0x427   :  { %5863 = vpow2.f32 %v1616_v62 }
 0x428   :  { %5865 = vpow2.f32 %v1618_v63 }
 0x42a   :  { %v1592_v0 = vpop.xlane.xlu0 %1591 }
 0x42b   :  { %v1610_v1 = vsub.f32 %v1578_v5, %v1592_v0 }
 0x42d   :  { %v1620_v2 = vmul.f32 1.442695, %v1610_v1 }
 0x42e   :  { %v1595_v3 = vpop.xlane.xlu0 %1594 }
 0x42f   :  { %5867 = vpow2.f32 %v1620_v2  ;;  %v1611_v48 = vsub.f32 %v1579_v9, %v1595_v3 }
 0x431   :  { %v6303_v54 = vpop.eup %5863  ;;  %v1622_v55 = vmul.f32 1.442695, %v1611_v48 }
 0x432   :  { %v6305_v4 = vpop.eup %5865  ;;  %v1598_v7 = vpop.xlane.xlu0 %1597  ;;  %v1632_v52 = vsel %vm1199_vm2, %v6303_v54, 0.0 }
 0x433   :  { %5869 = vpow2.f32 %v1622_v55  ;;  %v1601_v56 = vpop.xlane.xlu1 %1600  ;;  %v1612_v8 = vsub.f32 %v1580_v23, %v1598_v7  ;;  %v1635_v60 = vsel %vm1199_vm2, %v6305_v4, 0.0  ;;  %1633 = vadd.xlane.f32.xlu0 %v1632_v52 }
 0x434   :  { %v1613_v5 = vsub.f32 %v1581_v30, %v1601_v56  ;;  %1636 = vadd.xlane.f32.xlu1 %v1635_v60 }
 0x435   :  { %v1624_v11 = vmul.f32 1.442695, %v1612_v8 }
 0x436   :  { %v1626_v9 = vmul.f32 1.442695, %v1613_v5 }
 0x437   :  { %5871 = vpow2.f32 %v1624_v11  ;;  %v908_v12 = vpop.permute.xlu1 %907 }
 0x438   :  { %5873 = vpow2.f32 %v1626_v9  ;;  %v919_v19 = vcombine.low %v293_v47, %v908_v12  ;;  %v920_v20 = vcombine.high %v293_v47, %v908_v12 }
 0x439   :  { %v6311_v14 = vpop.eup %5867 }
 0x43a   :  { %v1604_v16 = vpop.xlane.xlu0 %1603  ;;  %v1638_v17 = vsel %vm1199_vm2, %v6311_v14, 0.0  ;;  %v927_v33 = vrot.slane %v919_v19, %v6113_v6  ;;  %v934_v34 = vrot.slane %v920_v20, %v6113_v6 }
 0x43b   :  { %1639 = vadd.xlane.f32.xlu1 %v1638_v17  ;;  %v914_v21 = vpop.permute.xlu1 %913 }
 0x43d   :  { %v6315_v18 = vpop.eup %5869 }
 0x43e   :  { %v902_v22 = vpop.permute.xlu0 %901  ;;  %v1641_v23 = vsel %vm1199_vm2, %v6315_v18, 0.0 }
 0x43f   :  { %v935_v29 = vcombine.low %v902_v22, %v914_v21  ;;  %v936_v30 = vcombine.high %v902_v22, %v914_v21  ;;  %1642 = vadd.xlane.f32.xlu0 %v1641_v23  ;;  %v1614_v21 = vsub.f32 %v6279_v46, %v1604_v16 }
 0x441   :  { %v6319_v31 = vpop.eup %5871  ;;  %v943_v35 = vrot.slane %v935_v29, %v6113_v6  ;;  %v950_v36 = vrot.slane %v936_v30, %v6113_v6  ;;  %v1628_v22 = vmul.f32 1.442695, %v1614_v21 }
 0x442   :  { %v1644_v37 = vsel %vm1199_vm2, %v6319_v31, 0.0  ;;  %v6327_v40 = vpop.eup %5873 }
 0x443   :  { %v951_v41 = vcombine.low %v927_v33, %v943_v35  ;;  %v952_v42 = vcombine.high %v927_v33, %v943_v35  ;;  %v967_v45 = vcombine.low %v934_v34, %v950_v36  ;;  %v968_v24 = vcombine.high %v934_v34, %v950_v36  ;;  %1645 = vadd.xlane.f32.xlu0 %v1644_v37 }
 0x444   :  { %v1647_v53 = vsel %vm1199_vm2, %v6327_v40, 0.0  ;;  %5875 = vpow2.f32 %v1628_v22 }
 0x445   :  { %v959_v25 = vrot.slane %v951_v41, %v6116_v13  ;;  %v966_v61 = vrot.slane %v952_v42, %v6116_v13  ;;  %v975_v47 = vrot.slane %v967_v45, %v6116_v13  ;;  %v982_v49 = vrot.slane %v968_v24, %v6116_v13 }
 0x447   :  { %v1055_v44 = vcombine.low %v959_v25, %v966_v61  ;;  %v5264_v51 = vcombine.high %v959_v25, %v966_v61  ;;  %v1071_v58 = vcombine.low %v975_v47, %v982_v49  ;;  %v5265_v59 = vcombine.high %v975_v47, %v982_v49  ;;  %1648 = vadd.xlane.f32.xlu0 %v1647_v53 }
 0x449   :  { %v1062_v62 = vrot.slane %v1055_v44, %v6113_v6  ;;  %v1070_v63 = vrot.slane %v5264_v51, %v6113_v6  ;;  %v1078_v0 = vrot.slane %v1071_v58, %v6113_v6  ;;  %v1086_v1 = vrot.slane %v5265_v59, %v6113_v6 }
 0x44b   :  { %v1087_v2 = vcombine.low %v1062_v62, %v1070_v63  ;;  %v1103_v3 = vcombine.low %v1078_v0, %v1086_v1  ;;  %v1088_v48 = vcombine.high %v1062_v62, %v1070_v63  ;;  %v1104_v55 = vcombine.high %v1078_v0, %v1086_v1 }
 0x44c   :  { %915 = vrot.lane.b32.xlu1 %v6297_v57, %s5957_s25 }
 0x44d   :  { %v1095_v7 = vrot.slane %v1087_v2, %v6116_v13  ;;  %v1111_v52 = vrot.slane %v1103_v3, %v6116_v13  ;;  %v1102_v56 = vrot.slane %v1088_v48, %v6116_v13  ;;  %v1118_v8 = vrot.slane %v1104_v55, %v6116_v13 }
 0x44e   :  { %v6352_v23 = vpop.eup %5875 }
 0x44f   :  { %v1119_v60 = vcombine.low %v1095_v7, %v1111_v52  ;;  %v1120_v5 = vcombine.high %v1095_v7, %v1111_v52  ;;  %v1121_v11 = vcombine.low %v1102_v56, %v1118_v8  ;;  %v1122_v9 = vcombine.high %v1102_v56, %v1118_v8 }
 0x450   :  { %v1650_v34 = vsel %vm1199_vm2, %v6352_v23, 0.0 }
 0x451   :  { %v1191_v12 = vpack.c.bf16 %v1119_v60, %v1119_v60  ;;  %v1192_v17 = vpack.c.bf16 %v1120_v5, %v1120_v5  ;;  %v1193_v25 = vpack.c.bf16 %v1121_v11, %v1121_v11  ;;  %v1194_v47 = vpack.c.bf16 %v1122_v9, %v1122_v9 }
 0x453   :  { %v1685_v19 = vsel %vm1683_vm3, %v1191_v12, 0  ;;  %v1731_v20 = vsel %vm1683_vm3, %v1192_v17, 0  ;;  %v1777_v44 = vsel %vm1683_vm3, %v1193_v25, 0  ;;  %v1823_v58 = vsel %vm1683_vm3, %v1194_v47, 0 }
 0x454   :  { %5567 = vmatpush3.bf16.msra.mxu1 %v1685_v19  ;;  %5573 = vmatpush3.bf16.msra.mxu0 %v1731_v20 }
 0x455   :  { %5578 = vmatprep.subr.bf16.mxu1 %v5953_v15  ;;  %5584 = vmatprep.subr.bf16.mxu0 %v5953_v15 }
 0x45d   :  { %909 = vrot.lane.b32.xlu0 %v6297_v57, %s5955_s23 }
 0x46c   :  { %v1607_v29 = vpop.xlane.xlu1 %1606 }
 0x46d   :  { %v1615_v30 = vsub.f32 %v6292_v50, %v1607_v29 }
 0x46f   :  { %v1630_v33 = vmul.f32 1.442695, %v1615_v30 }
 0x470   :  { %1651 = vadd.xlane.f32.xlu1 %v1650_v34  ;;  %v904_v16 = vpop.permute.xlu1 %903 }
 0x471   :  { %5877 = vpow2.f32 %v1630_v33 }
 0x47b   :  { %v6357_v35 = vpop.eup %5877 }
 0x47c   :  { %v1653_v46 = vsel %vm1199_vm2, %v6357_v35, 0.0 }
 0x47d   :  { %1654 = vadd.xlane.f32.xlu0 %v1653_v46 }
 0x4c0   :  { %v1634_v36 = vpop.xlane.xlu0 %1633 }
 0x4c1   :  { %v1637_v37 = vpop.xlane.xlu1 %1636  ;;  %5879 = vrcp.f32 %v1634_v36 }
 0x4c2   :  { %5881 = vrcp.f32 %v1637_v37 }
 0x4c8   :  { %v1640_v41 = vpop.xlane.xlu1 %1639 }
 0x4c9   :  { %5883 = vrcp.f32 %v1640_v41 }
 0x4cb   :  { %v5880_v50 = vpop.eup %5879 }
 0x4cc   :  { %v5882_v42 = vpop.eup %5881  ;;  %v1657_v45 = vmul.f32 %v5880_v50, %v6303_v54  ;;  %v1643_v24 = vpop.xlane.xlu0 %1642 }
 0x4cd   :  { %v1659_v61 = vmul.f32 %v5882_v42, %v6305_v4  ;;  %5885 = vrcp.f32 %v1643_v24  ;;  %v916_v59 = vpop.permute.xlu1 %915 }
 0x4ce   :  { %v1672_v49 = vpack.c.bf16 %v1657_v45, %v1657_v45  ;;  %v1003_v1 = vcombine.low %v904_v16, %v916_v59  ;;  %v1004_v2 = vcombine.high %v904_v16, %v916_v59 }
 0x4cf   :  { %v1673_v53 = vpack.c.bf16 %v1659_v61, %v1659_v61 }
 0x4d0   :  { %5569 = vmatmul.mubr.msk.bf16.vlgmr.msra.gmra.mrb[24].mxu1 %vm1199_vm2, %v1672_v49  ;;  %v1646_v51 = vpop.xlane.xlu0 %1645  ;;  %v1011_v52 = vrot.slane %v1003_v1, %v6113_v6  ;;  %v1018_v56 = vrot.slane %v1004_v2, %v6113_v6 }
 0x4d1   :  { %5575 = vmatmul.mubr.msk.bf16.vlgmr.msra.gmra.mrb[20].mxu0 %vm1199_vm2, %v1673_v53  ;;  %5579 = vmatpush3.bf16.msra.mxu1 %v1777_v44  ;;  %5887 = vrcp.f32 %v1646_v51 }
 0x4d2   :  { %5585 = vmatpush3.bf16.msra.mxu0 %v1823_v58  ;;  %5580 = vmatprep.mubr.msk.bf16.mxu1 %vm5954_vm1, %v5953_v15 }
 0x4d3   :  { %v5884_v54 = vpop.eup %5883  ;;  %5586 = vmatprep.mubr.msk.bf16.mxu0 %vm5954_vm1, %v5953_v15  ;;  %5590 = vmatprep.subr.bf16.mxu1 %v5953_v15 }
 0x4d4   :  { %v1661_v4 = vmul.f32 %v5884_v54, %v6311_v14  ;;  %v1649_v62 = vpop.xlane.xlu0 %1648  ;;  %5596 = vmatprep.subr.bf16.mxu0 %v5953_v15 }
 0x4d5   :  { %5889 = vrcp.f32 %v1649_v62 }
 0x4d6   :  { %v1674_v63 = vpack.c.bf16 %v1661_v4, %v1661_v4 }
 0x4d7   :  { %v5886_v0 = vpop.eup %5885 }
 0x4d8   :  { %v1663_v3 = vmul.f32 %v5886_v0, %v6315_v18  ;;  %5581 = vmatmul.mubr.msk.bf16.vlgmr.msra.gmra.mrb[28].mxu1 %vm1199_vm2, %v1674_v63  ;;  %v910_v48 = vpop.permute.xlu0 %909 }
 0x4d9   :  { %v987_v55 = vcombine.low %v6297_v57, %v910_v48  ;;  %v988_v7 = vcombine.high %v6297_v57, %v910_v48  ;;  %5592 = vmatprep.mubr.msk.bf16.mxu1 %vm5954_vm1, %v5953_v15 }
 0x4da   :  { %v1675_v14 = vpack.c.bf16 %v1663_v3, %v1663_v3 }
 0x4db   :  { %v995_v8 = vrot.slane %v987_v55, %v6113_v6  ;;  %v1002_v60 = vrot.slane %v988_v7, %v6113_v6  ;;  %v5888_v50 = vpop.eup %5887 }
 0x4dc   :  { %5587 = vmatmul.mubr.msk.bf16.vlgmr.msra.gmra.mrb[24].mxu0 %vm1199_vm2, %v1675_v14  ;;  %v1665_v51 = vmul.f32 %v5888_v50, %v6319_v31 }
 0x4dd   :  { %v1019_v18 = vcombine.low %v995_v8, %v1011_v52  ;;  %v1020_v5 = vcombine.high %v995_v8, %v1011_v52  ;;  %v1035_v11 = vcombine.low %v1002_v60, %v1018_v56  ;;  %v1036_v9 = vcombine.high %v1002_v60, %v1018_v56  ;;  %5598 = vmatprep.mubr.msk.bf16.mxu0 %vm5954_vm1, %v5953_v15 }
 0x4de   :  { %v1676_v1 = vpack.c.bf16 %v1665_v51, %v1665_v51 }
 0x4df   :  { %v1027_v57 = vrot.slane %v1019_v18, %v6116_v13  ;;  %v1034_v12 = vrot.slane %v1020_v5, %v6116_v13  ;;  %v1043_v17 = vrot.slane %v1035_v11, %v6116_v13  ;;  %v1050_v19 = vrot.slane %v1036_v9, %v6116_v13  ;;  %v5890_v61 = vpop.eup %5889 }
 0x4e0   :  { %v1667_v58 = vmul.f32 %v5890_v61, %v6327_v40 }
 0x4e1   :  { %v1123_v20 = vcombine.low %v1027_v57, %v1034_v12  ;;  %v5266_v21 = vcombine.high %v1027_v57, %v1034_v12  ;;  %v1139_v22 = vcombine.low %v1043_v17, %v1050_v19  ;;  %v5267_v29 = vcombine.high %v1043_v17, %v1050_v19 }
 0x4e2   :  { %v1677_v2 = vpack.c.bf16 %v1667_v58, %v1667_v58 }
 0x4e3   :  { %v1130_v30 = vrot.slane %v1123_v20, %v6113_v6  ;;  %v1138_v33 = vrot.slane %v5266_v21, %v6113_v6  ;;  %v1146_v34 = vrot.slane %v1139_v22, %v6113_v6  ;;  %v1154_v46 = vrot.slane %v5267_v29, %v6113_v6 }
 0x4e5   :  { %v1155_v16 = vcombine.low %v1130_v30, %v1138_v33  ;;  %v1171_v36 = vcombine.low %v1146_v34, %v1154_v46  ;;  %v1156_v37 = vcombine.high %v1130_v30, %v1138_v33  ;;  %v1172_v41 = vcombine.high %v1146_v34, %v1154_v46 }
 0x4e7   :  { %v1163_v42 = vrot.slane %v1155_v16, %v6116_v13  ;;  %v1179_v45 = vrot.slane %v1171_v36, %v6116_v13  ;;  %v1170_v24 = vrot.slane %v1156_v37, %v6116_v13  ;;  %v1186_v25 = vrot.slane %v1172_v41, %v6116_v13 }
 0x4e9   :  { %v1187_v47 = vcombine.low %v1163_v42, %v1179_v45  ;;  %v1188_v49 = vcombine.high %v1163_v42, %v1179_v45  ;;  %v1189_v53 = vcombine.low %v1170_v24, %v1186_v25  ;;  %v1190_v44 = vcombine.high %v1170_v24, %v1186_v25 }
 0x4eb   :  { %v1195_v54 = vpack.c.bf16 %v1187_v47, %v1187_v47  ;;  %v1196_v4 = vpack.c.bf16 %v1188_v49, %v1188_v49  ;;  %v1197_v63 = vpack.c.bf16 %v1189_v53, %v1189_v53  ;;  %v1198_v0 = vpack.c.bf16 %v1190_v44, %v1190_v44 }
 0x4ed   :  { %v1869_v59 = vsel %vm1683_vm3, %v1195_v54, 0  ;;  %v1915_v62 = vsel %vm1683_vm3, %v1196_v4, 0  ;;  %v1961_v31 = vsel %vm1683_vm3, %v1197_v63, 0  ;;  %v2007_v40 = vsel %vm1683_vm3, %v1198_v0, 0 }
 0x4ee   :  { %5591 = vmatpush3.bf16.msra.mxu1 %v1869_v59  ;;  %5597 = vmatpush3.bf16.msra.mxu0 %v1915_v62 }
 0x4ef   :  { %5602 = vmatprep.subr.bf16.mxu1 %v5953_v15  ;;  %5608 = vmatprep.subr.bf16.mxu0 %v5953_v15 }
 0x4f1   :  { %5593 = vmatmul.mubr.msk.bf16.vlgmr.msra.gmra.mrb[32].mxu1 %vm1199_vm2, %v1676_v1  ;;  %5599 = vmatmul.mubr.msk.bf16.vlgmr.msra.gmra.mrb[28].mxu0 %vm1199_vm2, %v1677_v2 }
 0x4f2   :  { %5603 = vmatpush3.bf16.msra.mxu1 %v1961_v31  ;;  %5609 = vmatpush3.bf16.msra.mxu0 %v2007_v40 }
 0x4f3   :  { %5604 = vmatprep.mubr.msk.bf16.mxu1 %vm5954_vm1, %v5953_v15  ;;  %5610 = vmatprep.mubr.msk.bf16.mxu0 %vm5954_vm1, %v5953_v15 }
 0x4f4   :  { %5614 = vmatprep.subr.bf16.mxu1 %v5953_v15  ;;  %5622 = vmatprep.subr.bf16.mxu0 %v5953_v15 }
 0x4fd   :  { %v1652_v3 = vpop.xlane.xlu1 %1651 }
 0x4fe   :  { %5891 = vrcp.f32 %v1652_v3 }
 0x508   :  { %v5892_v48 = vpop.eup %5891 }
 0x509   :  { %v1669_v55 = vmul.f32 %v5892_v48, %v6352_v23 }
 0x50a   :  { %v1655_v7 = vpop.xlane.xlu0 %1654 }
 0x50b   :  { %5893 = vrcp.f32 %v1655_v7  ;;  %v1678_v14 = vpack.c.bf16 %v1669_v55, %v1669_v55 }
 0x50d   :  { %5605 = vmatmul.mubr.msk.bf16.vlgmr.msra.gmra.mrb[36].mxu1 %vm1199_vm2, %v1678_v14 }
 0x50e   :  { %5618 = vmatprep.mubr.msk.bf16.mxu1 %vm5954_vm1, %v5953_v15 }
 0x515   :  { %v5894_v52 = vpop.eup %5893 }
 0x516   :  { %v1671_v56 = vmul.f32 %v5894_v52, %v6357_v35 }
 0x518   :  { %v1679_v8 = vpack.c.bf16 %v1671_v56, %v1671_v56 }
 0x51a   :  { %5611 = vmatmul.mubr.msk.bf16.vlgmr.msra.gmra.mrb[32].mxu0 %vm1199_vm2, %v1679_v8 }
 0x51b   :  { %5626 = vmatprep.mubr.msk.bf16.mxu0 %vm5954_vm1, %v5953_v15 }
 0x5a3   :  { %v1721_v60 = vpop.f32.mrb[24].mxu1 }
 0x5a4   :  { %v1767_v18 = vpop.f32.mrb[20].mxu0  ;;  %v5570_v23 = vpop.f32.mrb[25].mxu1 }
 0x5a5   :  { %v5576_v5 = vpop.f32.mrb[21].mxu0  ;;  %v1724_v11 = vpop.f32.mrb[26].mxu1 }
 0x5a6   :  { %v1770_v9 = vpop.f32.mrb[22].mxu0  ;;  %v5571_v57 = vpop.f32.mrb[27].mxu1 }
 0x5a7   :  { %v5577_v12 = vpop.f32.mrb[23].mxu0 }
 0x5ab   :  { %v1813_v17 = vpop.f32.mrb[28].mxu1 }
 0x5ac   :  { %v2049_v19 = vcombine.low %v1721_v60, %v1813_v17  ;;  %v2050_v20 = vcombine.high %v1721_v60, %v1813_v17  ;;  %v5582_v21 = vpop.f32.mrb[29].mxu1 }
 0x5ad   :  { %v1816_v22 = vpop.f32.mrb[30].mxu1 }
 0x5ae   :  { %v5583_v35 = vpop.f32.mrb[31].mxu1  ;;  %v2057_v16 = vrot.slane %v2049_v19, %v6113_v6  ;;  %v2064_v36 = vrot.slane %v2050_v20, %v6113_v6 }
 0x5af   :  { %v1859_v29 = vpop.f32.mrb[24].mxu0 }
 0x5b0   :  { %v2065_v30 = vcombine.low %v1767_v18, %v1859_v29  ;;  %v2066_v33 = vcombine.high %v1767_v18, %v1859_v29  ;;  %v5588_v34 = vpop.f32.mrb[25].mxu0 }
 0x5b1   :  { %v1862_v46 = vpop.f32.mrb[26].mxu0 }
 0x5b2   :  { %v2073_v37 = vrot.slane %v2065_v30, %v6113_v6  ;;  %v2080_v41 = vrot.slane %v2066_v33, %v6113_v6  ;;  %v5589_v50 = vpop.f32.mrb[27].mxu0 }
 0x5b4   :  { %v2081_v42 = vcombine.low %v2057_v16, %v2073_v37  ;;  %v2082_v45 = vcombine.high %v2057_v16, %v2073_v37  ;;  %v2097_v24 = vcombine.low %v2064_v36, %v2080_v41  ;;  %v2098_v25 = vcombine.high %v2064_v36, %v2080_v41 }
 0x5b6   :  { %v2089_v61 = vrot.slane %v2081_v42, %v6116_v13  ;;  %v2096_v47 = vrot.slane %v2082_v45, %v6116_v13  ;;  %v2105_v49 = vrot.slane %v2097_v24, %v6116_v13  ;;  %v2112_v53 = vrot.slane %v2098_v25, %v6116_v13 }
 0x5b8   :  { %v2185_v44 = vcombine.low %v2089_v61, %v2096_v47  ;;  %v5284_v51 = vcombine.high %v2089_v61, %v2096_v47  ;;  %v2201_v58 = vcombine.low %v2105_v49, %v2112_v53  ;;  %v5285_v54 = vcombine.high %v2105_v49, %v2112_v53 }
 0x5ba   :  { %v2192_v4 = vrot.slane %v2185_v44, %v6113_v6  ;;  %v2200_v59 = vrot.slane %v5284_v51, %v6113_v6  ;;  %v2208_v62 = vrot.slane %v2201_v58, %v6113_v6  ;;  %v2216_v63 = vrot.slane %v5285_v54, %v6113_v6  ;;  %v5837_v54 = vld [vmem:[%s7067_s3 + $0x30] sm:$0xff]  }
 0x5bb   :  { %5615 = vmatpush3.bf16.msra.mxu1 %v5837_v54 }
 0x5bc   :  { %v2218_v0 = vcombine.high %v2192_v4, %v2200_v59  ;;  %v2234_v1 = vcombine.high %v2208_v62, %v2216_v63  ;;  %v2217_v2 = vcombine.low %v2192_v4, %v2200_v59  ;;  %v2233_v31 = vcombine.low %v2208_v62, %v2216_v63  ;;  %5616 = vmatprep.subr.bf16.mxu1 %v5953_v15 }
 0x5be   :  { %v6436_v40 = vrot.slane %v2218_v0, %v6116_v13  ;;  %v6439_v3 = vrot.slane %v2234_v1, %v6116_v13  ;;  %v6442_v48 = vrot.slane %v2217_v2, %v6116_v13  ;;  %v6445_v55 = vrot.slane %v2233_v31, %v6116_v13 }
 0x5c0   :  { %v2251_v7 = vcombine.low %v6436_v40, %v6439_v3  ;;  %v2249_v14 = vcombine.low %v6442_v48, %v6445_v55  ;;  %v2250_v52 = vcombine.high %v6442_v48, %v6445_v55  ;;  %v2252_v56 = vcombine.high %v6436_v40, %v6439_v3  ;;  %v5838_v40 = vld [vmem:[%s7067_s3 + $0x38] sm:$0xff]   ;;  %v6498_v55 = vld [vmem:[%s7069_s6] sm:$0xff] }
 0x5c1   :  { %5617 = vmatpush3.bf16.msra.mxu1 %v5838_v40  ;;  %v2361_v48 = vsub.s32 3, %v6041_v26 }
 0x5c2   :  { %5630 = vmatprep.subr.bf16.mxu1 %v5953_v15 }
 0x5c4   :  { %v1905_v8 = vpop.f32.mrb[32].mxu1  ;;  %v1951_v60 = vpop.f32.mrb[28].mxu0 }
 0x5c5   :  { %v5594_v18 = vpop.f32.mrb[33].mxu1  ;;  %v5600_v23 = vpop.f32.mrb[29].mxu0 }
 0x5c6   :  { %v1908_v5 = vpop.f32.mrb[34].mxu1  ;;  %v1954_v11 = vpop.f32.mrb[30].mxu0 }
 0x5c7   :  { %v5595_v9 = vpop.f32.mrb[35].mxu1  ;;  %v5601_v57 = vpop.f32.mrb[31].mxu0 }
 0x5e0   :  { %v1997_v12 = vpop.f32.mrb[36].mxu1 }
 0x5e1   :  { %v2117_v17 = vcombine.low %v1905_v8, %v1997_v12  ;;  %v2118_v19 = vcombine.high %v1905_v8, %v1997_v12  ;;  %v5606_v20 = vpop.f32.mrb[37].mxu1 }
 0x5e2   :  { %v2000_v21 = vpop.f32.mrb[38].mxu1 }
 0x5e3   :  { %v5607_v22 = vpop.f32.mrb[39].mxu1  ;;  %v2125_v46 = vrot.slane %v2117_v17, %v6113_v6  ;;  %v2132_v16 = vrot.slane %v2118_v19, %v6113_v6 }
 0x5ed   :  { %v2043_v35 = vpop.f32.mrb[32].mxu0 }
 0x5ee   :  { %v2133_v29 = vcombine.low %v1951_v60, %v2043_v35  ;;  %v2134_v30 = vcombine.high %v1951_v60, %v2043_v35  ;;  %v5612_v33 = vpop.f32.mrb[33].mxu0 }
 0x5ef   :  { %v2046_v34 = vpop.f32.mrb[34].mxu0 }
 0x5f0   :  { %v2141_v36 = vrot.slane %v2133_v29, %v6113_v6  ;;  %v2148_v37 = vrot.slane %v2134_v30, %v6113_v6  ;;  %v5613_v41 = vpop.f32.mrb[35].mxu0 }
 0x5f2   :  { %v2149_v50 = vcombine.low %v2125_v46, %v2141_v36  ;;  %v2150_v42 = vcombine.high %v2125_v46, %v2141_v36  ;;  %v2165_v45 = vcombine.low %v2132_v16, %v2148_v37  ;;  %v2166_v24 = vcombine.high %v2132_v16, %v2148_v37 }
 0x5f4   :  { %v2157_v25 = vrot.slane %v2149_v50, %v6116_v13  ;;  %v2164_v61 = vrot.slane %v2150_v42, %v6116_v13  ;;  %v2173_v47 = vrot.slane %v2165_v45, %v6116_v13  ;;  %v2180_v49 = vrot.slane %v2166_v24, %v6116_v13 }
 0x5f6   :  { %v2253_v53 = vcombine.low %v2157_v25, %v2164_v61  ;;  %v5286_v44 = vcombine.high %v2157_v25, %v2164_v61  ;;  %v2269_v51 = vcombine.low %v2173_v47, %v2180_v49  ;;  %v5287_v58 = vcombine.high %v2173_v47, %v2180_v49 }
 0x5f8   :  { %v2260_v4 = vrot.slane %v2253_v53, %v6113_v6  ;;  %v2268_v59 = vrot.slane %v5286_v44, %v6113_v6  ;;  %v2276_v62 = vrot.slane %v2269_v51, %v6113_v6  ;;  %v2284_v63 = vrot.slane %v5287_v58, %v6113_v6 }
 0x5fa   :  { %v2286_v0 = vcombine.high %v2260_v4, %v2268_v59  ;;  %v2302_v1 = vcombine.high %v2276_v62, %v2284_v63  ;;  %v2285_v2 = vcombine.low %v2260_v4, %v2268_v59  ;;  %v2301_v31 = vcombine.low %v2276_v62, %v2284_v63 }
 0x5fc   :  { %v2300_v3 = vrot.slane %v2286_v0, %v6116_v13  ;;  %v2316_v8 = vrot.slane %v2302_v1, %v6116_v13  ;;  %v2293_v60 = vrot.slane %v2285_v2, %v6116_v13  ;;  %v2309_v18 = vrot.slane %v2301_v31, %v6116_v13  ;;  %v5840_v1 = vld [vmem:[%s7071_s4 + $0x8] sm:$0xff]  }
 0x5fe   :  { %v2319_v23 = vcombine.low %v2300_v3, %v2316_v8  ;;  %v2318_v5 = vcombine.high %v2293_v60, %v2309_v18  ;;  %v2317_v11 = vcombine.low %v2293_v60, %v2309_v18  ;;  %v2320_v9 = vcombine.high %v2300_v3, %v2316_v8 }
 0x5ff   :  { %v2449_v18 = vsub.s32 4, %v6041_v26 }
 0x600   :  { %v5806_v57 = vpack.i.bf16 %v2319_v23, %v2251_v7  ;;  %v5801_v12 = vpack.i.bf16 %v2318_v5, %v2250_v52  ;;  %v5811_v17 = vpack.i.bf16 %v2320_v9, %v2252_v56  ;;  %v2455_v9 = vsub.s32 5, %v6041_v26 }
 0x601   :  { %v2450_v5 = vrot.slane %v6498_v55, %v2449_v18 }
 0x602   :  { %5807 = vrot.lane.b32.xlu1 %v5806_v57, %s5961_s0  ;;  %5802 = vrot.lane.b32.xlu0 %v5801_v12, %s5962_s9 }
 0x606   :  { %5812 = vrot.lane.b32.xlu1 %v5811_v17, %s5963_s10 }
 0x674   :  { %v5808_v19 = vpop.permute.xlu1 %5807  ;;  %v5803_v20 = vpop.permute.xlu0 %5802 }
 0x675   :  { %v5805_v21 = vunpack.i.h.bf16 %v5803_v20  ;;  %v5804_v22 = vunpack.i.l.bf16 %v5803_v20  ;;  %v5810_v35 = vunpack.i.h.bf16 %v5808_v19  ;;  %v5809_v29 = vunpack.i.l.bf16 %v5808_v19 }
 0x676   :  { %v2456_v19 = vrot.slane %v6498_v55, %v2455_v9 }
 0x677   :  { %v2345_v7 = vsel %vm1199_vm2, %v2249_v14, %v5804_v22  ;;  %v2346_v52 = vsel %vm1199_vm2, %v2317_v11, %v5805_v21  ;;  %v2362_v14 = vrot.slane %v6498_v55, %v2361_v48 }
 0x678   :  { %v5813_v56 = vpop.permute.xlu1 %5812  ;;  %v2348_v34 = vsel %vm2347_vm4, %v2345_v7, %v5809_v29  ;;  %v2349_v46 = vsel %vm2347_vm4, %v2346_v52, %v5810_v35  ;;  %v5841_v29 = vld [vmem:[%s7072_s5] sm:$0xff]   ;;  %v5842_v7 = vld [vmem:[%s7072_s5 + $0x8] sm:$0xff]   ;;  %v5843_v52 = vld [vmem:[%s7072_s5 + $0x10] sm:$0xff]  }
 0x679   :  { %v5815_v30 = vunpack.i.h.bf16 %v5813_v56  ;;  %v5814_v33 = vunpack.i.l.bf16 %v5813_v56  ;;  %v5844_v56 = vld [vmem:[%s7072_s5 + $0x18] sm:$0xff]  }
 0x67b   :  { %v2351_v16 = vsel %vm2350_vm5, %v2348_v34, %v5814_v33  ;;  %v2352_v36 = vsel %vm2350_vm5, %v2349_v46, %v5815_v30  ;;  %v5295_v30 = vld [vmem:[%s7073_s7] ss:$0 sm:$0xff] }
 0x67c   :  { %v2353_v37 = vpack.c.bf16 %v2352_v36, %v2351_v16 }
 0x67e   :  { %5619 = vmatmul.mubr.msk.bf16.vlgmr.msra.gmra.mrb[40].mxu1 %vm33_vm0, %v2353_v37 }
 0x67f   :  { %5638 = vmatprep.mubr.msk.bf16.mxu1 %vm5954_vm1, %v5953_v15  ;;  %5631 = vmatpush3.bf16.msra.mxu1 %v5841_v29 }
 0x680   :  { %5632 = vmatprep.subr.bf16.mxu1 %v5953_v15 }
 0x683   :  { %5633 = vmatpush3.bf16.msra.mxu1 %v5842_v7 }
 0x684   :  { %5634 = vmatprep.subr.bf16.mxu1 %v5953_v15 }
 0x687   :  { %5635 = vmatpush3.bf16.msra.mxu1 %v5843_v52  ;;  %v5846_v52 = vld [vmem:[%s7067_s3 + $0x60] sm:$0xff]  }
 0x688   :  { %5636 = vmatprep.subr.bf16.mxu1 %v5953_v15 }
 0x68b   :  { %5637 = vmatpush3.bf16.msra.mxu1 %v5844_v56  ;;  %v5847_v56 = vld [vmem:[%s7067_s3 + $0x48] sm:$0xff]  }
 0x68c   :  { %5658 = vmatprep.subr.bf16.mxu1 %v5953_v15 }
 0x751   :  { %v2412_v41 = vpop.f32.mrb[40].mxu1 }
 0x752   :  { %v2413_v50 = vadd.f32 %v2412_v41, %v2362_v14  ;;  %v5620_v42 = vpop.f32.mrb[41].mxu1 }
 0x753   :  { %v2415_v45 = vpop.f32.mrb[42].mxu1 }
 0x754   :  { %v2416_v24 = vadd.f32 %v2415_v45, %v2362_v14  ;;  %v5621_v25 = vpop.f32.mrb[43].mxu1  ;;  %v2419_v61 = vadd.f32 %v2413_v50, %v6054_v38 }
 0x756   :  { %v2421_v47 = vsel %vm33_vm0, %v2419_v61, 0.0  ;;  %v2420_v49 = vadd.f32 %v2416_v24, %v6056_v39  ;;  %v5839_v39 = vld [vmem:[%s7071_s4] sm:$0xff]  }
 0x757   :  { %2422 = vadd.xlane.f32.xlu1 %v2421_v47  ;;  %5623 = vmatpush3.bf16.msra.mxu0 %v5839_v39 }
 0x758   :  { %v2424_v53 = vsel %vm33_vm0, %v2420_v49, 0.0  ;;  %5624 = vmatprep.subr.bf16.mxu0 %v5953_v15 }
 0x759   :  { %2425 = vadd.xlane.f32.xlu0 %v2424_v53 }
 0x75b   :  { %5625 = vmatpush3.bf16.msra.mxu0 %v5840_v1 }
 0x75c   :  { %5642 = vmatprep.subr.bf16.mxu0 %v5953_v15 }
 0x7e4   :  { %v2423_v44 = vpop.xlane.xlu1 %2422 }
 0x7e5   :  { %v2427_v51 = vmul.f32 0.03125, %v2423_v44 }
 0x7e6   :  { %v2426_v58 = vpop.xlane.xlu0 %2425 }
 0x7e7   :  { %v2429_v54 = vsub.f32 %v2419_v61, %v2427_v51  ;;  %v2428_v4 = vmul.f32 0.03125, %v2426_v58 }
 0x7e9   :  { %v2430_v59 = vsub.f32 %v2420_v49, %v2428_v4  ;;  %v2431_v62 = vmul.f32 %v2429_v54, %v2429_v54 }
 0x7eb   :  { %v2433_v63 = vsel %vm33_vm0, %v2431_v62, 0.0  ;;  %v2432_v0 = vmul.f32 %v2430_v59, %v2430_v59 }
 0x7ec   :  { %2434 = vadd.xlane.f32.xlu0 %v2433_v63 }
 0x7ed   :  { %v2436_v38 = vsel %vm33_vm0, %v2432_v0, 0.0  ;;  %v2555_v0 = vsub.s32 6, %v6041_v26 }
 0x7f0   :  { %2437 = vadd.xlane.f32.xlu0 %v2436_v38  ;;  %v2556_v38 = vrot.slane %v6498_v55, %v2555_v0 }
 0x879   :  { %v2435_v2 = vpop.xlane.xlu0 %2434 }
 0x87a   :  { %v2439_v31 = vmul.f32 0.03125, %v2435_v2 }
 0x87c   :  { %v2441_v40 = vadd.f32 1e-12, %v2439_v31 }
 0x87d   :  { %v2438_v3 = vpop.xlane.xlu0 %2437 }
 0x87e   :  { %5895 = vrsqrt.f32 %v2441_v40  ;;  %v2440_v8 = vmul.f32 0.03125, %v2438_v3 }
 0x880   :  { %v2442_v60 = vadd.f32 1e-12, %v2440_v8 }
 0x882   :  { %5897 = vrsqrt.f32 %v2442_v60 }
 0x888   :  { %v5896_v23 = vpop.eup %5895 }
 0x889   :  { %v2445_v11 = vmul.f32 %v5896_v23, %v2429_v54 }
 0x88b   :  { %v2451_v12 = vmul.f32 %v2450_v5, %v2445_v11 }
 0x88c   :  { %v5898_v57 = vpop.eup %5897 }
 0x88d   :  { %v2446_v17 = vmul.f32 %v5898_v57, %v2430_v59  ;;  %v2457_v21 = vadd.f32 %v2456_v19, %v2451_v12 }
 0x88f   :  { %v2452_v20 = vmul.f32 %v2450_v5, %v2446_v17 }
 0x891   :  { %v2458_v22 = vadd.f32 %v2456_v19, %v2452_v20 }
 0x893   :  { %v2459_v35 = vpack.c.bf16 %v2458_v22, %v2457_v21 }
 0x895   :  { %5627 = vmatmul.mubr.msk.bf16.vlgmr.msra.gmra.mrb[36].mxu0 %vm33_vm0, %v2459_v35 }
 0x896   :  { %5646 = vmatprep.mubr.msk.bf16.mxu0 %vm5954_vm1, %v5953_v15 }
 0x968   :  { %v2519_v33 = vpop.f32.mrb[36].mxu0 }
 0x969   :  { %v2520_v34 = vadd.f32 %v5295_v30, %v2519_v33  ;;  %v5628_v46 = vpop.f32.mrb[37].mxu0 }
 0x96a   :  { %v2522_v16 = vpop.f32.mrb[38].mxu0 }
 0x96b   :  { %v2528_v36 = vmul.f32 0.044715, %v2520_v34  ;;  %v2523_v37 = vadd.f32 %v5295_v30, %v2522_v16  ;;  %v5629_v14 = vpop.f32.mrb[39].mxu0  ;;  %v2526_v58 = vmul.f32 0.5, %v2520_v34  ;;  %v5848_v30 = vld [vmem:[%s7067_s3 + $0x68] sm:$0xff]  }
 0x96c   :  { %v2656_v14 = vsub.s32 7, %v6041_v26 }
 0x96d   :  { %v2530_v41 = vmul.f32 %v2528_v36, %v2520_v34  ;;  %v2529_v50 = vmul.f32 0.044715, %v2523_v37  ;;  %v2527_v54 = vmul.f32 0.5, %v2523_v37 }
 0x96f   :  { %v2532_v42 = vmul.f32 %v2530_v41, %v2520_v34  ;;  %v2531_v45 = vmul.f32 %v2529_v50, %v2523_v37  ;;  %v2657_v41 = vrot.slane %v6498_v55, %v2656_v14 }
 0x971   :  { %v2534_v24 = vadd.f32 %v2532_v42, %v2520_v34  ;;  %v2533_v25 = vmul.f32 %v2531_v45, %v2523_v37 }
 0x973   :  { %v2536_v61 = vmul.f32 0.7978846, %v2534_v24  ;;  %v2535_v47 = vadd.f32 %v2533_v25, %v2523_v37 }
 0x975   :  { %5899 = vtanh.f32 %v2536_v61  ;;  %v2537_v49 = vmul.f32 0.7978846, %v2535_v47  ;;  %v5304_v61 = vld [vmem:[%s7069_s6 + $0x8] ss:$0 sm:$0xff] }
 0x977   :  { %5901 = vtanh.f32 %v2537_v49 }
 0x97f   :  { %v5900_v53 = vpop.eup %5899 }
 0x980   :  { %v2540_v44 = vadd.f32 1.0, %v5900_v53 }
 0x981   :  { %v5902_v51 = vpop.eup %5901 }
 0x982   :  { %v2541_v4 = vadd.f32 1.0, %v5902_v51  ;;  %v2542_v59 = vmul.f32 %v2540_v44, %v2526_v58  ;;  %v5849_v44 = vld [vmem:[%s7067_s3 + $0x50] sm:$0xff]   ;;  %v5850_v51 = vld [vmem:[%s7067_s3 + $0x58] sm:$0xff]  }
 0x983   :  { %v5305_v58 = vld [vmem:[%s7069_s6 + $0x10] sm:$0xff] }
 0x984   :  { %v2543_v62 = vmul.f32 %v2541_v4, %v2527_v54 }
 0x986   :  { %v2544_v63 = vpack.c.bf16 %v2543_v62, %v2542_v59  ;;  %v2807_v59 = vrot.slane %v5305_v58, %v244_v28 }
 0x988   :  { %5639 = vmatmul.mubr.msk.bf16.vlgmr.msra.gmra.mrb[44].mxu1 %vm2581_vm6, %v2544_v63 }
 0x989   :  { %5662 = vmatprep.mubr.msk.bf16.mxu1 %vm5954_vm1, %v5953_v15  ;;  %5659 = vmatpush3.bf16.msra.mxu1 %v5846_v52 }
 0x98a   :  { %5660 = vmatprep.subr.bf16.mxu1 %v5953_v15 }
 0x98d   :  { %5661 = vmatpush3.bf16.msra.mxu1 %v5848_v30 }
 0x98e   :  { %5672 = vmatprep.subr.bf16.mxu1 %v5953_v15 }
 0xa5b   :  { %v2619_v39 = vpop.f32.mrb[44].mxu1 }
 0xa5c   :  { %v2620_v1 = vadd.f32 %v2619_v39, %v2556_v38  ;;  %v5640_v2 = vpop.f32.mrb[45].mxu1 }
 0xa5d   :  { %v2622_v31 = vpop.f32.mrb[46].mxu1 }
 0xa5e   :  { %v2623_v40 = vadd.f32 %v2622_v31, %v2556_v38  ;;  %v5641_v3 = vpop.f32.mrb[47].mxu1  ;;  %v2626_v8 = vadd.f32 %v2620_v1, %v2457_v21 }
 0xa60   :  { %v2628_v60 = vsel %vm33_vm0, %v2626_v8, 0.0  ;;  %v2627_v23 = vadd.f32 %v2623_v40, %v2458_v22  ;;  %v5845_v22 = vld [vmem:[%s7067_s3 + $0x40] sm:$0xff]   ;;  %v2745_v40 = vrot.slane %v5305_v58, %v6051_v32 }
 0xa61   :  { %2629 = vadd.xlane.f32.xlu1 %v2628_v60  ;;  %5643 = vmatpush3.bf16.msra.mxu0 %v5845_v22 }
 0xa62   :  { %v2631_v5 = vsel %vm33_vm0, %v2627_v23, 0.0  ;;  %5644 = vmatprep.subr.bf16.mxu0 %v5953_v15 }
 0xa63   :  { %2632 = vadd.xlane.f32.xlu0 %v2631_v5 }
 0xa65   :  { %5645 = vmatpush3.bf16.msra.mxu0 %v5847_v56 }
 0xa66   :  { %5650 = vmatprep.subr.bf16.mxu0 %v5953_v15 }
 0xaee   :  { %v2630_v11 = vpop.xlane.xlu1 %2629 }
 0xaef   :  { %v2634_v57 = vmul.f32 0.03125, %v2630_v11 }
 0xaf0   :  { %v2633_v12 = vpop.xlane.xlu0 %2632 }
 0xaf1   :  { %v2636_v17 = vsub.f32 %v2626_v8, %v2634_v57  ;;  %v2635_v19 = vmul.f32 0.03125, %v2633_v12  ;;  %v2680_v8 = vrot.slane %v5305_v58, %v6044_v27 }
 0xaf3   :  { %v2637_v20 = vsub.f32 %v2627_v23, %v2635_v19  ;;  %v2638_v35 = vmul.f32 %v2636_v17, %v2636_v17 }
 0xaf5   :  { %v2640_v29 = vsel %vm33_vm0, %v2638_v35, 0.0  ;;  %v2639_v7 = vmul.f32 %v2637_v20, %v2637_v20 }
 0xaf6   :  { %2641 = vadd.xlane.f32.xlu1 %v2640_v29 }
 0xaf7   :  { %v2643_v21 = vsel %vm33_vm0, %v2639_v7, 0.0 }
 0xaf8   :  { %2644 = vadd.xlane.f32.xlu0 %v2643_v21 }
 0xb83   :  { %v2642_v33 = vpop.xlane.xlu1 %2641 }
 0xb84   :  { %v2646_v34 = vmul.f32 0.03125, %v2642_v33 }
 0xb85   :  { %v2645_v46 = vpop.xlane.xlu0 %2644 }
 0xb86   :  { %v2648_v16 = vadd.f32 1e-12, %v2646_v34  ;;  %v2647_v36 = vmul.f32 0.03125, %v2645_v46 }
 0xb88   :  { %5903 = vrsqrt.f32 %v2648_v16  ;;  %v2649_v37 = vadd.f32 1e-12, %v2647_v36 }
 0xb8a   :  { %5905 = vrsqrt.f32 %v2649_v37 }
 0xb92   :  { %v5904_v50 = vpop.eup %5903 }
 0xb93   :  { %v2652_v42 = vmul.f32 %v5904_v50, %v2636_v17 }
 0xb94   :  { %v5906_v45 = vpop.eup %5905 }
 0xb95   :  { %v2658_v24 = vmul.f32 %v2657_v41, %v2652_v42  ;;  %v2653_v25 = vmul.f32 %v5906_v45, %v2637_v20 }
 0xb97   :  { %v2659_v47 = vmul.f32 %v2657_v41, %v2653_v25  ;;  %v6581_v49 = vadd.f32 %v5304_v61, %v2658_v24 }
 0xb99   :  { %v6583_v53 = vadd.f32 %v5304_v61, %v2659_v47 }
 0xb9b   :  { %v2671_v55 = vpack.c.bf16 %v6583_v53, %v6581_v49 }
 0xb9d   :  { %5647 = vmatmul.mubr.msk.bf16.vlgmr.msra.gmra.mrb[40].mxu0 %vm33_vm0, %v2671_v55  ;;  %5663 = vmatmul.mubr.msk.bf16.vlgmr.msra.gmra.mrb[48].mxu1 %vm33_vm0, %v2671_v55 }
 0xb9e   :  { %5651 = vmatpush3.bf16.msra.mxu0 %v5849_v44  ;;  %5654 = vmatprep.mubr.msk.bf16.mxu0 %vm5954_vm1, %v5953_v15 }
 0xb9f   :  { %5652 = vmatprep.subr.bf16.mxu0 %v5953_v15  ;;  %5674 = vmatprep.mubr.msk.bf16.mxu1 %vm5954_vm1, %v5953_v15 }
 0xba2   :  { %5653 = vmatpush3.bf16.msra.mxu0 %v5850_v51 }
 0xba3   :  { %5666 = vmatprep.subr.bf16.mxu0 %v5953_v15 }
 0xba5   :  { %5655 = vmatmul.mubr.msk.bf16.vlgmr.msra.gmra.mrb[44].mxu0 %vm33_vm0, %v2671_v55 }
 0xba6   :  { %5668 = vmatprep.mubr.msk.bf16.mxu0 %vm5954_vm1, %v5953_v15 }
 0xc70   :  { %v2730_v54 = vpop.f32.mrb[40].mxu0  ;;  %v2854_v4 = vpop.f32.mrb[48].mxu1 }
 0xc71   :  { %v5648_v62 = vpop.f32.mrb[41].mxu0  ;;  %v5664_v63 = vpop.f32.mrb[49].mxu1  ;;  %v2731_v11 = vadd.f32 %v2730_v54, %v2680_v8  ;;  %v6630_v27 = vadd.f32 %v2854_v4, %v2807_v59 }
 0xc72   :  { %v2733_v38 = vpop.f32.mrb[42].mxu0  ;;  %v2857_v39 = vpop.f32.mrb[50].mxu1 }
 0xc73   :  { %v6609_v1 = vadd.f32 %v2857_v39, %v2807_v59  ;;  %v5649_v2 = vpop.f32.mrb[43].mxu0  ;;  %v5665_v31 = vpop.f32.mrb[51].mxu1  ;;  %v6619_v32 = vadd.f32 %v2733_v38, %v2680_v8 }
 0xc78   :  { %v2792_v3 = vpop.f32.mrb[44].mxu0 }
 0xc79   :  { %v2793_v60 = vadd.f32 %v2792_v3, %v2745_v40  ;;  %v5656_v23 = vpop.f32.mrb[45].mxu0 }
 0xc7a   :  { %v2795_v5 = vpop.f32.mrb[46].mxu0 }
 0xc7b   :  { %3169 = vrot.lane.b32.xlu0 %v2793_v60, %s5955_s23  ;;  %3163 = vrot.lane.b32.xlu1 %v2793_v60, %s5956_s24  ;;  %v5657_v28 = vpop.f32.mrb[47].mxu0  ;;  %v2796_v57 = vadd.f32 %v2795_v5, %v2745_v40 }
 0xc7f   :  { %2875 = vrot.lane.b32.xlu0 %v2731_v11, %s5957_s25  ;;  %3175 = vrot.lane.b32.xlu1 %v2793_v60, %s5957_s25 }
 0xc83   :  { %2863 = vrot.lane.b32.xlu1 %v2731_v11, %s5956_s24  ;;  %3171 = vrot.lane.b32.xlu0 %v2796_v57, %s5955_s23 }
 0xc87   :  { %2869 = vrot.lane.b32.xlu1 %v2731_v11, %s5955_s23  ;;  %2865 = vrot.lane.b32.xlu0 %v6619_v32, %s5956_s24 }
 0xc8b   :  { %2877 = vrot.lane.b32.xlu0 %v6619_v32, %s5957_s25  ;;  %3165 = vrot.lane.b32.xlu1 %v2796_v57, %s5956_s24 }
 0xc8f   :  { %3177 = vrot.lane.b32.xlu1 %v2796_v57, %s5957_s25 }
 0xc93   :  { %2871 = vrot.lane.b32.xlu1 %v6619_v32, %s5955_s23 }
 0xc97   :  { %3463 = vrot.lane.b32.xlu1 %v6630_v27, %s5956_s24 }
 0xced   :  { %v3170_v12 = vpop.permute.xlu0 %3169  ;;  %v3164_v17 = vpop.permute.xlu1 %3163 }
 0xcee   :  { %v3181_v19 = vcombine.low %v2793_v60, %v3170_v12  ;;  %v3182_v20 = vcombine.high %v2793_v60, %v3170_v12 }
 0xcf0   :  { %v3189_v22 = vrot.slane %v3181_v19, %v6113_v6  ;;  %v3196_v52 = vrot.slane %v3182_v20, %v6113_v6 }
 0xcf1   :  { %v2876_v35 = vpop.permute.xlu0 %2875  ;;  %v3176_v29 = vpop.permute.xlu1 %3175 }
 0xcf2   :  { %v3197_v7 = vcombine.low %v3164_v17, %v3176_v29  ;;  %v3198_v21 = vcombine.high %v3164_v17, %v3176_v29 }
 0xcf4   :  { %v3205_v56 = vrot.slane %v3197_v7, %v6113_v6  ;;  %v3212_v30 = vrot.slane %v3198_v21, %v6113_v6 }
 0xcf5   :  { %v2864_v33 = vpop.permute.xlu1 %2863  ;;  %v3172_v34 = vpop.permute.xlu0 %3171 }
 0xcf6   :  { %v3213_v46 = vcombine.low %v3189_v22, %v3205_v56  ;;  %v3214_v16 = vcombine.high %v3189_v22, %v3205_v56  ;;  %v3229_v36 = vcombine.low %v3196_v52, %v3212_v30  ;;  %v3230_v37 = vcombine.high %v3196_v52, %v3212_v30 }
 0xcf7   :  { %v2897_v24 = vcombine.low %v2864_v33, %v2876_v35  ;;  %v2898_v25 = vcombine.high %v2864_v33, %v2876_v35  ;;  %v3249_v61 = vcombine.low %v2796_v57, %v3172_v34  ;;  %v3250_v47 = vcombine.high %v2796_v57, %v3172_v34 }
 0xcf8   :  { %v3221_v41 = vrot.slane %v3213_v46, %v6116_v13  ;;  %v3228_v50 = vrot.slane %v3214_v16, %v6116_v13  ;;  %v3237_v42 = vrot.slane %v3229_v36, %v6116_v13  ;;  %v3244_v45 = vrot.slane %v3230_v37, %v6116_v13 }
 0xcf9   :  { %v2870_v44 = vpop.permute.xlu1 %2869  ;;  %v2866_v55 = vpop.permute.xlu0 %2865  ;;  %v2905_v31 = vrot.slane %v2897_v24, %v6113_v6  ;;  %v2912_v40 = vrot.slane %v2898_v25, %v6113_v6  ;;  %v3257_v5 = vrot.slane %v3249_v61, %v6113_v6  ;;  %v3264_v28 = vrot.slane %v3250_v47, %v6113_v6 }
 0xcfa   :  { %v3317_v51 = vcombine.low %v3221_v41, %v3228_v50  ;;  %v5333_v58 = vcombine.high %v3221_v41, %v3228_v50  ;;  %v3333_v54 = vcombine.low %v3237_v42, %v3244_v45  ;;  %v5334_v4 = vcombine.high %v3237_v42, %v3244_v45 }
 0xcfb   :  { %v2881_v59 = vcombine.low %v2731_v11, %v2870_v44  ;;  %v2882_v62 = vcombine.high %v2731_v11, %v2870_v44 }
 0xcfc   :  { %v6643_v63 = vrot.slane %v3317_v51, %v6113_v6  ;;  %v6646_v38 = vrot.slane %v5333_v58, %v6113_v6  ;;  %v6649_v39 = vrot.slane %v3333_v54, %v6113_v6  ;;  %v6652_v2 = vrot.slane %v5334_v4, %v6113_v6 }
 0xcfd   :  { %v2889_v3 = vrot.slane %v2881_v59, %v6113_v6  ;;  %v2896_v8 = vrot.slane %v2882_v62, %v6113_v6  ;;  %v2878_v60 = vpop.permute.xlu0 %2877  ;;  %v3166_v23 = vpop.permute.xlu1 %3165 }
 0xcfe   :  { %v3349_v11 = vcombine.low %v6643_v63, %v6646_v38  ;;  %v3365_v57 = vcombine.low %v6649_v39, %v6652_v2  ;;  %v2965_v35 = vcombine.low %v2866_v55, %v2878_v60  ;;  %v2966_v29 = vcombine.high %v2866_v55, %v2878_v60 }
 0xcff   :  { %v2913_v12 = vcombine.low %v2889_v3, %v2905_v31  ;;  %v2914_v17 = vcombine.high %v2889_v3, %v2905_v31  ;;  %v2929_v19 = vcombine.low %v2896_v8, %v2912_v40  ;;  %v2930_v20 = vcombine.high %v2896_v8, %v2912_v40 }
 0xd00   :  { %v3357_v7 = vrot.slane %v3349_v11, %v6116_v13  ;;  %v3373_v21 = vrot.slane %v3365_v57, %v6116_v13  ;;  %v2973_v3 = vrot.slane %v2965_v35, %v6113_v6  ;;  %v2980_v8 = vrot.slane %v2966_v29, %v6113_v6 }
 0xd01   :  { %v2921_v22 = vrot.slane %v2913_v12, %v6116_v13  ;;  %v2928_v52 = vrot.slane %v2914_v17, %v6116_v13  ;;  %v2937_v56 = vrot.slane %v2929_v19, %v6116_v13  ;;  %v2944_v30 = vrot.slane %v2930_v20, %v6116_v13  ;;  %v3178_v33 = vpop.permute.xlu1 %3177 }
 0xd02   :  { %v3265_v34 = vcombine.low %v3166_v23, %v3178_v33  ;;  %v3266_v46 = vcombine.high %v3166_v23, %v3178_v33  ;;  %v3381_v16 = vcombine.low %v3357_v7, %v3373_v21  ;;  %v3382_v36 = vcombine.high %v3357_v7, %v3373_v21 }
 0xd03   :  { %v3017_v37 = vcombine.low %v2921_v22, %v2928_v52  ;;  %v5329_v41 = vcombine.high %v2921_v22, %v2928_v52  ;;  %v3033_v50 = vcombine.low %v2937_v56, %v2944_v30  ;;  %v5330_v42 = vcombine.high %v2937_v56, %v2944_v30 }
 0xd04   :  { %v3273_v45 = vrot.slane %v3265_v34, %v6113_v6  ;;  %v3280_v24 = vrot.slane %v3266_v46, %v6113_v6  ;;  %v3453_v25 = vpack.c.bf16 %v3381_v16, %v3381_v16  ;;  %v3454_v61 = vpack.c.bf16 %v3382_v36, %v3382_v36 }
 0xd05   :  { %v6673_v47 = vrot.slane %v3017_v37, %v6113_v6  ;;  %v6676_v44 = vrot.slane %v5329_v41, %v6113_v6  ;;  %v6679_v55 = vrot.slane %v3033_v50, %v6113_v6  ;;  %v6682_v51 = vrot.slane %v5330_v42, %v6113_v6  ;;  %v2872_v62 = vpop.permute.xlu1 %2871 }
 0xd06   :  { %v3281_v58 = vcombine.low %v3257_v5, %v3273_v45  ;;  %v3282_v54 = vcombine.high %v3257_v5, %v3273_v45  ;;  %v3297_v4 = vcombine.low %v3264_v28, %v3280_v24  ;;  %v3298_v59 = vcombine.high %v3264_v28, %v3280_v24 }
 0xd07   :  { %v3049_v31 = vcombine.low %v6673_v47, %v6676_v44  ;;  %v3065_v40 = vcombine.low %v6679_v55, %v6682_v51  ;;  %v2949_v28 = vcombine.low %v6619_v32, %v2872_v62  ;;  %v2950_v57 = vcombine.high %v6619_v32, %v2872_v62 }
 0xd08   :  { %v3289_v60 = vrot.slane %v3281_v58, %v6116_v13  ;;  %v3296_v23 = vrot.slane %v3282_v54, %v6116_v13  ;;  %v3305_v11 = vrot.slane %v3297_v4, %v6116_v13  ;;  %v3312_v5 = vrot.slane %v3298_v59, %v6116_v13 }
 0xd09   :  { %v3765_v12 = vsel %vm1199_vm2, %v3453_v25, 0  ;;  %v3811_v17 = vsel %vm1199_vm2, %v3454_v61, 0  ;;  %v3050_v19 = vcombine.high %v6673_v47, %v6676_v44  ;;  %v3066_v20 = vcombine.high %v6679_v55, %v6682_v51 }
 0xd0a   :  { %v3385_v35 = vcombine.low %v3289_v60, %v3296_v23  ;;  %v5335_v29 = vcombine.high %v3289_v60, %v3296_v23  ;;  %5667 = vmatpush3.bf16.xpose.msra.mxu0 %v3765_v12  ;;  %v2957_v7 = vrot.slane %v2949_v28, %v6113_v6  ;;  %v2964_v21 = vrot.slane %v2950_v57, %v6113_v6 }
 0xd0b   :  { %5673 = vmatpush3.bf16.xpose.msra.mxu1 %v3811_v17  ;;  %v3057_v32 = vrot.slane %v3049_v31, %v6116_v13  ;;  %v3073_v22 = vrot.slane %v3065_v40, %v6116_v13  ;;  %v3401_v30 = vcombine.low %v3305_v11, %v3312_v5  ;;  %v5336_v33 = vcombine.high %v3305_v11, %v3312_v5 }
 0xd0c   :  { %v3392_v52 = vrot.slane %v3385_v35, %v6113_v6  ;;  %v3400_v56 = vrot.slane %v5335_v29, %v6113_v6  ;;  %5678 = vmatprep.subr.bf16.mxu0 %v5953_v15  ;;  %v2981_v34 = vcombine.low %v2957_v7, %v2973_v3  ;;  %v2982_v46 = vcombine.high %v2957_v7, %v2973_v3 }
 0xd0d   :  { %v2997_v16 = vcombine.low %v2964_v21, %v2980_v8  ;;  %v2998_v36 = vcombine.high %v2964_v21, %v2980_v8  ;;  %5684 = vmatprep.subr.bf16.mxu1 %v5953_v15  ;;  %v3081_v37 = vcombine.low %v3057_v32, %v3073_v22  ;;  %v3082_v41 = vcombine.high %v3057_v32, %v3073_v22 }
 0xd0e   :  { %v3350_v50 = vcombine.high %v6643_v63, %v6646_v38  ;;  %v3366_v42 = vcombine.high %v6649_v39, %v6652_v2  ;;  %v2989_v45 = vrot.slane %v2981_v34, %v6116_v13  ;;  %v2996_v24 = vrot.slane %v2982_v46, %v6116_v13 }
 0xd0f   :  { %v3005_v25 = vrot.slane %v2997_v16, %v6116_v13  ;;  %v3012_v61 = vrot.slane %v2998_v36, %v6116_v13  ;;  %v3153_v47 = vpack.c.bf16 %v3081_v37, %v3081_v37  ;;  %v3154_v44 = vpack.c.bf16 %v3082_v41, %v3082_v41 }
 0xd10   :  { %v3364_v55 = vrot.slane %v3350_v50, %v6116_v13  ;;  %v3380_v51 = vrot.slane %v3366_v42, %v6116_v13  ;;  %v3085_v58 = vcombine.low %v2989_v45, %v2996_v24  ;;  %v5331_v54 = vcombine.high %v2989_v45, %v2996_v24 }
 0xd11   :  { %v3101_v63 = vcombine.low %v3005_v25, %v3012_v61  ;;  %v5332_v38 = vcombine.high %v3005_v25, %v3012_v61  ;;  %v3408_v39 = vrot.slane %v3401_v30, %v6113_v6  ;;  %5669 = vmatmul.mubr.msk.bf16.vlgmr.msra.gmra.mrb[48].mxu0 %vm1199_vm2, %v3153_v47  ;;  %v3416_v59 = vrot.slane %v5336_v33, %v6113_v6 }
 0xd12   :  { %5675 = vmatmul.mubr.msk.bf16.vlgmr.msra.gmra.mrb[52].mxu1 %vm1199_vm2, %v3154_v44  ;;  %v3383_v2 = vcombine.low %v3364_v55, %v3380_v51  ;;  %v3384_v4 = vcombine.high %v3364_v55, %v3380_v51  ;;  %v3092_v62 = vrot.slane %v3085_v58, %v6113_v6  ;;  %v3100_v31 = vrot.slane %v5331_v54, %v6113_v6 }
 0xd13   :  { %5680 = vmatprep.mubr.msk.bf16.mxu0 %vm5954_vm1, %v5953_v15  ;;  %v3064_v40 = vrot.slane %v3050_v19, %v6116_v13  ;;  %5686 = vmatprep.mubr.msk.bf16.mxu1 %vm5954_vm1, %v5953_v15  ;;  %v3080_v60 = vrot.slane %v3066_v20, %v6116_v13  ;;  %v3417_v23 = vcombine.low %v3392_v52, %v3400_v56 }
 0xd14   :  { %v3455_v3 = vpack.c.bf16 %v3383_v2, %v3383_v2  ;;  %v3456_v8 = vpack.c.bf16 %v3384_v4, %v3384_v4  ;;  %v3108_v11 = vrot.slane %v3101_v63, %v6113_v6  ;;  %v3116_v5 = vrot.slane %v5332_v38, %v6113_v6 }
 0xd15   :  { %v3425_v12 = vrot.slane %v3417_v23, %v6116_v13  ;;  %v3433_v17 = vcombine.low %v3408_v39, %v3416_v59  ;;  %v3117_v19 = vcombine.low %v3092_v62, %v3100_v31  ;;  %v3083_v35 = vcombine.low %v3064_v40, %v3080_v60 }
 0xd16   :  { %v3857_v28 = vsel %vm1199_vm2, %v3455_v3, 0  ;;  %v3903_v57 = vsel %vm1199_vm2, %v3456_v8, 0  ;;  %v3084_v29 = vcombine.high %v3064_v40, %v3080_v60  ;;  %v3133_v20 = vcombine.low %v3108_v11, %v3116_v5 }
 0xd17   :  { %5679 = vmatpush3.bf16.xpose.msra.mxu0 %v3857_v28  ;;  %5685 = vmatpush3.bf16.xpose.msra.mxu1 %v3903_v57  ;;  %v3441_v7 = vrot.slane %v3433_v17, %v6116_v13  ;;  %v3418_v21 = vcombine.high %v3392_v52, %v3400_v56  ;;  %v3434_v32 = vcombine.high %v3408_v39, %v3416_v59 }
 0xd18   :  { %5690 = vmatprep.subr.bf16.mxu0 %v5953_v15  ;;  %5696 = vmatprep.subr.bf16.mxu1 %v5953_v15  ;;  %v3155_v46 = vpack.c.bf16 %v3083_v35, %v3083_v35  ;;  %v3156_v16 = vpack.c.bf16 %v3084_v29, %v3084_v29  ;;  %v3125_v41 = vrot.slane %v3117_v19, %v6116_v13 }
 0xd19   :  { %v3449_v22 = vcombine.low %v3425_v12, %v3441_v7  ;;  %v3450_v30 = vcombine.high %v3425_v12, %v3441_v7  ;;  %v3432_v33 = vrot.slane %v3418_v21, %v6116_v13  ;;  %v3448_v34 = vrot.slane %v3434_v32, %v6116_v13 }
 0xd1a   :  { %v3141_v50 = vrot.slane %v3133_v20, %v6116_v13  ;;  %v3118_v24 = vcombine.high %v3092_v62, %v3100_v31  ;;  %v3134_v25 = vcombine.high %v3108_v11, %v3116_v5 }
 0xd1b   :  { %v3457_v36 = vpack.c.bf16 %v3449_v22, %v3449_v22  ;;  %v3458_v37 = vpack.c.bf16 %v3450_v30, %v3450_v30  ;;  %v3451_v42 = vcombine.low %v3432_v33, %v3448_v34  ;;  %v3452_v45 = vcombine.high %v3432_v33, %v3448_v34 }
 0xd1c   :  { %v3149_v61 = vcombine.low %v3125_v41, %v3141_v50  ;;  %v3150_v47 = vcombine.high %v3125_v41, %v3141_v50  ;;  %v3132_v54 = vrot.slane %v3118_v24, %v6116_v13  ;;  %v3148_v63 = vrot.slane %v3134_v25, %v6116_v13 }
 0xd1d   :  { %v3949_v52 = vsel %vm1199_vm2, %v3457_v36, 0  ;;  %v3995_v56 = vsel %vm1199_vm2, %v3458_v37, 0  ;;  %v3459_v44 = vpack.c.bf16 %v3451_v42, %v3451_v42  ;;  %v3460_v55 = vpack.c.bf16 %v3452_v45, %v3452_v45 }
 0xd1e   :  { %5681 = vmatmul.mubr.msk.bf16.vlgmr.msra.gmra.mrb[52].mxu0 %vm1199_vm2, %v3155_v46  ;;  %5687 = vmatmul.mubr.msk.bf16.vlgmr.msra.gmra.mrb[56].mxu1 %vm1199_vm2, %v3156_v16  ;;  %v3157_v51 = vpack.c.bf16 %v3149_v61, %v3149_v61  ;;  %v3158_v58 = vpack.c.bf16 %v3150_v47, %v3150_v47  ;;  %v3151_v2 = vcombine.low %v3132_v54, %v3148_v63 }
 0xd1f   :  { %5692 = vmatprep.mubr.msk.bf16.mxu0 %vm5954_vm1, %v5953_v15  ;;  %5698 = vmatprep.mubr.msk.bf16.mxu1 %vm5954_vm1, %v5953_v15  ;;  %v4041_v38 = vsel %vm1199_vm2, %v3459_v44, 0  ;;  %v4087_v39 = vsel %vm1199_vm2, %v3460_v55, 0  ;;  %v3152_v4 = vcombine.high %v3132_v54, %v3148_v63 }
 0xd20   :  { %5691 = vmatpush3.bf16.xpose.msra.mxu0 %v3949_v52  ;;  %5697 = vmatpush3.bf16.xpose.msra.mxu1 %v3995_v56  ;;  %v3159_v59 = vpack.c.bf16 %v3151_v2, %v3151_v2 }
 0xd21   :  { %5702 = vmatprep.subr.bf16.mxu0 %v5953_v15  ;;  %5708 = vmatprep.subr.bf16.mxu1 %v5953_v15  ;;  %v3160_v62 = vpack.c.bf16 %v3152_v4, %v3152_v4 }
 0xd27   :  { %5693 = vmatmul.mubr.msk.bf16.vlgmr.msra.gmra.mrb[56].mxu0 %vm1199_vm2, %v3157_v51  ;;  %5699 = vmatmul.mubr.msk.bf16.vlgmr.msra.gmra.mrb[60].mxu1 %vm1199_vm2, %v3158_v58 }
 0xd28   :  { %5703 = vmatpush3.bf16.xpose.msra.mxu0 %v4041_v38  ;;  %5709 = vmatpush3.bf16.xpose.msra.mxu1 %v4087_v39 }
 0xd29   :  { %5704 = vmatprep.mubr.msk.bf16.mxu0 %vm5954_vm1, %v5953_v15  ;;  %5710 = vmatprep.mubr.msk.bf16.mxu1 %vm5954_vm1, %v5953_v15 }
 0xd2a   :  { %5714 = vmatprep.subr.bf16.mxu0 %v5953_v15  ;;  %5720 = vmatprep.subr.bf16.mxu1 %v5953_v15 }
 0xd2f   :  { %5705 = vmatmul.mubr.msk.bf16.vlgmr.msra.gmra.mrb[60].mxu0 %vm1199_vm2, %v3159_v59  ;;  %5711 = vmatmul.mubr.msk.bf16.vlgmr.msra.gmra.mrb[64].mxu1 %vm1199_vm2, %v3160_v62 }
 0xd30   :  { %5716 = vmatprep.mubr.msk.bf16.mxu0 %vm5954_vm1, %v5953_v15  ;;  %5722 = vmatprep.mubr.msk.bf16.mxu1 %vm5954_vm1, %v5953_v15 }
 0xde4   :  { %v3801_v31 = vpop.f32.mrb[48].mxu0 }
 0xde5   :  { %v3847_v40 = vpop.f32.mrb[52].mxu1  ;;  %v4129_v3 = vmul.f32 0.35355338, %v3801_v31  ;;  %v5670_v60 = vpop.f32.mrb[49].mxu0 }
 0xde6   :  { %v4130_v8 = vmul.f32 0.35355338, %v3847_v40  ;;  %v5676_v23 = vpop.f32.mrb[53].mxu1  ;;  %v3804_v11 = vpop.f32.mrb[50].mxu0 }
 0xde7   :  { %v3850_v5 = vpop.f32.mrb[54].mxu1  ;;  %v5671_v28 = vpop.f32.mrb[51].mxu0  ;;  %v4137_v12 = vadd.f32 %v4129_v3, %v6255_v43 }
 0xde8   :  { %v5677_v57 = vpop.f32.mrb[55].mxu1  ;;  %v4138_v17 = vadd.f32 %v4130_v8, %v6255_v43  ;;  %v3464_v11 = vpop.permute.xlu1 %3463 }
 0xde9   :  { %v4145_v19 = vsel %vm1199_vm2, %v4137_v12, -inf }
 0xdea   :  { %v4148_v35 = vsel %vm1199_vm2, %v4138_v17, -inf  ;;  %4146 = vmax.xlane.f32.xlu1 %v4145_v19 }
 0xdeb   :  { %4149 = vmax.xlane.f32.xlu0 %v4148_v35 }
 0xdf1   :  { %v3893_v29 = vpop.f32.mrb[52].mxu0  ;;  %v3939_v20 = vpop.f32.mrb[56].mxu1 }
 0xdf2   :  { %v4131_v7 = vmul.f32 0.35355338, %v3893_v29  ;;  %v4132_v21 = vmul.f32 0.35355338, %v3939_v20  ;;  %v5682_v32 = vpop.f32.mrb[53].mxu0  ;;  %v5688_v22 = vpop.f32.mrb[57].mxu1 }
 0xdf3   :  { %v3896_v30 = vpop.f32.mrb[54].mxu0  ;;  %v3942_v33 = vpop.f32.mrb[58].mxu1 }
 0xdf4   :  { %v5683_v34 = vpop.f32.mrb[55].mxu0  ;;  %v5689_v46 = vpop.f32.mrb[59].mxu1  ;;  %v4139_v16 = vadd.f32 %v4131_v7, %v6255_v43  ;;  %v4140_v37 = vadd.f32 %v4132_v21, %v6255_v43 }
 0xdf6   :  { %v4151_v36 = vsel %vm1199_vm2, %v4139_v16, -inf  ;;  %v4154_v52 = vsel %vm1199_vm2, %v4140_v37, -inf }
 0xdf7   :  { %4152 = vmax.xlane.f32.xlu0 %v4151_v36 }
 0xdfa   :  { %v3985_v41 = vpop.f32.mrb[56].mxu0  ;;  %v4031_v50 = vpop.f32.mrb[60].mxu1 }
 0xdfb   :  { %v4133_v56 = vmul.f32 0.35355338, %v3985_v41  ;;  %v4134_v42 = vmul.f32 0.35355338, %v4031_v50  ;;  %v5694_v45 = vpop.f32.mrb[57].mxu0  ;;  %v5700_v24 = vpop.f32.mrb[61].mxu1  ;;  %4155 = vmax.xlane.f32.xlu0 %v4154_v52 }
 0xdfc   :  { %v3988_v25 = vpop.f32.mrb[58].mxu0  ;;  %v4034_v61 = vpop.f32.mrb[62].mxu1 }
 0xdfd   :  { %v5695_v47 = vpop.f32.mrb[59].mxu0  ;;  %v5701_v44 = vpop.f32.mrb[63].mxu1  ;;  %v4141_v55 = vadd.f32 %v4133_v56, %v6271_v10  ;;  %v6782_v51 = vadd.f32 %v4134_v42, %v6271_v10 }
 0xdff   :  { %v4157_v43 = vsel %vm1199_vm2, %v4141_v55, -inf  ;;  %v4160_v58 = vsel %vm1199_vm2, %v6782_v51, -inf }
 0xe00   :  { %4158 = vmax.xlane.f32.xlu1 %v4157_v43  ;;  %4161 = vmax.xlane.f32.xlu0 %v4160_v58 }
 0xe02   :  { %v4077_v54 = vpop.f32.mrb[60].mxu0  ;;  %v4123_v63 = vpop.f32.mrb[64].mxu1 }
 0xe03   :  { %v4135_v38 = vmul.f32 0.35355338, %v4077_v54  ;;  %v4136_v39 = vmul.f32 0.35355338, %v4123_v63  ;;  %v5706_v2 = vpop.f32.mrb[61].mxu0  ;;  %v5712_v4 = vpop.f32.mrb[65].mxu1 }
 0xe04   :  { %v4080_v59 = vpop.f32.mrb[62].mxu0  ;;  %v4126_v62 = vpop.f32.mrb[66].mxu1 }
 0xe05   :  { %v5707_v31 = vpop.f32.mrb[63].mxu0  ;;  %v5713_v40 = vpop.f32.mrb[67].mxu1  ;;  %v6788_v3 = vadd.f32 %v4135_v38, %v6271_v10  ;;  %v6791_v8 = vadd.f32 %v4136_v39, %v6271_v10 }
 0xe07   :  { %v4163_v60 = vsel %vm1199_vm2, %v6788_v3, -inf  ;;  %v4166_v23 = vsel %vm1199_vm2, %v6791_v8, -inf }
 0xe08   :  { %4164 = vmax.xlane.f32.xlu1 %v4163_v60  ;;  %4167 = vmax.xlane.f32.xlu0 %v4166_v23 }
 0xe19   :  { %3475 = vrot.lane.b32.xlu1 %v6630_v27, %s5957_s25 }
 0xe1e   :  { %3469 = vrot.lane.b32.xlu0 %v6630_v27, %s5955_s23 }
 0xe77   :  { %v4147_v5 = vpop.xlane.xlu1 %4146 }
 0xe78   :  { %v4150_v28 = vpop.xlane.xlu0 %4149  ;;  %v4169_v57 = vsub.f32 %v4137_v12, %v4147_v5 }
 0xe79   :  { %v4170_v10 = vsub.f32 %v4138_v17, %v4150_v28 }
 0xe7a   :  { %v4177_v19 = vmul.f32 1.442695, %v4169_v57 }
 0xe7b   :  { %v4179_v35 = vmul.f32 1.442695, %v4170_v10 }
 0xe7c   :  { %5907 = vpow2.f32 %v4177_v19 }
 0xe7d   :  { %5909 = vpow2.f32 %v4179_v35 }
 0xe84   :  { %v4153_v29 = vpop.xlane.xlu0 %4152 }
 0xe85   :  { %v4171_v20 = vsub.f32 %v4139_v16, %v4153_v29 }
 0xe86   :  { %v6801_v7 = vpop.eup %5907 }
 0xe87   :  { %v4181_v21 = vmul.f32 1.442695, %v4171_v20  ;;  %v6803_v32 = vpop.eup %5909  ;;  %v4193_v30 = vsel %vm1199_vm2, %v6801_v7, 0.0 }
 0xe88   :  { %v4156_v22 = vpop.xlane.xlu0 %4155  ;;  %4194 = vadd.xlane.f32.xlu1 %v4193_v30  ;;  %v4196_v12 = vsel %vm1199_vm2, %v6803_v32, 0.0 }
 0xe89   :  { %5911 = vpow2.f32 %v4181_v21  ;;  %v4172_v33 = vsub.f32 %v4140_v37, %v4156_v22  ;;  %4197 = vadd.xlane.f32.xlu0 %v4196_v12 }
 0xe8b   :  { %v4183_v17 = vmul.f32 1.442695, %v4172_v33 }
 0xe8d   :  { %5913 = vpow2.f32 %v4183_v17  ;;  %v4159_v34 = vpop.xlane.xlu1 %4158  ;;  %v4162_v36 = vpop.xlane.xlu0 %4161 }
 0xe8e   :  { %v4173_v46 = vsub.f32 %v4141_v55, %v4159_v34 }
 0xe90   :  { %v4185_v16 = vmul.f32 1.442695, %v4173_v46 }
 0xe92   :  { %5915 = vpow2.f32 %v4185_v16 }
 0xe93   :  { %v6809_v41 = vpop.eup %5911 }
 0xe94   :  { %v4199_v50 = vsel %vm1199_vm2, %v6809_v41, 0.0 }
 0xe95   :  { %v6813_v52 = vpop.xlane.xlu1 %4164  ;;  %v4168_v37 = vpop.xlane.xlu0 %4167  ;;  %4200 = vadd.xlane.f32.xlu1 %v4199_v50 }
 0xe97   :  { %v6815_v56 = vpop.eup %5913 }
 0xe98   :  { %v4202_v42 = vsel %vm1199_vm2, %v6815_v56, 0.0 }
 0xe99   :  { %v3476_v45 = vpop.permute.xlu1 %3475  ;;  %v3470_v24 = vpop.permute.xlu0 %3469  ;;  %4203 = vadd.xlane.f32.xlu0 %v4202_v42 }
 0xe9a   :  { %v3497_v25 = vcombine.low %v3464_v11, %v3476_v45  ;;  %v3498_v61 = vcombine.high %v3464_v11, %v3476_v45  ;;  %v3481_v47 = vcombine.low %v6630_v27, %v3470_v24  ;;  %v3482_v44 = vcombine.high %v6630_v27, %v3470_v24 }
 0xe9c   :  { %v6821_v55 = vpop.eup %5915  ;;  %v3505_v43 = vrot.slane %v3497_v25, %v6113_v6  ;;  %v3512_v58 = vrot.slane %v3498_v61, %v6113_v6  ;;  %v3489_v54 = vrot.slane %v3481_v47, %v6113_v6  ;;  %v3496_v63 = vrot.slane %v3482_v44, %v6113_v6 }
 0xe9d   :  { %v4205_v38 = vsel %vm1199_vm2, %v6821_v55, 0.0  ;;  %v4174_v25 = vsub.f32 %v6782_v51, %v4162_v36  ;;  %v4176_v47 = vsub.f32 %v6791_v8, %v4168_v37  ;;  %v4175_v8 = vsub.f32 %v6788_v3, %v6813_v52 }
 0xe9e   :  { %v3513_v39 = vcombine.low %v3489_v54, %v3505_v43  ;;  %v3514_v2 = vcombine.high %v3489_v54, %v3505_v43  ;;  %4206 = vadd.xlane.f32.xlu0 %v4205_v38  ;;  %v3529_v4 = vcombine.low %v3496_v63, %v3512_v58  ;;  %v3530_v59 = vcombine.high %v3496_v63, %v3512_v58 }
 0xe9f   :  { %v4187_v61 = vmul.f32 1.442695, %v4174_v25  ;;  %v4191_v44 = vmul.f32 1.442695, %v4176_v47  ;;  %v4189_v36 = vmul.f32 1.442695, %v4175_v8 }
 0xea0   :  { %v3521_v27 = vrot.slane %v3513_v39, %v6116_v13  ;;  %v3528_v62 = vrot.slane %v3514_v2, %v6116_v13  ;;  %v3537_v31 = vrot.slane %v3529_v4, %v6116_v13  ;;  %v3544_v40 = vrot.slane %v3530_v59, %v6116_v13 }
 0xea1   :  { %5917 = vpow2.f32 %v4187_v61 }
 0xea2   :  { %v3617_v60 = vcombine.low %v3521_v27, %v3528_v62  ;;  %v5337_v23 = vcombine.high %v3521_v27, %v3528_v62  ;;  %v3633_v11 = vcombine.low %v3537_v31, %v3544_v40  ;;  %v5338_v5 = vcombine.high %v3537_v31, %v3544_v40 }
 0xea3   :  { %5919 = vpow2.f32 %v4191_v44 }
 0xea4   :  { %v3624_v28 = vrot.slane %v3617_v60, %v6113_v6  ;;  %v3632_v57 = vrot.slane %v5337_v23, %v6113_v6  ;;  %v3640_v10 = vrot.slane %v3633_v11, %v6113_v6  ;;  %v3648_v19 = vrot.slane %v5338_v5, %v6113_v6 }
 0xea5   :  { %5921 = vpow2.f32 %v4189_v36 }
 0xea6   :  { %3471 = vrot.lane.b32.xlu1 %v6609_v1, %s5955_s23  ;;  %v3649_v35 = vcombine.low %v3624_v28, %v3632_v57  ;;  %v3650_v29 = vcombine.high %v3624_v28, %v3632_v57  ;;  %v3665_v20 = vcombine.low %v3640_v10, %v3648_v19  ;;  %v3666_v21 = vcombine.high %v3640_v10, %v3648_v19 }
 0xea8   :  { %v3657_v22 = vrot.slane %v3649_v35, %v6116_v13  ;;  %v3664_v30 = vrot.slane %v3650_v29, %v6116_v13  ;;  %v3673_v33 = vrot.slane %v3665_v20, %v6116_v13  ;;  %v3680_v12 = vrot.slane %v3666_v21, %v6116_v13 }
 0xeaa   :  { %v3681_v17 = vcombine.low %v3657_v22, %v3673_v33  ;;  %v3682_v34 = vcombine.high %v3657_v22, %v3673_v33  ;;  %v3683_v46 = vcombine.low %v3664_v30, %v3680_v12  ;;  %v3684_v16 = vcombine.high %v3664_v30, %v3680_v12 }
 0xeab   :  { %v6851_v43 = vpop.eup %5917 }
 0xeac   :  { %v3753_v50 = vpack.c.bf16 %v3681_v17, %v3681_v17  ;;  %v3754_v42 = vpack.c.bf16 %v3682_v34, %v3682_v34  ;;  %v4208_v58 = vsel %vm1199_vm2, %v6851_v43, 0.0  ;;  %v3755_v62 = vpack.c.bf16 %v3683_v46, %v3683_v46 }
 0xead   :  { %v6855_v54 = vpop.eup %5919  ;;  %v3756_v52 = vpack.c.bf16 %v3684_v16, %v3684_v16 }
 0xeae   :  { %v4245_v45 = vsel %vm1683_vm3, %v3753_v50, 0  ;;  %v4291_v24 = vsel %vm1683_vm3, %v3754_v42, 0  ;;  %v4214_v51 = vsel %vm1199_vm2, %v6855_v54, 0.0  ;;  %v4337_v23 = vsel %vm1683_vm3, %v3755_v62, 0 }
 0xeaf   :  { %5715 = vmatpush3.bf16.msra.mxu0 %v4245_v45  ;;  %5721 = vmatpush3.bf16.msra.mxu1 %v4291_v24  ;;  %v6863_v37 = vpop.eup %5921  ;;  %v4383_v11 = vsel %vm1683_vm3, %v3756_v52, 0 }
 0xeb0   :  { %5726 = vmatprep.subr.bf16.mxu0 %v5953_v15  ;;  %5732 = vmatprep.subr.bf16.mxu1 %v5953_v15  ;;  %v4211_v63 = vsel %vm1199_vm2, %v6863_v37, 0.0 }
 0xeb4   :  { %3465 = vrot.lane.b32.xlu0 %v6609_v1, %s5956_s24 }
 0xeca   :  { %4209 = vadd.xlane.f32.xlu1 %v4208_v58 }
 0xed3   :  { %4215 = vadd.xlane.f32.xlu0 %v4214_v51 }
 0xedb   :  { %3477 = vrot.lane.b32.xlu1 %v6609_v1, %s5957_s25 }
 0xeff   :  { %4212 = vadd.xlane.f32.xlu1 %v4211_v63 }
 0xf15   :  { %v4195_v38 = vpop.xlane.xlu1 %4194 }
 0xf16   :  { %5923 = vrcp.f32 %v4195_v38  ;;  %v4198_v39 = vpop.xlane.xlu0 %4197 }
 0xf17   :  { %5925 = vrcp.f32 %v4198_v39 }
 0xf20   :  { %v5924_v2 = vpop.eup %5923 }
 0xf21   :  { %v5926_v4 = vpop.eup %5925  ;;  %v4218_v59 = vmul.f32 %v5924_v2, %v6801_v7 }
 0xf22   :  { %v4201_v27 = vpop.xlane.xlu1 %4200  ;;  %v4220_v3 = vmul.f32 %v5926_v4, %v6803_v32 }
 0xf23   :  { %5927 = vrcp.f32 %v4201_v27  ;;  %v4233_v31 = vpack.c.bf16 %v4218_v59, %v4218_v59 }
 0xf24   :  { %v4234_v40 = vpack.c.bf16 %v4220_v3, %v4220_v3 }
 0xf25   :  { %5717 = vmatmul.mubr.msk.bf16.vlgmr.msra.gmra.mrb[64].mxu0 %vm1199_vm2, %v4233_v31 }
 0xf26   :  { %v4204_v60 = vpop.xlane.xlu0 %4203  ;;  %5723 = vmatmul.mubr.msk.bf16.vlgmr.msra.gmra.mrb[68].mxu1 %vm1199_vm2, %v4234_v40  ;;  %5727 = vmatpush3.bf16.msra.mxu0 %v4337_v23  ;;  %v3472_v19 = vpop.permute.xlu1 %3471 }
 0xf27   :  { %5929 = vrcp.f32 %v4204_v60  ;;  %5733 = vmatpush3.bf16.msra.mxu1 %v4383_v11  ;;  %5728 = vmatprep.mubr.msk.bf16.mxu0 %vm5954_vm1, %v5953_v15  ;;  %v3550_v20 = vcombine.high %v6609_v1, %v3472_v19 }
 0xf28   :  { %5734 = vmatprep.mubr.msk.bf16.mxu1 %vm5954_vm1, %v5953_v15  ;;  %5738 = vmatprep.subr.bf16.mxu0 %v5953_v15 }
 0xf29   :  { %5744 = vmatprep.subr.bf16.mxu1 %v5953_v15  ;;  %v3564_v12 = vrot.slane %v3550_v20, %v6113_v6 }
 0xf2b   :  { %v4207_v35 = vpop.xlane.xlu0 %4206 }
 0xf2c   :  { %5931 = vrcp.f32 %v4207_v35 }
 0xf2d   :  { %v5928_v7 = vpop.eup %5927 }
 0xf2e   :  { %v4222_v32 = vmul.f32 %v5928_v7, %v6809_v41  ;;  %v3549_v41 = vcombine.low %v6609_v1, %v3472_v19 }
 0xf2f   :  { %v3466_v21 = vpop.permute.xlu0 %3465 }
 0xf30   :  { %v4235_v5 = vpack.c.bf16 %v4222_v32, %v4222_v32  ;;  %v3557_v33 = vrot.slane %v3549_v41, %v6113_v6 }
 0xf31   :  { %v5930_v28 = vpop.eup %5929 }
 0xf32   :  { %v4224_v57 = vmul.f32 %v5930_v28, %v6815_v56  ;;  %5729 = vmatmul.mubr.msk.bf16.vlgmr.msra.gmra.mrb[68].mxu0 %vm1199_vm2, %v4235_v5 }
 0xf33   :  { %5740 = vmatprep.mubr.msk.bf16.mxu0 %vm5954_vm1, %v5953_v15 }
 0xf34   :  { %v4236_v10 = vpack.c.bf16 %v4224_v57, %v4224_v57 }
 0xf36   :  { %5735 = vmatmul.mubr.msk.bf16.vlgmr.msra.gmra.mrb[72].mxu1 %vm1199_vm2, %v4236_v10  ;;  %v5932_v27 = vpop.eup %5931 }
 0xf37   :  { %5746 = vmatprep.mubr.msk.bf16.mxu1 %vm5954_vm1, %v5953_v15  ;;  %v4226_v32 = vmul.f32 %v5932_v27, %v6821_v55 }
 0xf39   :  { %v4237_v41 = vpack.c.bf16 %v4226_v32, %v4226_v32 }
 0xf57   :  { %v4210_v29 = vpop.xlane.xlu1 %4209 }
 0xf58   :  { %5933 = vrcp.f32 %v4210_v29 }
 0xf5b   :  { %v3478_v56 = vpop.permute.xlu1 %3477 }
 0xf5c   :  { %v3565_v22 = vcombine.low %v3466_v21, %v3478_v56  ;;  %v3566_v30 = vcombine.high %v3466_v21, %v3478_v56 }
 0xf5e   :  { %v3573_v17 = vrot.slane %v3565_v22, %v6113_v6  ;;  %v3580_v34 = vrot.slane %v3566_v30, %v6113_v6 }
 0xf60   :  { %v3581_v46 = vcombine.low %v3557_v33, %v3573_v17  ;;  %v3582_v16 = vcombine.high %v3557_v33, %v3573_v17  ;;  %v3597_v50 = vcombine.low %v3564_v12, %v3580_v34  ;;  %v3598_v42 = vcombine.high %v3564_v12, %v3580_v34  ;;  %v4216_v38 = vpop.xlane.xlu0 %4215 }
 0xf61   :  { %5935 = vrcp.f32 %v4216_v38 }
 0xf62   :  { %v3589_v1 = vrot.slane %v3581_v46, %v6116_v13  ;;  %v3596_v45 = vrot.slane %v3582_v16, %v6116_v13  ;;  %v3605_v24 = vrot.slane %v3597_v50, %v6116_v13  ;;  %v3612_v25 = vrot.slane %v3598_v42, %v6116_v13  ;;  %v5934_v40 = vpop.eup %5933 }
 0xf63   :  { %v4228_v5 = vmul.f32 %v5934_v40, %v6851_v43 }
 0xf64   :  { %v3685_v61 = vcombine.low %v3589_v1, %v3596_v45  ;;  %v5339_v47 = vcombine.high %v3589_v1, %v3596_v45  ;;  %v3701_v44 = vcombine.low %v3605_v24, %v3612_v25  ;;  %v5340_v58 = vcombine.high %v3605_v24, %v3612_v25 }
 0xf65   :  { %v4238_v20 = vpack.c.bf16 %v4228_v5, %v4228_v5 }
 0xf66   :  { %v3692_v51 = vrot.slane %v3685_v61, %v6113_v6  ;;  %v3700_v8 = vrot.slane %v5339_v47, %v6113_v6  ;;  %v3708_v36 = vrot.slane %v3701_v44, %v6113_v6  ;;  %v3716_v63 = vrot.slane %v5340_v58, %v6113_v6 }
 0xf68   :  { %v3717_v39 = vcombine.low %v3692_v51, %v3700_v8  ;;  %v3733_v2 = vcombine.low %v3708_v36, %v3716_v63  ;;  %v3718_v4 = vcombine.high %v3692_v51, %v3700_v8  ;;  %v3734_v59 = vcombine.high %v3708_v36, %v3716_v63 }
 0xf6a   :  { %v3725_v62 = vrot.slane %v3717_v39, %v6116_v13  ;;  %v3741_v3 = vrot.slane %v3733_v2, %v6116_v13  ;;  %v3732_v52 = vrot.slane %v3718_v4, %v6116_v13  ;;  %v3748_v31 = vrot.slane %v3734_v59, %v6116_v13 }
 0xf6b   :  { %v5936_v21 = vpop.eup %5935 }
 0xf6c   :  { %v3749_v60 = vcombine.low %v3725_v62, %v3741_v3  ;;  %v3750_v23 = vcombine.high %v3725_v62, %v3741_v3  ;;  %v3751_v11 = vcombine.low %v3732_v52, %v3748_v31  ;;  %v3752_v7 = vcombine.high %v3732_v52, %v3748_v31 }
 0xf6d   :  { %v4232_v56 = vmul.f32 %v5936_v21, %v6855_v54 }
 0xf6e   :  { %v3757_v28 = vpack.c.bf16 %v3749_v60, %v3749_v60  ;;  %v3758_v57 = vpack.c.bf16 %v3750_v23, %v3750_v23  ;;  %v3759_v35 = vpack.c.bf16 %v3751_v11, %v3751_v11  ;;  %v3760_v29 = vpack.c.bf16 %v3752_v7, %v3752_v7 }
 0xf6f   :  { %v4240_v22 = vpack.c.bf16 %v4232_v56, %v4232_v56 }
 0xf70   :  { %v4429_v10 = vsel %vm1683_vm3, %v3757_v28, 0  ;;  %v4475_v19 = vsel %vm1683_vm3, %v3758_v57, 0  ;;  %v4521_v55 = vsel %vm1683_vm3, %v3759_v35, 0  ;;  %v4567_v43 = vsel %vm1683_vm3, %v3760_v29, 0 }
 0xf71   :  { %5739 = vmatpush3.bf16.msra.mxu0 %v4429_v10  ;;  %5745 = vmatpush3.bf16.msra.mxu1 %v4475_v19 }
 0xf72   :  { %5750 = vmatprep.subr.bf16.mxu0 %v5953_v15  ;;  %5756 = vmatprep.subr.bf16.mxu1 %v5953_v15 }
 0xf74   :  { %5741 = vmatmul.mubr.msk.bf16.vlgmr.msra.gmra.mrb[72].mxu0 %vm1199_vm2, %v4237_v41  ;;  %5747 = vmatmul.mubr.msk.bf16.vlgmr.msra.gmra.mrb[76].mxu1 %vm1199_vm2, %v4238_v20 }
 0xf75   :  { %5751 = vmatpush3.bf16.msra.mxu0 %v4521_v55  ;;  %5757 = vmatpush3.bf16.msra.mxu1 %v4567_v43 }
 0xf76   :  { %5758 = vmatprep.mubr.msk.bf16.mxu1 %vm5954_vm1, %v5953_v15  ;;  %5752 = vmatprep.mubr.msk.bf16.mxu0 %vm5954_vm1, %v5953_v15 }
 0xf77   :  { %5762 = vmatprep.subr.bf16.mxu0 %v5953_v15  ;;  %5770 = vmatprep.subr.bf16.mxu1 %v5953_v15 }
 0xf7c   :  { %5759 = vmatmul.mubr.msk.bf16.vlgmr.msra.gmra.mrb[80].mxu1 %vm1199_vm2, %v4240_v22 }
 0xf7d   :  { %5774 = vmatprep.mubr.msk.bf16.mxu1 %vm5954_vm1, %v5953_v15 }
 0xf8c   :  { %v4213_v30 = vpop.xlane.xlu1 %4212 }
 0xf8d   :  { %5937 = vrcp.f32 %v4213_v30 }
 0xf97   :  { %v5938_v33 = vpop.eup %5937 }
 0xf98   :  { %v4230_v54 = vmul.f32 %v5938_v33, %v6863_v37 }
 0xf9a   :  { %v4239_v12 = vpack.c.bf16 %v4230_v54, %v4230_v54 }
 0xf9c   :  { %5753 = vmatmul.mubr.msk.bf16.vlgmr.msra.gmra.mrb[76].mxu0 %vm1199_vm2, %v4239_v12 }
 0xf9d   :  { %5766 = vmatprep.mubr.msk.bf16.mxu0 %vm5954_vm1, %v5953_v15 }
 0xff8   :  { %v4281_v17 = vpop.f32.mrb[64].mxu0 }
 0xff9   :  { %v4327_v34 = vpop.f32.mrb[68].mxu1  ;;  %v5718_v46 = vpop.f32.mrb[65].mxu0 }
 0xffa   :  { %v5724_v16 = vpop.f32.mrb[69].mxu1  ;;  %v4284_v50 = vpop.f32.mrb[66].mxu0 }
 0xffb   :  { %v4330_v42 = vpop.f32.mrb[70].mxu1  ;;  %v5719_v1 = vpop.f32.mrb[67].mxu0 }
 0xffc   :  { %v5725_v45 = vpop.f32.mrb[71].mxu1 }
0x1005   :  { %v4373_v24 = vpop.f32.mrb[68].mxu0 }
0x1006   :  { %v4609_v25 = vcombine.low %v4281_v17, %v4373_v24  ;;  %v4610_v61 = vcombine.high %v4281_v17, %v4373_v24  ;;  %v5730_v47 = vpop.f32.mrb[69].mxu0 }
0x1007   :  { %v4376_v44 = vpop.f32.mrb[70].mxu0 }
0x1008   :  { %v5731_v37 = vpop.f32.mrb[71].mxu0  ;;  %v4617_v38 = vrot.slane %v4609_v25, %v6113_v6  ;;  %v4624_v39 = vrot.slane %v4610_v61, %v6113_v6 }
0x1009   :  { %v4419_v58 = vpop.f32.mrb[72].mxu1 }
0x100a   :  { %v4625_v51 = vcombine.low %v4327_v34, %v4419_v58  ;;  %v4626_v8 = vcombine.high %v4327_v34, %v4419_v58  ;;  %v5736_v36 = vpop.f32.mrb[73].mxu1 }
0x100b   :  { %v4422_v63 = vpop.f32.mrb[74].mxu1 }
0x100c   :  { %v4633_v2 = vrot.slane %v4625_v51, %v6113_v6  ;;  %v4640_v4 = vrot.slane %v4626_v8, %v6113_v6  ;;  %v5737_v59 = vpop.f32.mrb[75].mxu1 }
0x100e   :  { %v4641_v27 = vcombine.low %v4617_v38, %v4633_v2  ;;  %v4642_v62 = vcombine.high %v4617_v38, %v4633_v2  ;;  %v4657_v3 = vcombine.low %v4624_v39, %v4640_v4  ;;  %v4658_v52 = vcombine.high %v4624_v39, %v4640_v4 }
0x1010   :  { %v4649_v31 = vrot.slane %v4641_v27, %v6116_v13  ;;  %v4656_v40 = vrot.slane %v4642_v62, %v6116_v13  ;;  %v4665_v60 = vrot.slane %v4657_v3, %v6116_v13  ;;  %v4672_v23 = vrot.slane %v4658_v52, %v6116_v13 }
0x1012   :  { %v4745_v11 = vcombine.low %v4649_v31, %v4656_v40  ;;  %v5357_v7 = vcombine.high %v4649_v31, %v4656_v40  ;;  %v4761_v32 = vcombine.low %v4665_v60, %v4672_v23  ;;  %v5358_v5 = vcombine.high %v4665_v60, %v4672_v23 }
0x1014   :  { %v4752_v28 = vrot.slane %v4745_v11, %v6113_v6  ;;  %v4760_v57 = vrot.slane %v5357_v7, %v6113_v6  ;;  %v4768_v10 = vrot.slane %v4761_v32, %v6113_v6  ;;  %v4776_v19 = vrot.slane %v5358_v5, %v6113_v6  ;;  %v5851_v5 = vld [vmem:[%s7067_s3 + $0x70] sm:$0xff]  }
0x1015   :  { %5763 = vmatpush3.bf16.msra.mxu0 %v5851_v5 }
0x1016   :  { %v4778_v35 = vcombine.high %v4752_v28, %v4760_v57  ;;  %v4794_v29 = vcombine.high %v4768_v10, %v4776_v19  ;;  %v4777_v41 = vcombine.low %v4752_v28, %v4760_v57  ;;  %v4793_v20 = vcombine.low %v4768_v10, %v4776_v19  ;;  %5764 = vmatprep.subr.bf16.mxu0 %v5953_v15 }
0x1018   :  { %v6942_v21 = vrot.slane %v4778_v35, %v6116_v13  ;;  %v6945_v55 = vrot.slane %v4794_v29, %v6116_v13  ;;  %v6948_v43 = vrot.slane %v4777_v41, %v6116_v13  ;;  %v6951_v56 = vrot.slane %v4793_v20, %v6116_v13 }
0x101a   :  { %v4811_v22 = vcombine.low %v6942_v21, %v6945_v55  ;;  %v4809_v30 = vcombine.low %v6948_v43, %v6951_v56  ;;  %v4810_v33 = vcombine.high %v6948_v43, %v6951_v56  ;;  %v4812_v54 = vcombine.high %v6942_v21, %v6945_v55  ;;  %v7003_v43 = vld [vmem:[%s7069_s6 + $0x10] sm:$0xff] }
0x101b   :  { %v4920_v56 = vrot.slane %v7003_v43, %v2361_v48 }
0x1047   :  { %v4465_v12 = vpop.f32.mrb[72].mxu0  ;;  %v4511_v17 = vpop.f32.mrb[76].mxu1 }
0x1048   :  { %v5742_v34 = vpop.f32.mrb[73].mxu0  ;;  %v5748_v46 = vpop.f32.mrb[77].mxu1 }
0x1049   :  { %v4468_v16 = vpop.f32.mrb[74].mxu0  ;;  %v4514_v50 = vpop.f32.mrb[78].mxu1  ;;  %v5852_v34 = vld [vmem:[%s7067_s3 + $0x78] sm:$0xff]  }
0x104a   :  { %v5743_v42 = vpop.f32.mrb[75].mxu0  ;;  %v5749_v1 = vpop.f32.mrb[79].mxu1  ;;  %5765 = vmatpush3.bf16.msra.mxu0 %v5852_v34 }
0x104b   :  { %5778 = vmatprep.subr.bf16.mxu0 %v5953_v15 }
0x104f   :  { %v4603_v45 = vpop.f32.mrb[80].mxu1 }
0x1050   :  { %v4693_v24 = vcombine.low %v4511_v17, %v4603_v45  ;;  %v4694_v25 = vcombine.high %v4511_v17, %v4603_v45  ;;  %v5760_v61 = vpop.f32.mrb[81].mxu1 }
0x1051   :  { %v4606_v47 = vpop.f32.mrb[82].mxu1 }
0x1052   :  { %v5761_v44 = vpop.f32.mrb[83].mxu1  ;;  %v4701_v63 = vrot.slane %v4693_v24, %v6113_v6  ;;  %v4708_v38 = vrot.slane %v4694_v25, %v6113_v6 }
0x106f   :  { %v4557_v37 = vpop.f32.mrb[76].mxu0 }
0x1070   :  { %v4677_v58 = vcombine.low %v4465_v12, %v4557_v37  ;;  %v4678_v51 = vcombine.high %v4465_v12, %v4557_v37  ;;  %v5754_v8 = vpop.f32.mrb[77].mxu0 }
0x1071   :  { %v4560_v36 = vpop.f32.mrb[78].mxu0 }
0x1072   :  { %v4685_v39 = vrot.slane %v4677_v58, %v6113_v6  ;;  %v4692_v2 = vrot.slane %v4678_v51, %v6113_v6  ;;  %v5755_v4 = vpop.f32.mrb[79].mxu0 }
0x1074   :  { %v4709_v59 = vcombine.low %v4685_v39, %v4701_v63  ;;  %v4710_v27 = vcombine.high %v4685_v39, %v4701_v63  ;;  %v4725_v62 = vcombine.low %v4692_v2, %v4708_v38  ;;  %v4726_v3 = vcombine.high %v4692_v2, %v4708_v38 }
0x1076   :  { %v4717_v52 = vrot.slane %v4709_v59, %v6116_v13  ;;  %v4724_v31 = vrot.slane %v4710_v27, %v6116_v13  ;;  %v4733_v40 = vrot.slane %v4725_v62, %v6116_v13  ;;  %v4740_v60 = vrot.slane %v4726_v3, %v6116_v13 }
0x1078   :  { %v4813_v23 = vcombine.low %v4717_v52, %v4724_v31  ;;  %v5359_v11 = vcombine.high %v4717_v52, %v4724_v31  ;;  %v4829_v7 = vcombine.low %v4733_v40, %v4740_v60  ;;  %v5360_v32 = vcombine.high %v4733_v40, %v4740_v60 }
0x107a   :  { %v4820_v28 = vrot.slane %v4813_v23, %v6113_v6  ;;  %v4828_v57 = vrot.slane %v5359_v11, %v6113_v6  ;;  %v4836_v10 = vrot.slane %v4829_v7, %v6113_v6  ;;  %v4844_v19 = vrot.slane %v5360_v32, %v6113_v6 }
0x107c   :  { %v4846_v35 = vcombine.high %v4820_v28, %v4828_v57  ;;  %v4862_v29 = vcombine.high %v4836_v10, %v4844_v19  ;;  %v4845_v41 = vcombine.low %v4820_v28, %v4828_v57  ;;  %v4861_v20 = vcombine.low %v4836_v10, %v4844_v19  ;;  %v5854_v57 = vld [vmem:[%s7071_s4 + $0x18] sm:$0xff]  }
0x107e   :  { %v4860_v21 = vrot.slane %v4846_v35, %v6116_v13  ;;  %v4876_v55 = vrot.slane %v4862_v29, %v6116_v13  ;;  %v4853_v12 = vrot.slane %v4845_v41, %v6116_v13  ;;  %v4869_v17 = vrot.slane %v4861_v20, %v6116_v13 }
0x1080   :  { %v4879_v6 = vcombine.low %v4860_v21, %v4876_v55  ;;  %v4878_v46 = vcombine.high %v4853_v12, %v4869_v17  ;;  %v4877_v16 = vcombine.low %v4853_v12, %v4869_v17  ;;  %v4880_v50 = vcombine.high %v4860_v21, %v4876_v55 }
0x1081   :  { %v5008_v55 = vrot.slane %v7003_v43, %v2449_v18  ;;  %v5856_v18 = vld [vmem:[%s7072_s5 + $0x28] sm:$0xff]  }
0x1082   :  { %v5821_v42 = vpack.i.bf16 %v4879_v6, %v4811_v22  ;;  %v5816_v1 = vpack.i.bf16 %v4878_v46, %v4810_v33  ;;  %v5826_v45 = vpack.i.bf16 %v4880_v50, %v4812_v54  ;;  %v5014_v46 = vrot.slane %v7003_v43, %v2455_v9  ;;  %v5857_v9 = vld [vmem:[%s7072_s5 + $0x30] sm:$0xff]  }
0x1084   :  { %5822 = vrot.lane.b32.xlu1 %v5821_v42, %s5961_s0  ;;  %5817 = vrot.lane.b32.xlu0 %v5816_v1, %s5962_s9 }
0x1088   :  { %5827 = vrot.lane.b32.xlu1 %v5826_v45, %s5963_s10  ;;  %v5855_v45 = vld [vmem:[%s7072_s5 + $0x20] sm:$0xff]  }
0x10f6   :  { %v5823_v13 = vpop.permute.xlu1 %5822  ;;  %v5818_v24 = vpop.permute.xlu0 %5817 }
0x10f7   :  { %v5820_v25 = vunpack.i.h.bf16 %v5818_v24  ;;  %v5819_v61 = vunpack.i.l.bf16 %v5818_v24  ;;  %v5825_v47 = vunpack.i.h.bf16 %v5823_v13  ;;  %v5824_v44 = vunpack.i.l.bf16 %v5823_v13  ;;  %v5858_v13 = vld [vmem:[%s7072_s5 + $0x38] sm:$0xff]   ;;  %v5372_v24 = vld [vmem:[%s7073_s7 + $0x1] ss:$0 sm:$0xff] }
0x10f9   :  { %v4905_v37 = vsel %vm1199_vm2, %v4809_v30, %v5819_v61  ;;  %v4906_v22 = vsel %vm1199_vm2, %v4877_v16, %v5820_v25 }
0x10fa   :  { %v5828_v33 = vpop.permute.xlu1 %5827  ;;  %v4907_v51 = vsel %vm2347_vm4, %v4905_v37, %v5824_v44  ;;  %v4908_v8 = vsel %vm2347_vm4, %v4906_v22, %v5825_v47 }
0x10fb   :  { %v5830_v54 = vunpack.i.h.bf16 %v5828_v33  ;;  %v5829_v58 = vunpack.i.l.bf16 %v5828_v33 }
0x10fd   :  { %v4909_v36 = vsel %vm2350_vm5, %v4907_v51, %v5829_v58  ;;  %v4910_v63 = vsel %vm2350_vm5, %v4908_v8, %v5830_v54 }
0x10fe   :  { %v4911_v38 = vpack.c.bf16 %v4910_v63, %v4909_v36 }
0x1100   :  { %5767 = vmatmul.mubr.msk.bf16.vlgmr.msra.gmra.mrb[80].mxu0 %vm33_vm0, %v4911_v38 }
0x1101   :  { %5786 = vmatprep.mubr.msk.bf16.mxu0 %vm5954_vm1, %v5953_v15  ;;  %5779 = vmatpush3.bf16.msra.mxu0 %v5855_v45  ;;  %v5389_v45 = vld [vmem:[%s7069_s6 + $0x18] ss:$0 sm:$0xff] }
0x1102   :  { %5780 = vmatprep.subr.bf16.mxu0 %v5953_v15 }
0x1105   :  { %5781 = vmatpush3.bf16.msra.mxu0 %v5856_v18 }
0x1106   :  { %5782 = vmatprep.subr.bf16.mxu0 %v5953_v15 }
0x1109   :  { %5783 = vmatpush3.bf16.msra.mxu0 %v5857_v9 }
0x110a   :  { %5784 = vmatprep.subr.bf16.mxu0 %v5953_v15 }
0x110d   :  { %5785 = vmatpush3.bf16.msra.mxu0 %v5858_v13 }
0x11d3   :  { %v4970_v30 = vpop.f32.mrb[80].mxu0 }
0x11d4   :  { %v4971_v39 = vadd.f32 %v4970_v30, %v4920_v56  ;;  %v5768_v2 = vpop.f32.mrb[81].mxu0 }
0x11d5   :  { %v4973_v4 = vpop.f32.mrb[82].mxu0 }
0x11d6   :  { %v4974_v59 = vadd.f32 %v4973_v4, %v4920_v56  ;;  %v5769_v27 = vpop.f32.mrb[83].mxu0  ;;  %v4977_v62 = vadd.f32 %v4971_v39, %v6581_v49 }
0x11d8   :  { %v4979_v3 = vsel %vm33_vm0, %v4977_v62, 0.0  ;;  %v4978_v52 = vadd.f32 %v4974_v59, %v6583_v53  ;;  %v5853_v53 = vld [vmem:[%s7071_s4 + $0x10] sm:$0xff]  }
0x11d9   :  { %4980 = vadd.xlane.f32.xlu0 %v4979_v3  ;;  %5771 = vmatpush3.bf16.msra.mxu1 %v5853_v53 }
0x11da   :  { %v4982_v31 = vsel %vm33_vm0, %v4978_v52, 0.0  ;;  %5772 = vmatprep.subr.bf16.mxu1 %v5953_v15 }
0x11db   :  { %4983 = vadd.xlane.f32.xlu1 %v4982_v31  ;;  %v5116_v31 = vrot.slane %v7003_v43, %v2555_v0 }
0x11dd   :  { %5773 = vmatpush3.bf16.msra.mxu1 %v5854_v57 }
0x1266   :  { %v4981_v40 = vpop.xlane.xlu0 %4980 }
0x1267   :  { %v4985_v60 = vmul.f32 0.03125, %v4981_v40 }
0x1268   :  { %v4984_v23 = vpop.xlane.xlu1 %4983 }
0x1269   :  { %v4987_v48 = vsub.f32 %v4977_v62, %v4985_v60  ;;  %v4986_v11 = vmul.f32 0.03125, %v4984_v23 }
0x126b   :  { %v4988_v7 = vsub.f32 %v4978_v52, %v4986_v11  ;;  %v4989_v32 = vmul.f32 %v4987_v48, %v4987_v48 }
0x126d   :  { %v4991_v5 = vsel %vm33_vm0, %v4989_v32, 0.0  ;;  %v4990_v28 = vmul.f32 %v4988_v7, %v4988_v7 }
0x126e   :  { %4992 = vadd.xlane.f32.xlu0 %v4991_v5 }
0x126f   :  { %v4994_v49 = vsel %vm33_vm0, %v4990_v28, 0.0 }
0x1272   :  { %4995 = vadd.xlane.f32.xlu0 %v4994_v49 }
0x12fb   :  { %v4993_v10 = vpop.xlane.xlu0 %4992 }
0x12fc   :  { %v4997_v19 = vmul.f32 0.03125, %v4993_v10 }
0x12fe   :  { %v4999_v35 = vadd.f32 1e-12, %v4997_v19 }
0x12ff   :  { %v4996_v29 = vpop.xlane.xlu0 %4995 }
0x1300   :  { %5939 = vrsqrt.f32 %v4999_v35  ;;  %v4998_v41 = vmul.f32 0.03125, %v4996_v29 }
0x1302   :  { %v5000_v20 = vadd.f32 1e-12, %v4998_v41 }
0x1304   :  { %5941 = vrsqrt.f32 %v5000_v20 }
0x130a   :  { %v5940_v21 = vpop.eup %5939 }
0x130b   :  { %v5003_v12 = vmul.f32 %v5940_v21, %v4987_v48 }
0x130d   :  { %v5009_v34 = vmul.f32 %v5008_v55, %v5003_v12 }
0x130e   :  { %v5942_v17 = vpop.eup %5941 }
0x130f   :  { %v5004_v6 = vmul.f32 %v5942_v17, %v4988_v7  ;;  %v5015_v50 = vadd.f32 %v5014_v46, %v5009_v34 }
0x1311   :  { %v5010_v16 = vmul.f32 %v5008_v55, %v5004_v6 }
0x1313   :  { %v5016_v42 = vadd.f32 %v5014_v46, %v5010_v16  ;;  %v5216_v16 = vrot.slane %v7003_v43, %v2656_v14 }
0x1315   :  { %v5017_v1 = vpack.c.bf16 %v5016_v42, %v5015_v50 }
0x1317   :  { %5775 = vmatmul.mubr.msk.bf16.vlgmr.msra.gmra.mrb[84].mxu1 %vm33_vm0, %v5017_v1 }
0x13ea   :  { %v5078_v25 = vpop.f32.mrb[84].mxu1 }
0x13eb   :  { %v5079_v61 = vadd.f32 %v5372_v24, %v5078_v25  ;;  %v5776_v47 = vpop.f32.mrb[85].mxu1 }
0x13ec   :  { %v5081_v44 = vpop.f32.mrb[86].mxu1 }
0x13ed   :  { %v5087_v37 = vmul.f32 0.044715, %v5079_v61  ;;  %v5082_v22 = vadd.f32 %v5372_v24, %v5081_v44  ;;  %v5777_v33 = vpop.f32.mrb[87].mxu1  ;;  %v5085_v4 = vmul.f32 0.5, %v5079_v61 }
0x13ef   :  { %v5089_v54 = vmul.f32 %v5087_v37, %v5079_v61  ;;  %v5088_v58 = vmul.f32 0.044715, %v5082_v22  ;;  %v5086_v59 = vmul.f32 0.5, %v5082_v22 }
0x13f1   :  { %v5091_v51 = vmul.f32 %v5089_v54, %v5079_v61  ;;  %v5090_v8 = vmul.f32 %v5088_v58, %v5082_v22 }
0x13f3   :  { %v5093_v36 = vadd.f32 %v5091_v51, %v5079_v61  ;;  %v5092_v63 = vmul.f32 %v5090_v8, %v5082_v22 }
0x13f5   :  { %v5095_v38 = vmul.f32 0.7978846, %v5093_v36  ;;  %v5094_v15 = vadd.f32 %v5092_v63, %v5082_v22 }
0x13f7   :  { %5943 = vtanh.f32 %v5095_v38  ;;  %v5096_v56 = vmul.f32 0.7978846, %v5094_v15 }
0x13f9   :  { %5945 = vtanh.f32 %v5096_v56 }
0x1401   :  { %v5944_v30 = vpop.eup %5943 }
0x1402   :  { %v5099_v39 = vadd.f32 1.0, %v5944_v30 }
0x1403   :  { %v5946_v2 = vpop.eup %5945 }
0x1404   :  { %v5100_v27 = vadd.f32 1.0, %v5946_v2  ;;  %v5101_v62 = vmul.f32 %v5099_v39, %v5085_v4 }
0x1406   :  { %v5102_v3 = vmul.f32 %v5100_v27, %v5086_v59 }
0x1408   :  { %v5103_v52 = vpack.c.bf16 %v5102_v3, %v5101_v62 }
0x140a   :  { %5787 = vmatmul.mubr.msk.bf16.vlgmr.msra.gmra.mrb[84].mxu0 %vm2581_vm6, %v5103_v52 }
0x14dd   :  { %v5178_v40 = vpop.f32.mrb[84].mxu0 }
0x14de   :  { %v5179_v60 = vadd.f32 %v5178_v40, %v5116_v31  ;;  %v5788_v23 = vpop.f32.mrb[85].mxu0 }
0x14df   :  { %v5181_v48 = vpop.f32.mrb[86].mxu0 }
0x14e0   :  { %v5182_v11 = vadd.f32 %v5181_v48, %v5116_v31  ;;  %v5789_v7 = vpop.f32.mrb[87].mxu0  ;;  %v5185_v32 = vadd.f32 %v5179_v60, %v5015_v50 }
0x14e2   :  { %v5187_v5 = vsel %vm33_vm0, %v5185_v32, 0.0  ;;  %v5186_v28 = vadd.f32 %v5182_v11, %v5016_v42 }
0x14e3   :  { %5188 = vadd.xlane.f32.xlu1 %v5187_v5 }
0x14e4   :  { %v5190_v49 = vsel %vm33_vm0, %v5186_v28, 0.0 }
0x14e5   :  { %5191 = vadd.xlane.f32.xlu0 %v5190_v49 }
0x1570   :  { %v5189_v53 = vpop.xlane.xlu1 %5188 }
0x1571   :  { %v5193_v57 = vmul.f32 0.03125, %v5189_v53 }
0x1572   :  { %v5192_v10 = vpop.xlane.xlu0 %5191 }
0x1573   :  { %v5195_v19 = vsub.f32 %v5185_v32, %v5193_v57  ;;  %v5194_v35 = vmul.f32 0.03125, %v5192_v10 }
0x1575   :  { %v5196_v0 = vsub.f32 %v5186_v28, %v5194_v35  ;;  %v5197_v29 = vmul.f32 %v5195_v19, %v5195_v19 }
0x1577   :  { %v5199_v41 = vsel %vm33_vm0, %v5197_v29, 0.0  ;;  %v5198_v20 = vmul.f32 %v5196_v0, %v5196_v0 }
0x1578   :  { %5200 = vadd.xlane.f32.xlu1 %v5199_v41 }
0x1579   :  { %v5202_v21 = vsel %vm33_vm0, %v5198_v20, 0.0 }
0x157a   :  { %5203 = vadd.xlane.f32.xlu0 %v5202_v21 }
0x1605   :  { %v5201_v55 = vpop.xlane.xlu1 %5200 }
0x1606   :  { %v5205_v12 = vmul.f32 0.03125, %v5201_v55 }
0x1607   :  { %v5204_v17 = vpop.xlane.xlu0 %5203 }
0x1608   :  { %v5207_v34 = vadd.f32 1e-12, %v5205_v12  ;;  %v5206_v6 = vmul.f32 0.03125, %v5204_v17 }
0x160a   :  { %5947 = vrsqrt.f32 %v5207_v34  ;;  %v5208_v46 = vadd.f32 1e-12, %v5206_v6 }
0x160c   :  { %5949 = vrsqrt.f32 %v5208_v46 }
0x1614   :  { %v5948_v50 = vpop.eup %5947 }
0x1615   :  { %v5211_v42 = vmul.f32 %v5948_v50, %v5195_v19 }
0x1616   :  { %v5950_v1 = vpop.eup %5949 }
0x1617   :  { %v5217_v18 = vmul.f32 %v5216_v16, %v5211_v42  ;;  %v5212_v9 = vmul.f32 %v5950_v1, %v5196_v0 }
0x1619   :  { %v5223_v13 = vadd.f32 %v5389_v45, %v5217_v18  ;;  %v5218_v24 = vmul.f32 %v5216_v16, %v5212_v9 }
0x161b   :  { %5231 = vst.msk [vmem:[%s7074_s8 - $0x7] sm:$0x80] %vm5230_vm7, %v5223_v13  ;;  %v5224_v25 = vadd.f32 %v5389_v45, %v5218_v24 }
0x161d   :  { %v5227_v26 = vrot.slane %v5224_v25, 7 }
0x161f   :  { %5233 = vst.msk [vmem:[%s7074_s8 + $0x1] sm:$0x1] %vm5232_vm8, %v5227_v26 }

</bundles_post_ra>
